<compile_context>
chip_gen: v6e
topology: v6e:2x2x1
jax: 0.10.0
libtpu: 0.0.40
codegen_flags: <defaults>
</compile_context>

<pallas_src>
import numpy as np
import jax
import jax.numpy as jnp
from jax.experimental import pallas as pl
from jax.experimental.pallas import tpu as pltpu


# ----------------------------------------------------------------------------
# Schedule math (pure numpy, identical to the PyTorch module)
# ----------------------------------------------------------------------------
def stable_diffusion_beta_schedule(linear_start=0.00085, linear_end=0.012,
                                   n_timestep=1000):
    betas = np.linspace(linear_start ** 0.5, linear_end ** 0.5, n_timestep,
                        dtype=np.float64) ** 2
    return betas


def get_skip(alphas, betas):
    N = len(betas) - 1
    skip_alphas = np.ones([N + 1, N + 1], dtype=betas.dtype)
    for s in range(N + 1):
        skip_alphas[s, s + 1:] = alphas[s + 1:].cumprod()
    skip_betas = np.zeros([N + 1, N + 1], dtype=betas.dtype)
    for t in range(N + 1):
        prod = betas[1:t + 1] * skip_alphas[1:t + 1, t]
        skip_betas[:t, t] = prod[::-1].cumsum()[::-1]
    return skip_alphas, skip_betas


class Schedule:
    def __init__(self, _betas):
        self._betas = _betas
        self.betas = np.append(0.0, _betas)
        self.alphas = 1.0 - self.betas
        self.N = len(_betas)
        assert self.betas[0] == 0 and self.alphas[0] == 1
        self.skip_alphas, self.skip_betas = get_skip(self.alphas, self.betas)
        self.cum_alphas = self.skip_alphas[0]
        self.cum_betas = self.skip_betas[0]


def _round_up(x, m):
    return ((x + m - 1) // m) * m


# ----------------------------------------------------------------------------
# Fused diffusion-loss kernel (single grid step, everything VMEM-resident)
#
# Stacked weight row layout (all boundaries 16-row aligned for bf16 tiling):
#   [ w_xn (D rows) | w_fmri (Dcond rows) | w_clip | w_text | 0-pad ]  -> (K_all, D)
# The matching activation is never concatenated in-kernel: three sub-slice
# dots accumulate straight into the same f32 value.
# ----------------------------------------------------------------------------
def _make_kernel(D, Dcond, ext_w):
    def kernel(a_ref, b_ref, x0_ref, eps_ref, ext_ref, fmri_ref,
               wcond_ref, bcond_ref, w_ref, bias_ref, partial_ref):
        # schedule.sample(): xn = sqrt(cum_alphas[n]) * x0 + sqrt(cum_betas[n]) * eps
        xn = a_ref[...] * x0_ref[...] + b_ref[...] * eps_ref[...]          # (B, D) f32

        # cond_stage_model fused in: fmri_emb = fmri @ w_cond + b_cond (runs once)
        emb = jnp.dot(fmri_ref[...].astype(jnp.bfloat16), wcond_ref[...],
                      preferred_element_type=jnp.float32) + bcond_ref[...]  # (B, Dcond)

        # synthetic nnet: fused linear over static weight row slices (no concat,
        # no tail-pad rows pushed through the MXU)
        z = jnp.dot(xn.astype(jnp.bfloat16), w_ref[:D, :],
                    preferred_element_type=jnp.float32)
        z = z + jnp.dot(emb.astype(jnp.bfloat16), w_ref[D:D + Dcond, :],
                        preferred_element_type=jnp.float32)
        z = z + jnp.dot(ext_ref[...].astype(jnp.bfloat16),
                        w_ref[D + Dcond:D + Dcond + ext_w, :],
                        preferred_element_type=jnp.float32)
        z = z + bias_ref[...]                                               # (B, D) f32

        # loss partial: reduce over batch (sublanes) only; lane reduction + 1/D
        # happen on the host.  Store stays a plain lane-dense full-width vst.
        diff = eps_ref[...] - z
        partial_ref[...] = jnp.sum(diff * diff, axis=0, keepdims=True)      # (1, D)

    return kernel


def stack_nnet_weights(w_xn, w_fmri, w_clip, w_text):
    """Stack the synthetic nnet projections into one (D + Dcond + ext_w, D)
    bf16 weight whose row layout matches the in-kernel sub-slice dots."""
    D = w_xn.shape[1]
    Dclip, Dtext = w_clip.shape[0], w_text.shape[0]
    ext_w = _round_up(Dclip + Dtext, 128)
    rows = [w_xn, w_fmri, w_clip, w_text]
    pad = ext_w - Dclip - Dtext
    if pad:
        rows.append(jnp.zeros((pad, D), jnp.float32))
    w_all = jnp.concatenate(rows, axis=0).astype(jnp.bfloat16)
    assert w_all.shape == (D + w_fmri.shape[0] + ext_w, D)
    return w_all


def uni_lsimple_loss(a, b, x0_flat, eps_flat, ext_static, fmri,
                     w_cond, b_cond, w_all, bias):
    """loss = mos(eps - nnet(xn, ...)).sum(), fully fused in ONE grid step."""
    B, D = x0_flat.shape
    ext_w = ext_static.shape[1]
    F = fmri.shape[1]
    Dcond = w_cond.shape[1]
    K_all = D + Dcond + ext_w

    assert D % 128 == 0 and Dcond % 128 == 0 and ext_w % 128 == 0
    assert w_all.shape == (K_all, D) and w_all.dtype == jnp.bfloat16
    # TODO(synk): at realistic UViT sizes (D >> 1024) re-tile the N axis and
    # stream (>=512 KB) weight blocks instead of keeping w_all fully resident.

    kernel = _make_kernel(D, Dcond, ext_w)

    grid_spec = pltpu.PrefetchScalarGridSpec(
        num_scalar_prefetch=0,
        grid=(1,),                                        # collapsed grid
        in_specs=[
            pl.BlockSpec((B, 1), lambda i: (0, 0)),       # a  (resident)
            pl.BlockSpec((B, 1), lambda i: (0, 0)),       # b  (resident)
            pl.BlockSpec((B, D), lambda i: (0, 0)),       # x0
            pl.BlockSpec((B, D), lambda i: (0, 0)),       # eps
            pl.BlockSpec((B, ext_w), lambda i: (0, 0)),   # clip+text slab
            pl.BlockSpec((B, F), lambda i: (0, 0)),       # fmri
            pl.BlockSpec((F, Dcond), lambda i: (0, 0)),   # w_cond (bf16)
            pl.BlockSpec((1, Dcond), lambda i: (0, 0)),   # b_cond
            pl.BlockSpec((K_all, D), lambda i: (0, 0)),   # stacked W (bf16, resident)
            pl.BlockSpec((1, D), lambda i: (0, 0)),       # bias
        ],
        out_specs=pl.BlockSpec((1, D), lambda i: (0, 0)),
    )

    partial = pl.pallas_call(
        kernel,
        out_shape=jax.ShapeDtypeStruct((1, D), jnp.float32),
        grid_spec=grid_spec,
        compiler_params=pltpu.CompilerParams(
            dimension_semantics=("arbitrary",),
            vmem_limit_bytes=32 * 1024 * 1024),
    )(a, b, x0_flat, eps_flat, ext_static, fmri, w_cond, b_cond, w_all, bias)

    # partial[0, d] = sum_b (eps - z)^2 ; mos's mean over D + sum over batch:
    return jnp.sum(partial) / float(D)


def uni_model_forward(schedule, params, z_img, clip_, text, fmri, n, eps):
    """Mirrors uni_model.forward / Uni_LSimple.

    z_img: (B, C, H, W) float32 latent (NCHW); clip_: (B, 1, Dclip);
    text: (B, L, Dtext); fmri: (B, F); n: (B,) timesteps from np.random.choice;
    eps: (B, C, H, W) gaussian noise (schedule.sample's randn_like).
    """
    B = z_img.shape[0]
    D = int(np.prod(z_img.shape[1:]))

    # per-batch diffusion scalars (the `stp` coefficients) from the exact Schedule
    a = jnp.asarray(np.sqrt(schedule.cum_alphas[n]).astype(np.float32)).reshape(B, 1)
    b = jnp.asarray(np.sqrt(schedule.cum_betas[n]).astype(np.float32)).reshape(B, 1)

    # layout plumbing (XLA): flatten NCHW latent to a lane-dense (B, D) slab and
    # pack [clip | pooled text | 0] into one lane-aligned 128-wide slab
    x0_flat = z_img.reshape(B, D)
    eps_flat = eps.reshape(B, D)
    clip_flat = clip_.reshape(B, -1)
    text_pool = jnp.mean(text, axis=1)          # tiny op, deliberately left in XLA
    Dclip, Dtext = clip_flat.shape[1], text_pool.shape[1]
    ext_w = _round_up(Dclip + Dtext, 128)
    ext_static = jnp.concatenate(
        [clip_flat, text_pool,
         jnp.zeros((B, ext_w - Dclip - Dtext), jnp.float32)], axis=-1)

    # TODO(synk): t_img=n, t_text=0, data_type feed the real UViT timestep
    # embeddings; the synthetic fused linear nnet does not use them.
    return uni_lsimple_loss(a, b, x0_flat, eps_flat, ext_static, fmri,
                            params["w_cond"], params["b_cond"],
                            params["w_all"], params["bias"])


# ----------------------------------------------------------------------------
# main
# ----------------------------------------------------------------------------
if __name__ == "__main__":
    # small shapes consistent with the forward
    B, C, H, W = 2, 4, 16, 16            # latent z_img
    D = C * H * W                        # 1024
    Dclip, L, Dtext = 64, 8, 32
    Ffmri, Dcond = 256, 128

    # schedule (exact numpy math from the module)
    betas = stable_diffusion_beta_schedule()
    schedule = Schedule(betas)

    # deterministic inputs
    key = jax.random.PRNGKey(0)
    ks = jax.random.split(key, 12)
    z_img = jax.random.normal(ks[0], (B, C, H, W), jnp.float32)
    clip_ = jax.random.normal(ks[1], (B, 1, Dclip), jnp.float32)
    text = jax.random.normal(ks[2], (B, L, Dtext), jnp.float32)
    fmri = jax.random.normal(ks[3], (B, Ffmri), jnp.float32)
    eps = jax.random.normal(ks[4], (B, C, H, W), jnp.float32)

    # deterministic timestep sample (schedule.sample's np.random.choice)
    np.random.seed(0)
    n = np.random.choice(list(range(1, schedule.N + 1)), (B,))

    # deterministic synthetic parameters (stand-ins for UViT / cond_stage_model)
    scale = 0.02
    w_xn = scale * jax.random.normal(ks[6], (D, D), jnp.float32)
    w_clip = scale * jax.random.normal(ks[7], (Dclip, D), jnp.float32)
    w_text = scale * jax.random.normal(ks[8], (Dtext, D), jnp.float32)
    w_fmri = scale * jax.random.normal(ks[9], (Dcond, D), jnp.float32)
    params = {
        "w_cond": (scale * jax.random.normal(ks[5], (Ffmri, Dcond), jnp.float32)
                   ).astype(jnp.bfloat16),
        "b_cond": 0.01 * jax.random.normal(ks[10], (1, Dcond), jnp.float32),
        "w_all": stack_nnet_weights(w_xn, w_fmri, w_clip, w_text),
        "bias": 0.01 * jax.random.normal(ks[11], (1, D), jnp.float32),
    }

    loss = uni_model_forward(schedule, params, z_img, clip_, text, fmri, n, eps)
    loss = jax.block_until_ready(loss)

    # pure-JAX reference of the same fused math (bf16 weights, f32 accumulation)
    a_coef = jnp.asarray(np.sqrt(schedule.cum_alphas[n]).astype(np.float32))[:, None]
    b_coef = jnp.asarray(np.sqrt(schedule.cum_betas[n]).astype(np.float32))[:, None]
    x0f = z_img.reshape(B, D)
    epsf = eps.reshape(B, D)
    xn = a_coef * x0f + b_coef * epsf
    emb = jnp.dot(fmri.astype(jnp.bfloat16), params["w_cond"],
                  preferred_element_type=jnp.float32) + params["b_cond"]
    ext_w = _round_up(Dclip + Dtext, 128)
    ext = jnp.concatenate(
        [clip_.reshape(B, -1), jnp.mean(text, axis=1),
         jnp.zeros((B, ext_w - Dclip - Dtext), jnp.float32)], axis=-1)
    act = jnp.concatenate([xn, emb, ext], axis=-1).astype(jnp.bfloat16)
    z_out = jnp.dot(act, params["w_all"],
                    preferred_element_type=jnp.float32) + params["bias"]
    ref_loss = jnp.sum(jnp.mean((epsf - z_out) ** 2, axis=-1))
    ref_loss = jax.block_until_ready(ref_loss)

    assert np.isfinite(np.asarray(loss)), "loss is not finite"
    np.testing.assert_allclose(np.asarray(loss), np.asarray(ref_loss),
                               rtol=2e-2, atol=1e-3)
    print("KERNEL_OK")
</pallas_src>

<mosaic_0001>
module attributes {stable_mosaic.version = 11 : i64} {
  func.func @kernel(%arg0: i32, %arg1: memref<2x1xf32, #tpu.memory_space<vmem>>, %arg2: memref<2x1xf32, #tpu.memory_space<vmem>>, %arg3: memref<2x1024xf32, #tpu.memory_space<vmem>>, %arg4: memref<2x1024xf32, #tpu.memory_space<vmem>>, %arg5: memref<2x128xf32, #tpu.memory_space<vmem>>, %arg6: memref<2x256xf32, #tpu.memory_space<vmem>>, %arg7: memref<256x128xbf16, #tpu.memory_space<vmem>>, %arg8: memref<1x128xf32, #tpu.memory_space<vmem>>, %arg9: memref<1280x1024xbf16, #tpu.memory_space<vmem>>, %arg10: memref<1x1024xf32, #tpu.memory_space<vmem>>, %arg11: memref<1x1024xf32, #tpu.memory_space<vmem>>) attributes {dimension_semantics = [#tpu.dimension_semantics<arbitrary>], iteration_bounds = array<i64: 1>, scalar_prefetch = 0 : i64, scratch_operands = 0 : i64, tpu.core_type = #tpu.core_type<tc>, window_params = [{pipeline_mode = #tpu.pipeline_mode<synchronous>, transform_indices = @transform_0, window_bounds = array<i64: 2, 1>}, {pipeline_mode = #tpu.pipeline_mode<synchronous>, transform_indices = @transform_1, window_bounds = array<i64: 2, 1>}, {pipeline_mode = #tpu.pipeline_mode<synchronous>, transform_indices = @transform_2, window_bounds = array<i64: 2, 1024>}, {pipeline_mode = #tpu.pipeline_mode<synchronous>, transform_indices = @transform_3, window_bounds = array<i64: 2, 1024>}, {pipeline_mode = #tpu.pipeline_mode<synchronous>, transform_indices = @transform_4, window_bounds = array<i64: 2, 128>}, {pipeline_mode = #tpu.pipeline_mode<synchronous>, transform_indices = @transform_5, window_bounds = array<i64: 2, 256>}, {pipeline_mode = #tpu.pipeline_mode<synchronous>, transform_indices = @transform_6, window_bounds = array<i64: 256, 128>}, {pipeline_mode = #tpu.pipeline_mode<synchronous>, transform_indices = @transform_7, window_bounds = array<i64: 1, 128>}, {pipeline_mode = #tpu.pipeline_mode<synchronous>, transform_indices = @transform_8, window_bounds = array<i64: 1280, 1024>}, {pipeline_mode = #tpu.pipeline_mode<synchronous>, transform_indices = @transform_9, window_bounds = array<i64: 1, 1024>}, {pipeline_mode = #tpu.pipeline_mode<synchronous>, transform_indices = @transform_10, window_bounds = array<i64: 1, 1024>}]} {
    %c0 = arith.constant 0 : index
    %c0_0 = arith.constant 0 : index
    %0 = vector.load %arg1[%c0, %c0_0] : memref<2x1xf32, #tpu.memory_space<vmem>>, vector<2x1xf32>
    %c0_1 = arith.constant 0 : index
    %c0_2 = arith.constant 0 : index
    %1 = vector.load %arg3[%c0_1, %c0_2] : memref<2x1024xf32, #tpu.memory_space<vmem>>, vector<2x1024xf32>
    %2 = vector.broadcast %0 : vector<2x1xf32> to vector<2x1024xf32>
    %3 = arith.mulf %2, %1 : vector<2x1024xf32>
    %c0_3 = arith.constant 0 : index
    %c0_4 = arith.constant 0 : index
    %4 = vector.load %arg2[%c0_3, %c0_4] : memref<2x1xf32, #tpu.memory_space<vmem>>, vector<2x1xf32>
    %c0_5 = arith.constant 0 : index
    %c0_6 = arith.constant 0 : index
    %5 = vector.load %arg4[%c0_5, %c0_6] : memref<2x1024xf32, #tpu.memory_space<vmem>>, vector<2x1024xf32>
    %6 = vector.broadcast %4 : vector<2x1xf32> to vector<2x1024xf32>
    %7 = arith.mulf %6, %5 : vector<2x1024xf32>
    %8 = arith.addf %3, %7 : vector<2x1024xf32>
    %c0_7 = arith.constant 0 : index
    %c0_8 = arith.constant 0 : index
    %9 = vector.load %arg6[%c0_7, %c0_8] : memref<2x256xf32, #tpu.memory_space<vmem>>, vector<2x256xf32>
    %10 = arith.truncf %9 : vector<2x256xf32> to vector<2x256xbf16>
    %c0_9 = arith.constant 0 : index
    %c0_10 = arith.constant 0 : index
    %11 = vector.load %arg7[%c0_9, %c0_10] : memref<256x128xbf16, #tpu.memory_space<vmem>>, vector<256x128xbf16>
    %cst = arith.constant dense<0.000000e+00> : vector<2x128xf32>
    %12 = tpu.matmul %10, %11, %cst {dimension_numbers = #tpu.dot_dimension_numbers<[1], [0], [0], [1], [0, 0, 1, 1], [], []>} : vector<2x256xbf16>, vector<256x128xbf16>, vector<2x128xf32> -> vector<2x128xf32>
    %c0_11 = arith.constant 0 : index
    %c0_12 = arith.constant 0 : index
    %13 = vector.load %arg8[%c0_11, %c0_12] : memref<1x128xf32, #tpu.memory_space<vmem>>, vector<1x128xf32>
    %14 = vector.broadcast %13 : vector<1x128xf32> to vector<2x128xf32>
    %15 = arith.addf %12, %14 : vector<2x128xf32>
    %16 = arith.truncf %8 : vector<2x1024xf32> to vector<2x1024xbf16>
    %c0_13 = arith.constant 0 : index
    %c0_14 = arith.constant 0 : index
    %17 = vector.load %arg9[%c0_13, %c0_14] : memref<1280x1024xbf16, #tpu.memory_space<vmem>>, vector<1024x1024xbf16>
    %cst_15 = arith.constant dense<0.000000e+00> : vector<2x1024xf32>
    %18 = tpu.matmul %16, %17, %cst_15 {dimension_numbers = #tpu.dot_dimension_numbers<[1], [0], [0], [1], [0, 0, 1, 1], [], []>} : vector<2x1024xbf16>, vector<1024x1024xbf16>, vector<2x1024xf32> -> vector<2x1024xf32>
    %19 = arith.truncf %15 : vector<2x128xf32> to vector<2x128xbf16>
    %c1024 = arith.constant 1024 : index
    %c0_16 = arith.constant 0 : index
    %20 = vector.load %arg9[%c1024, %c0_16] : memref<1280x1024xbf16, #tpu.memory_space<vmem>>, vector<128x1024xbf16>
    %cst_17 = arith.constant dense<0.000000e+00> : vector<2x1024xf32>
    %21 = tpu.matmul %19, %20, %cst_17 {dimension_numbers = #tpu.dot_dimension_numbers<[1], [0], [0], [1], [0, 0, 1, 1], [], []>} : vector<2x128xbf16>, vector<128x1024xbf16>, vector<2x1024xf32> -> vector<2x1024xf32>
    %22 = arith.addf %18, %21 : vector<2x1024xf32>
    %c0_18 = arith.constant 0 : index
    %c0_19 = arith.constant 0 : index
    %23 = vector.load %arg5[%c0_18, %c0_19] : memref<2x128xf32, #tpu.memory_space<vmem>>, vector<2x128xf32>
    %24 = arith.truncf %23 : vector<2x128xf32> to vector<2x128xbf16>
    %c1152 = arith.constant 1152 : index
    %c0_20 = arith.constant 0 : index
    %25 = vector.load %arg9[%c1152, %c0_20] : memref<1280x1024xbf16, #tpu.memory_space<vmem>>, vector<128x1024xbf16>
    %cst_21 = arith.constant dense<0.000000e+00> : vector<2x1024xf32>
    %26 = tpu.matmul %24, %25, %cst_21 {dimension_numbers = #tpu.dot_dimension_numbers<[1], [0], [0], [1], [0, 0, 1, 1], [], []>} : vector<2x128xbf16>, vector<128x1024xbf16>, vector<2x1024xf32> -> vector<2x1024xf32>
    %27 = arith.addf %22, %26 : vector<2x1024xf32>
    %c0_22 = arith.constant 0 : index
    %c0_23 = arith.constant 0 : index
    %28 = vector.load %arg10[%c0_22, %c0_23] : memref<1x1024xf32, #tpu.memory_space<vmem>>, vector<1x1024xf32>
    %29 = vector.broadcast %28 : vector<1x1024xf32> to vector<2x1024xf32>
    %30 = arith.addf %27, %29 : vector<2x1024xf32>
    %c0_24 = arith.constant 0 : index
    %c0_25 = arith.constant 0 : index
    %31 = vector.load %arg4[%c0_24, %c0_25] : memref<2x1024xf32, #tpu.memory_space<vmem>>, vector<2x1024xf32>
    %32 = arith.subf %31, %30 : vector<2x1024xf32>
    %33 = arith.mulf %32, %32 : vector<2x1024xf32>
    %cst_26 = arith.constant dense<0.000000e+00> : vector<1024xf32>
    %34 = vector.multi_reduction <add>, %33, %cst_26 [0] : vector<2x1024xf32> to vector<1024xf32>
    %35 = vector.shape_cast %34 : vector<1024xf32> to vector<1x1024xf32>
    %c0_27 = arith.constant 0 : index
    %c0_28 = arith.constant 0 : index
    %36 = vector.load %arg11[%c0_27, %c0_28] : memref<1x1024xf32, #tpu.memory_space<vmem>>, vector<1x1024xf32>
    tpu.vector_store %arg11[%c0_27, %c0_28], %35 {strides = array<i32>} : memref<1x1024xf32, #tpu.memory_space<vmem>>, vector<1x1024xf32>,
    return
  }
  func.func @transform_0(%arg0: i32) -> (i32, i32) {
    %c0_i32 = arith.constant 0 : i32
    %c0_i32_0 = arith.constant 0 : i32
    %c0_i32_1 = arith.constant 0 : i32
    return %c0_i32, %c0_i32_0 : i32, i32
  }
  func.func @transform_1(%arg0: i32) -> (i32, i32) {
    %c0_i32 = arith.constant 0 : i32
    %c0_i32_0 = arith.constant 0 : i32
    %c0_i32_1 = arith.constant 0 : i32
    return %c0_i32, %c0_i32_0 : i32, i32
  }
  func.func @transform_2(%arg0: i32) -> (i32, i32) {
    %c0_i32 = arith.constant 0 : i32
    %c0_i32_0 = arith.constant 0 : i32
    %c0_i32_1 = arith.constant 0 : i32
    return %c0_i32, %c0_i32_0 : i32, i32
  }
  func.func @transform_3(%arg0: i32) -> (i32, i32) {
    %c0_i32 = arith.constant 0 : i32
    %c0_i32_0 = arith.constant 0 : i32
    %c0_i32_1 = arith.constant 0 : i32
    return %c0_i32, %c0_i32_0 : i32, i32
  }
  func.func @transform_4(%arg0: i32) -> (i32, i32) {
    %c0_i32 = arith.constant 0 : i32
    %c0_i32_0 = arith.constant 0 : i32
    %c0_i32_1 = arith.constant 0 : i32
    return %c0_i32, %c0_i32_0 : i32, i32
  }
  func.func @transform_5(%arg0: i32) -> (i32, i32) {
    %c0_i32 = arith.constant 0 : i32
    %c0_i32_0 = arith.constant 0 : i32
    %c0_i32_1 = arith.constant 0 : i32
    return %c0_i32, %c0_i32_0 : i32, i32
  }
  func.func @transform_6(%arg0: i32) -> (i32, i32) {
    %c0_i32 = arith.constant 0 : i32
    %c0_i32_0 = arith.constant 0 : i32
    %c0_i32_1 = arith.constant 0 : i32
    return %c0_i32, %c0_i32_0 : i32, i32
  }
  func.func @transform_7(%arg0: i32) -> (i32, i32) {
    %c0_i32 = arith.constant 0 : i32
    %c0_i32_0 = arith.constant 0 : i32
    %c0_i32_1 = arith.constant 0 : i32
    return %c0_i32, %c0_i32_0 : i32, i32
  }
  func.func @transform_8(%arg0: i32) -> (i32, i32) {
    %c0_i32 = arith.constant 0 : i32
    %c0_i32_0 = arith.constant 0 : i32
    %c0_i32_1 = arith.constant 0 : i32
    return %c0_i32, %c0_i32_0 : i32, i32
  }
  func.func @transform_9(%arg0: i32) -> (i32, i32) {
    %c0_i32 = arith.constant 0 : i32
    %c0_i32_0 = arith.constant 0 : i32
    %c0_i32_1 = arith.constant 0 : i32
    return %c0_i32, %c0_i32_0 : i32, i32
  }
  func.func @transform_10(%arg0: i32) -> (i32, i32) {
    %c0_i32 = arith.constant 0 : i32
    %c0_i32_0 = arith.constant 0 : i32
    %c0_i32_1 = arith.constant 0 : i32
    return %c0_i32, %c0_i32_0 : i32, i32
  }
}

</mosaic_0001>

<bundles_post_ra>
// kernel: tpu_custom_call.1
= control target key start
LH: loop header
LB: loop body
LE: loop exit
PB: predicated region body
PF: predicated region fallthrough
CT: control target
= control target key end

     0   :  { %15 = vsyncpa [#allocation3], 0  ;;  %s6845_s0 = inlined_call_operand.vmem [shape: f32[2,1], index: 0, kind: input, shape index: {}]   ;;  %s6846_s1 = inlined_call_operand.vmem [shape: f32[2,1], index: 1, kind: input, shape index: {}]   ;;  %s6847_s2 = inlined_call_operand.hbm [shape: f32[2,1024], index: 2, kind: input, shape index: {}]   ;;  %s6848_s3 = inlined_call_operand.hbm [shape: f32[2,1024], index: 3, kind: input, shape index: {}]   ;;  %s6849_s4 = inlined_call_operand.hbm [shape: f32[2,128], index: 4, kind: input, shape index: {}]   ;;  %s6850_s5 = inlined_call_operand.hbm [shape: f32[2,256], index: 5, kind: input, shape index: {}]   ;;  %s6851_s6 = inlined_call_operand.hbm [shape: bf16[256,128], index: 6, kind: input, shape index: {}]   ;;  %s6852_s7 = inlined_call_operand.hbm [shape: f32[1,128], index: 7, kind: input, shape index: {}]   ;;  %s6853_s8 = inlined_call_operand.hbm [shape: bf16[1280,1024], index: 8, kind: input, shape index: {}]   ;;  %s6854_s9 = inlined_call_operand.hbm [shape: f32[1,1024], index: 9, kind: input, shape index: {}]   ;;  %s6855_s10 = inlined_call_operand.hbm [shape: f32[1,1024], index: 10, kind: output, shape index: {}]  }
   0x1   :  { %16 = vsyncpa [#allocation6], 0 }
   0x2   :  { %17 = vsyncpa [#allocation9], 0 }
   0x3   :  { %18 = vsyncpa [#allocation12], 0 }
   0x4   :  { %19 = vsyncpa [#allocation15], 0 }
   0x5   :  { %20 = vsyncpa [#allocation4], 0  ;;  %s6482_s13 = smov [#allocation5]   ;;  %s6483_s15 = smov [#allocation8]  }
   0x6   :  { %s41_s14 = sshll.u32 %s6482_s13, 4  ;;  %s61_s16 = sshll.u32 %s6483_s15, 4  ;;  %s42_s14 = int_to_ptr.vmem [resolvable:$true] %s41_s14  ;;  %s62_s16 = int_to_ptr.vmem [resolvable:$true] %s61_s16 }
   0x7   :  { %s6298_s17 = scalar_lea.vmem %s42_s14, 256  ;;  %p6303_p1 = scmp.lt.s32.totalorder %s42_s14, %s42_s14 }
   0x8   :  { %p6299_p0 = scmp.ne.s32.totalorder %s42_s14, %s6298_s17  ;;  %p6304_p2 = scmp.lt.s32.totalorder %s6298_s17, %s6298_s17 }
   0xa   :  { %p6305_p3 = por %p6304_p2, %p6303_p1 }
   0xc   :  { %p6306_p4 = pnand %p6305_p3, %p6299_p0 }
   0xe   :  { %6309 = shalt.err (!%p6306_p4)
}
   0xf   :  { %44 = dma.hbm_to_vmem [thread:$0]  %s6848_s3, 256, %s42_s14, [#allocation6]  }
  0x10   :  { %s6318_s20 = scalar_lea.vmem %s62_s16, 64  ;;  %p6323_p6 = scmp.lt.s32.totalorder %s62_s16, %s62_s16 }
  0x11   :  { %p6319_p5 = scmp.ne.s32.totalorder %s62_s16, %s6318_s20  ;;  %p6324_p7 = scmp.lt.s32.totalorder %s6318_s20, %s6318_s20 }
  0x13   :  { %p6325_p8 = por %p6324_p7, %p6323_p6 }
  0x15   :  { %p6326_p9 = pnand %p6325_p8, %p6319_p5 }
  0x17   :  { %6329 = shalt.err (!%p6326_p9)
}
  0x18   :  { %64 = dma.hbm_to_vmem [thread:$0]  %s6850_s5, 64, %s62_s16, [#allocation9]  }
  0x19   :  { %s6484_s23 = smov [#allocation11]   ;;  %s6485_s25 = smov [#allocation2]  }
  0x1a   :  { %s83_s24 = sshll.u32 %s6484_s23, 4  ;;  %s31_s26 = sshll.u32 %s6485_s25, 4  ;;  %s84_s24 = int_to_ptr.vmem [resolvable:$true] %s83_s24  ;;  %s32_s26 = int_to_ptr.vmem [resolvable:$true] %s31_s26 }
  0x1b   :  { %s6338_s27 = scalar_lea.vmem %s84_s24, 16  ;;  %s6342_s3 = scalar_lea.vmem %s84_s24, 32 }
  0x1c   :  { %p6339_p10 = scmp.ne.s32.totalorder %s84_s24, %s6338_s27  ;;  %p6343_p11 = scmp.lt.s32.totalorder %s84_s24, %s84_s24 }
  0x1d   :  { %p6344_p12 = scmp.lt.s32.totalorder %s6342_s3, %s6338_s27 }
  0x1f   :  { %p6345_p13 = por %p6344_p12, %p6343_p11 }
  0x21   :  { %p6346_p0 = pnand %p6345_p13, %p6339_p10 }
  0x23   :  { %6349 = shalt.err (!%p6346_p0)
}
  0x24   :  { %86 = dma.hbm_to_vmem [thread:$0]  %s6852_s7, 16, %s84_s24, [#allocation12]  }
  0x25   :  { %s6358_s30 = scalar_lea.vmem %s32_s26, 256  ;;  %p6363_p2 = scmp.lt.s32.totalorder %s32_s26, %s32_s26 }
  0x26   :  { %p6359_p1 = scmp.ne.s32.totalorder %s32_s26, %s6358_s30  ;;  %p6364_p3 = scmp.lt.s32.totalorder %s6358_s30, %s6358_s30 }
  0x28   :  { %p6365_p4 = por %p6364_p3, %p6363_p2 }
  0x2a   :  { %p6366_p5 = pnand %p6365_p4, %p6359_p1 }
  0x2c   :  { %6369 = shalt.err (!%p6366_p5)
}
  0x2d   :  { %34 = dma.hbm_to_vmem [thread:$0]  %s6847_s2, 256, %s32_s26, [#allocation3]  }
  0x2e   :  { %s6486_s12 = smov [#allocation7]   ;;  %s6487_s14 = smov [#allocation10]  }
  0x2f   :  { %s51_s13 = sshll.u32 %s6486_s12, 4  ;;  %s70_s15 = sshll.u32 %s6487_s14, 4  ;;  %s52_s13 = int_to_ptr.vmem [resolvable:$true] %s51_s13  ;;  %s71_s15 = int_to_ptr.vmem [resolvable:$true] %s70_s15 }
  0x30   :  { %s6378_s16 = scalar_lea.vmem %s52_s13, 32  ;;  %p6383_p7 = scmp.lt.s32.totalorder %s52_s13, %s52_s13 }
  0x31   :  { %p6379_p6 = scmp.ne.s32.totalorder %s52_s13, %s6378_s16  ;;  %p6384_p8 = scmp.lt.s32.totalorder %s6378_s16, %s6378_s16 }
  0x33   :  { %p6385_p9 = por %p6384_p8, %p6383_p7 }
  0x35   :  { %p6386_p10 = pnand %p6385_p9, %p6379_p6 }
  0x37   :  { %6389 = shalt.err (!%p6386_p10)
}
  0x38   :  { %54 = dma.hbm_to_vmem [thread:$0]  %s6849_s4, 32, %s52_s13, [#allocation6]  }
  0x39   :  { %s6398_s18 = scalar_lea.vmem %s71_s15, 2048  ;;  %p6403_p12 = scmp.lt.s32.totalorder %s71_s15, %s71_s15 }
  0x3a   :  { %p6399_p11 = scmp.ne.s32.totalorder %s71_s15, %s6398_s18  ;;  %p6404_p13 = scmp.lt.s32.totalorder %s6398_s18, %s6398_s18 }
  0x3c   :  { %p6405_p0 = por %p6404_p13, %p6403_p12 }
  0x3e   :  { %p6406_p1 = pnand %p6405_p0, %p6399_p11 }
  0x40   :  { %6409 = shalt.err (!%p6406_p1)
}
  0x41   :  { %s6488_s2 = smov 64   ;;  %s6489_s19 = smov 4  }
  0x42   :  { %76 = dma.hbm_to_vmem [thread:$0]  %s6851_s6, 2048, %s71_s15, [#allocation9], %s6488_s2, %s6488_s2, %s6489_s19  }
  0x43   :  { %s6490_s22 = smov [#allocation13]  }
  0x44   :  { %s92_s23 = sshll.u32 %s6490_s22, 4  ;;  %s93_s23 = int_to_ptr.vmem [resolvable:$true] %s92_s23 }
  0x45   :  { %s6418_s24 = scalar_lea.vmem %s93_s23, 81920  ;;  %p6423_p3 = scmp.lt.s32.totalorder %s93_s23, %s93_s23 }
  0x46   :  { %p6419_p2 = scmp.ne.s32.totalorder %s93_s23, %s6418_s24  ;;  %p6424_p4 = scmp.lt.s32.totalorder %s6418_s24, %s6418_s24 }
  0x48   :  { %p6425_p5 = por %p6424_p4, %p6423_p3 }
  0x4a   :  { %p6426_p6 = pnand %p6425_p5, %p6419_p2 }
  0x4c   :  { %6429 = shalt.err (!%p6426_p6)
}
  0x4d   :  { %s6491_s4 = smov 512   ;;  %s6492_s25 = smov 32  }
  0x4e   :  { %98 = dma.hbm_to_vmem [thread:$0]  %s6853_s8, 81920, %s93_s23, [#allocation12], %s6491_s4, %s6491_s4, %s6492_s25  }
  0x4f   :  { %s6493_s3 = smov [#allocation14]  }
  0x50   :  { %s105_s28 = sshll.u32 %s6493_s3, 4  ;;  %s106_s28 = int_to_ptr.vmem [resolvable:$true] %s105_s28 }
  0x51   :  { %s6438_s6 = scalar_lea.vmem %s106_s28, 128  ;;  %p6443_p8 = scmp.lt.s32.totalorder %s106_s28, %s106_s28 }
  0x52   :  { %p6439_p7 = scmp.ne.s32.totalorder %s106_s28, %s6438_s6  ;;  %p6444_p9 = scmp.lt.s32.totalorder %s6438_s6, %s6438_s6 }
  0x54   :  { %p6445_p10 = por %p6444_p9, %p6443_p8 }
  0x56   :  { %p6446_p11 = pnand %p6445_p10, %p6439_p7 }
  0x58   :  { %6449 = shalt.err (!%p6446_p11)
}
  0x59   :  { %108 = dma.hbm_to_vmem [thread:$0]  %s6854_s9, 128, %s106_s28, [#allocation15]  }
  0x5a   :  { %6470 = dma.done.wait [#allocation3], 256  }
  0x5b   :  { %6471 = vsyncadd [#allocation3], 4294967040 }
  0x5c   :  { %6472 = dma.done.wait [#allocation6], 288  }
  0x5d   :  { %6473 = vsyncadd [#allocation6], 4294967008 }
  0x5e   :  { %6474 = dma.done.wait [#allocation9], 2112  }
  0x5f   :  { %6475 = vsyncadd [#allocation9], 4294965184 }
  0x60   :  { %6476 = dma.done.wait [#allocation12], 81936  }
  0x61   :  { %6477 = vsyncadd [#allocation12], 4294885360 }
  0x62   :  { %6478 = dma.done.wait [#allocation15], 128  }
  0x63   :  { %6479 = vsyncadd [#allocation15], 4294967168  ;;  %v6494_v0 = vmov 0   ;;  %v6268_v1 = vld [vmem:[#allocation10 + $0x78] sm:$0xff]   ;;  %v6270_v3 = vld [vmem:[#allocation10 + $0x70] sm:$0xff]   ;;  %vm5436_vm0 = vcmask 1041408  }
  0x64   :  { %6267 = vset.pattern.permute.xlu0 %v6494_v0  ;;  %1388 = vmatprep.mubr.bf16.mxu1 %v6494_v0  ;;  %v6269_v2 = vld [vmem:[#allocation10 + $0x38] sm:$0xff]   ;;  %v6271_v4 = vld [vmem:[#allocation10 + $0x30] sm:$0xff]   ;;  %v6272_v5 = vld [vmem:[#allocation10 + $0x68] sm:$0xff]  }
  0x65   :  { %6229 = vmatprep.subr.bf16.mxu0 %v6268_v1  ;;  %v6273_v6 = vld [vmem:[#allocation10 + $0x28] sm:$0xff]   ;;  %v6274_v7 = vld [vmem:[#allocation10 + $0x60] sm:$0xff]   ;;  %v6276_v9 = vld [vmem:[#allocation10 + $0x58] sm:$0xff]  }
  0x66   :  { %6230 = vmatpush3.bf16.msra.mxu0 %v6269_v2  ;;  %v6275_v8 = vld [vmem:[#allocation10 + $0x20] sm:$0xff]   ;;  %v6277_v10 = vld [vmem:[#allocation10 + $0x18] sm:$0xff]   ;;  %v6278_v11 = vld [vmem:[#allocation10 + $0x50] sm:$0xff]  }
  0x67   :  { %6231 = vmatprep.subr.bf16.mxu0 %v6270_v3  ;;  %v5571_v12 = vld.sshfl [vmem:[#allocation8] sm:$0x33 pattern:$0x76325410]  ;;  %v134_v13 = vld [vmem:[%s6845_s0] sm:$0x3] }
  0x68   :  { %v271_v14 = vcombine.high %v5571_v12, %v5571_v12  ;;  %139 = vperm.xlu0 %6267, %v134_v13   ;;  %v1028_v15 = vld [vmem:[#allocation13 + $0x11c0] sm:$0xff]  ;;  %v194_v17 = vld [vmem:[%s6846_s1] sm:$0x3]  ;;  %v6279_v21 = vld [vmem:[#allocation10 + $0x10] sm:$0xff]   ;;  %v274_v44 = vpack.c.bf16 %v5571_v12, %v5571_v12  ;;  %s6497_s0 = smov [#allocation16]  }
  0x69   :  { %v1032_v16 = vld [vmem:[#allocation13 + $0x11e0] sm:$0xff]  ;;  %v1029_v34 = vld [vmem:[#allocation13 + $0x11c8] sm:$0xff]  ;;  %s5558_s1 = sshll.u32 %s6497_s0, 4  ;;  %s5559_s1 = int_to_ptr.vmem [resolvable:$true] %s5558_s1 }
  0x6a   :  { %6232 = vmatpush3.bf16.msra.mxu0 %v6271_v4  ;;  %v5646_v18 = vcombine.high %v1028_v15, %v1032_v16  ;;  %v5645_v19 = vcombine.low %v1028_v15, %v1032_v16  ;;  %v1020_v20 = vld [vmem:[#allocation13 + $0x1180] sm:$0xff]  ;;  %v275_v22 = vpack.c.bf16 %v271_v14, %v271_v14  ;;  %v1033_v35 = vld [vmem:[#allocation13 + $0x11e8] sm:$0xff]  ;;  %s6450_s12 = scalar_lea.vmem %s5559_s1, 128  ;;  %p6455_p13 = scmp.lt.s32.totalorder %s5559_s1, %s5559_s1 }
  0x6b   :  { %6233 = vmatprep.subr.bf16.mxu0 %v6272_v5  ;;  %v1024_v23 = vld [vmem:[#allocation13 + $0x11a0] sm:$0xff]  ;;  %v5648_v39 = vcombine.high %v1029_v34, %v1033_v35  ;;  %v1021_v42 = vld [vmem:[#allocation13 + $0x1188] sm:$0xff]  ;;  %v5647_v46 = vcombine.low %v1029_v34, %v1033_v35  ;;  %v148_v34 = vlaneseq  ;;  %p6451_p12 = scmp.ne.s32.totalorder %s5559_s1, %s6450_s12  ;;  %p6456_p0 = scmp.lt.s32.totalorder %s6450_s12, %s6450_s12 }
  0x6c   :  { %v6280_v24 = vld [vmem:[#allocation10 + $0x48] sm:$0xff]   ;;  %1356 = vmatprep.subr.bf16.mxu1 %v5646_v18  ;;  %v5638_v25 = vcombine.high %v1020_v20, %v1024_v23  ;;  %443 = vmatprep.mubr.bf16.mxu0 %v275_v22  ;;  %v5637_v28 = vcombine.low %v1020_v20, %v1024_v23  ;;  %v6282_v31 = vld [vmem:[#allocation10 + $0x40] sm:$0xff]  }
  0x6d   :  { %v1012_v26 = vld [vmem:[#allocation13 + $0x1140] sm:$0xff]  ;;  %199 = vperm.xlu0 %6267, %v194_v17   ;;  %1357 = vmatpush1.bf16.msra.mxu1 %v5645_v19  ;;  %v1025_v43 = vld [vmem:[#allocation13 + $0x11a8] sm:$0xff]  ;;  %p6457_p1 = por %p6456_p0, %p6455_p13 }
  0x6e   :  { %6234 = vmatpush3.bf16.msra.mxu0 %v6273_v6  ;;  %v1016_v27 = vld [vmem:[#allocation13 + $0x1160] sm:$0xff]  ;;  %1358 = vmatprep.subr.bf16.mxu1 %v5638_v25  ;;  %v5640_v48 = vcombine.high %v1021_v42, %v1025_v43  ;;  %v1013_v51 = vld [vmem:[#allocation13 + $0x1148] sm:$0xff]  ;;  %v5639_v54 = vcombine.low %v1021_v42, %v1025_v43  ;;  %v6588_v25 = vld [vmem:[#allocation13 + $0x11f0] sm:$0xff] }
  0x6f   :  { %6235 = vmatprep.subr.bf16.mxu0 %v6274_v7  ;;  %v6281_v29 = vld [vmem:[#allocation10 + $0x8] sm:$0xff]   ;;  %v5630_v30 = vcombine.high %v1012_v26, %v1016_v27  ;;  %v5629_v36 = vcombine.low %v1012_v26, %v1016_v27  ;;  %v6283_v37 = vld [vmem:[#allocation10] sm:$0xff]   ;;  %p6458_p2 = pnand %p6457_p1, %p6451_p12 }
  0x70   :  { %v1004_v32 = vld [vmem:[#allocation13 + $0x1100] sm:$0xff]  ;;  %v1017_v52 = vld [vmem:[#allocation13 + $0x1168] sm:$0xff]  ;;  %v6590_v26 = vld [vmem:[#allocation13 + $0x11d8] sm:$0xff] }
  0x71   :  { %v1008_v33 = vld [vmem:[#allocation13 + $0x1120] sm:$0xff]  ;;  %1359 = vmatpush1.bf16.msra.mxu1 %v5637_v28  ;;  %v5632_v56 = vcombine.high %v1013_v51, %v1017_v52  ;;  %v1005_v57 = vld [vmem:[#allocation13 + $0x1108] sm:$0xff]  ;;  %v5631_v60 = vcombine.low %v1013_v51, %v1017_v52  ;;  %v6594_v28 = vld [vmem:[#allocation13 + $0x11f8] sm:$0xff] }
  0x72   :  { %6236 = vmatpush3.bf16.msra.mxu0 %v6275_v8  ;;  %1360 = vmatprep.subr.bf16.mxu1 %v5630_v30  ;;  %v5622_v38 = vcombine.high %v1004_v32, %v1008_v33  ;;  %v996_v40 = vld [vmem:[#allocation13 + $0x10c0] sm:$0xff]  ;;  %v5621_v45 = vcombine.low %v1004_v32, %v1008_v33  ;;  %v1009_v58 = vld [vmem:[#allocation13 + $0x1128] sm:$0xff]  ;;  %v5651_v30 = vcombine.low %v6590_v26, %v6594_v28  ;;  %v6495_v32 = vmov 1983009808  }
  0x73   :  { %6237 = vmatprep.subr.bf16.mxu0 %v6276_v9  ;;  %v1000_v41 = vld [vmem:[#allocation13 + $0x10e0] sm:$0xff]  ;;  %v5624_v61 = vcombine.high %v1005_v57, %v1009_v58  ;;  %v997_v62 = vld [vmem:[#allocation13 + $0x10c8] sm:$0xff]  ;;  %v5623_v1 = vcombine.low %v1005_v57, %v1009_v58  ;;  %v146_v33 = vunpack.c.l.s4 %v6495_v32  ;;  %v1011_v32 = vld [vmem:[#allocation13 + $0x1138] sm:$0xff] }
  0x74   :  { %v5614_v47 = vcombine.high %v996_v40, %v1000_v41  ;;  %v988_v49 = vld [vmem:[#allocation13 + $0x1080] sm:$0xff]  ;;  %v5613_v53 = vcombine.low %v996_v40, %v1000_v41  ;;  %v1001_v63 = vld [vmem:[#allocation13 + $0x10e8] sm:$0xff] }
  0x75   :  { %1361 = vmatpush1.bf16.msra.mxu1 %v5629_v36  ;;  %v992_v50 = vld [vmem:[#allocation13 + $0x10a0] sm:$0xff]  ;;  %v5616_v2 = vcombine.high %v997_v62, %v1001_v63  ;;  %v989_v3 = vld [vmem:[#allocation13 + $0x1088] sm:$0xff]  ;;  %v5615_v5 = vcombine.low %v997_v62, %v1001_v63  ;;  %v147_v35 = vunpack.c.0.s8 %v146_v33  ;;  %v6602_v36 = vshrl.u32 %v148_v34, 7 }
  0x76   :  { %6238 = vmatpush3.bf16.msra.mxu0 %v6277_v10  ;;  %1362 = vmatprep.subr.bf16.mxu1 %v5622_v38  ;;  %v5606_v55 = vcombine.high %v988_v49, %v992_v50  ;;  %v5605_v59 = vcombine.low %v988_v49, %v992_v50  ;;  %v993_v4 = vld [vmem:[#allocation13 + $0x10a8] sm:$0xff]  ;;  %v980_v8 = vld [vmem:[#allocation13 + $0x1040] sm:$0xff]  ;;  %v196_v49 = vld [vmem:[#allocation5 + $0x8] sm:$0xff] }
  0x77   :  { %6239 = vmatprep.subr.bf16.mxu0 %v6278_v11  ;;  %v5608_v6 = vcombine.high %v989_v3, %v993_v4  ;;  %v5607_v7 = vcombine.low %v989_v3, %v993_v4  ;;  %v984_v9 = vld [vmem:[#allocation13 + $0x1060] sm:$0xff]  ;;  %v981_v10 = vld [vmem:[#allocation13 + $0x1048] sm:$0xff]  ;;  %v6607_v40 = vsub.s32 %v147_v35, %v6602_v36  ;;  %v998_v35 = vld [vmem:[#allocation13 + $0x10d0] sm:$0xff] }
  0x78   :  { %v5598_v11 = vcombine.high %v980_v8, %v984_v9  ;;  %v985_v12 = vld [vmem:[#allocation13 + $0x1068] sm:$0xff]  ;;  %v5597_v15 = vcombine.low %v980_v8, %v984_v9  ;;  %v972_v16 = vld [vmem:[#allocation13 + $0x1000] sm:$0xff]  ;;  %v1022_v9 = vld [vmem:[#allocation13 + $0x1190] sm:$0xff] }
  0x79   :  { %1363 = vmatpush1.bf16.msra.mxu1 %v5621_v45  ;;  %v5599_v13 = vcombine.low %v981_v10, %v985_v12  ;;  %v5600_v14 = vcombine.high %v981_v10, %v985_v12  ;;  %v976_v17 = vld [vmem:[#allocation13 + $0x1020] sm:$0xff]  ;;  %v973_v18 = vld [vmem:[#allocation13 + $0x1008] sm:$0xff]  ;;  %v1023_v12 = vld [vmem:[#allocation13 + $0x1198] sm:$0xff] }
  0x7a   :  { %6240 = vmatpush3.bf16.msra.mxu0 %v6279_v21  ;;  %1364 = vmatprep.subr.bf16.mxu1 %v5614_v47  ;;  %v5590_v19 = vcombine.high %v972_v16, %v976_v17  ;;  %v977_v20 = vld [vmem:[#allocation13 + $0x1028] sm:$0xff]  ;;  %v5589_v23 = vcombine.low %v972_v16, %v976_v17 }
  0x7b   :  { %6241 = vmatprep.subr.bf16.mxu0 %v6280_v24  ;;  %v5591_v21 = vcombine.low %v973_v18, %v977_v20  ;;  %v5592_v22 = vcombine.high %v973_v18, %v977_v20  ;;  %v6586_v24 = vld [vmem:[#allocation13 + $0x11d0] sm:$0xff]  ;;  %v195_v38 = vld [vmem:[#allocation5] sm:$0xff] }
  0x7c   :  { %v5650_v27 = vcombine.high %v6586_v24, %v6588_v25  ;;  %v204_v42 = vcombine.high %v195_v38, %v195_v38  ;;  %v1018_v20 = vld [vmem:[#allocation13 + $0x1170] sm:$0xff] }
  0x7d   :  { %1365 = vmatpush1.bf16.msra.mxu1 %v5613_v53 }
  0x7e   :  { %6242 = vmatpush3.bf16.msra.mxu0 %v6281_v29  ;;  %1366 = vmatprep.subr.bf16.mxu1 %v5606_v55  ;;  %v5649_v29 = vcombine.low %v6586_v24, %v6588_v25 }
  0x7f   :  { %6243 = vmatprep.subr.bf16.mxu0 %v6282_v31  ;;  %v5652_v31 = vcombine.high %v6590_v26, %v6594_v28  ;;  %v1010_v28 = vld [vmem:[#allocation13 + $0x1130] sm:$0xff] }
  0x81   :  { %1367 = vmatpush1.bf16.msra.mxu1 %v5605_v59  ;;  %v6639_v59 = vrot.slane %v196_v49, %v6607_v40 }
  0x82   :  { %6244 = vmatpush3.bf16.msra.mxu0 %v6283_v37  ;;  %1368 = vmatprep.subr.bf16.mxu1 %v5598_v11  ;;  %v135_v37 = vld [vmem:[#allocation2] sm:$0xff]  ;;  %v1026_v11 = vld [vmem:[#allocation13 + $0x11b0] sm:$0xff] }
  0x83   :  { %1397 = vmatprep.subr.bf16.mxu0 %v5648_v39  ;;  %v144_v41 = vcombine.high %v135_v37, %v135_v37  ;;  %v6612_v45 = vrot.slane %v135_v37, %v6607_v40  ;;  %v5642_v17 = vcombine.high %v1022_v9, %v1026_v11  ;;  %v1002_v37 = vld [vmem:[#allocation13 + $0x10f0] sm:$0xff] }
  0x85   :  { %444 = vmatmul.mubr.bf16.vlgmr.msra.gmra.mxu0 %v274_v44  ;;  %1369 = vmatpush1.bf16.msra.mxu1 %v5597_v15  ;;  %v136_v44 = vld [vmem:[#allocation2 + $0x8] sm:$0xff]  ;;  %v6618_v47 = vrot.slane %v144_v41, %v6607_v40  ;;  %v1003_v41 = vld [vmem:[#allocation13 + $0x10f8] sm:$0xff] }
  0x86   :  { %1398 = vmatpush1.bf16.msra.mxu0 %v5647_v46  ;;  %1429 = vmatprep.mubr.bf16.mxu0 %v6494_v0  ;;  %v6615_v46 = vrot.slane %v195_v38, %v6607_v40  ;;  %v161_v53 = vcombine.high %v136_v44, %v136_v44  ;;  %v6636_v58 = vrot.slane %v136_v44, %v6607_v40  ;;  %v999_v38 = vld [vmem:[#allocation13 + $0x10d8] sm:$0xff] }
  0x87   :  { %1399 = vmatprep.subr.bf16.mxu0 %v5640_v48  ;;  %1370 = vmatprep.subr.bf16.mxu1 %v5590_v19  ;;  %v6621_v48 = vrot.slane %v204_v42, %v6607_v40  ;;  %v1014_v19 = vld [vmem:[#allocation13 + $0x1150] sm:$0xff] }
  0x88   :  { %v5634_v25 = vcombine.high %v1014_v19, %v1018_v20  ;;  %v5633_v33 = vcombine.low %v1014_v19, %v1018_v20  ;;  %v160_v19 = vcombine.high %v6618_v47, %v6618_v47 }
  0x89   :  { %1371 = vmatpush1.bf16.msra.mxu1 %v5589_v23  ;;  %v5641_v23 = vcombine.low %v1022_v9, %v1026_v11  ;;  %v220_v20 = vcombine.high %v6621_v48, %v6621_v48 }
  0x8a   :  { %1400 = vmatpush1.bf16.msra.mxu0 %v5639_v54  ;;  %1438 = vmatprep.subr.bf16.mxu1 %v5650_v27  ;;  %v1006_v27 = vld [vmem:[#allocation13 + $0x1110] sm:$0xff] }
  0x8b   :  { %1401 = vmatprep.subr.bf16.mxu0 %v5632_v56  ;;  %v221_v56 = vcombine.high %v196_v49, %v196_v49  ;;  %v5625_v42 = vcombine.low %v1006_v27, %v1010_v28  ;;  %v5618_v49 = vcombine.high %v998_v35, %v1002_v37 }
  0x8d   :  { %v6649_v63 = vrot.slane %v221_v56, %v6607_v40  ;;  %v5617_v56 = vcombine.low %v998_v35, %v1002_v37  ;;  %v635_v35 = vld [vmem:[#allocation13 + $0x580] sm:$0xff] }
  0x8e   :  { %1402 = vmatpush1.bf16.msra.mxu0 %v5631_v60  ;;  %v6642_v60 = vrot.slane %v161_v53, %v6607_v40  ;;  %v991_v53 = vld [vmem:[#allocation13 + $0x1098] sm:$0xff]  ;;  %v639_v37 = vld [vmem:[#allocation13 + $0x5a0] sm:$0xff] }
  0x8f   :  { %1403 = vmatprep.subr.bf16.mxu0 %v5624_v61 }
  0x92   :  { %1404 = vmatpush1.bf16.msra.mxu0 %v5623_v1 }
  0x93   :  { %1405 = vmatprep.subr.bf16.mxu0 %v5616_v2 }
  0x96   :  { %1406 = vmatpush1.bf16.msra.mxu0 %v5615_v5 }
  0x97   :  { %1407 = vmatprep.subr.bf16.mxu0 %v5608_v6  ;;  %v5572_v6 = vld [vmem:[#allocation11] ss:$0 sm:$0xff] }
  0x9a   :  { %1408 = vmatpush1.bf16.msra.mxu0 %v5607_v7 }
  0x9b   :  { %1409 = vmatprep.subr.bf16.mxu0 %v5600_v14 }
  0x9e   :  { %1410 = vmatpush1.bf16.msra.mxu0 %v5599_v13  ;;  %v1027_v13 = vld [vmem:[#allocation13 + $0x11b8] sm:$0xff] }
  0x9f   :  { %1411 = vmatprep.subr.bf16.mxu0 %v5592_v22  ;;  %v5644_v18 = vcombine.high %v1023_v12, %v1027_v13  ;;  %v1019_v22 = vld [vmem:[#allocation13 + $0x1178] sm:$0xff]  ;;  %v5643_v24 = vcombine.low %v1023_v12, %v1027_v13  ;;  %v974_v12 = vld [vmem:[#allocation13 + $0x1010] sm:$0xff] }
  0xa0   :  { %v978_v13 = vld [vmem:[#allocation13 + $0x1030] sm:$0xff] }
  0xa2   :  { %1412 = vmatpush1.bf16.msra.mxu0 %v5591_v21  ;;  %v1015_v21 = vld [vmem:[#allocation13 + $0x1158] sm:$0xff] }
  0xa3   :  { %1479 = vmatprep.subr.bf16.mxu0 %v5652_v31  ;;  %v5636_v26 = vcombine.high %v1015_v21, %v1019_v22  ;;  %v1007_v31 = vld [vmem:[#allocation13 + $0x1118] sm:$0xff]  ;;  %v5635_v34 = vcombine.low %v1015_v21, %v1019_v22 }
  0xa4   :  { %v5627_v44 = vcombine.low %v1007_v31, %v1011_v32 }
  0xe3   :  { %v6604_v39 = vpop.permute.xlu0 %139 }
  0xe4   :  { %v186_v50 = vmul.f32 %v6612_v45, %v6604_v39  ;;  %v188_v52 = vmul.f32 %v6618_v47, %v6604_v39  ;;  %v190_v61 = vmul.f32 %v6636_v58, %v6604_v39  ;;  %v192_v1 = vmul.f32 %v6642_v60, %v6604_v39 }
  0xe5   :  { %v189_v47 = vmul.f32 %v160_v19, %v6604_v39 }
  0xe8   :  { %v6609_v43 = vpop.permute.xlu0 %199 }
  0xe9   :  { %v246_v51 = vmul.f32 %v6615_v46, %v6609_v43  ;;  %v248_v54 = vmul.f32 %v6621_v48, %v6609_v43  ;;  %v250_v62 = vmul.f32 %v6639_v59, %v6609_v43  ;;  %v252_v3 = vmul.f32 %v6649_v63, %v6609_v43 }
  0xea   :  { %v249_v48 = vmul.f32 %v220_v20, %v6609_v43 }
  0xeb   :  { %v6631_v55 = vadd.f32 %v246_v51, %v186_v50  ;;  %v6633_v57 = vadd.f32 %v248_v54, %v188_v52  ;;  %v6653_v2 = vadd.f32 %v250_v62, %v190_v61  ;;  %v6657_v4 = vadd.f32 %v252_v3, %v192_v1  ;;  %v990_v51 = vld [vmem:[#allocation13 + $0x1090] sm:$0xff]  ;;  %v995_v54 = vld [vmem:[#allocation13 + $0x10b8] sm:$0xff] }
  0xec   :  { %v5620_v50 = vcombine.high %v999_v38, %v1003_v41  ;;  %v994_v52 = vld [vmem:[#allocation13 + $0x10b0] sm:$0xff]  ;;  %v5619_v61 = vcombine.low %v999_v38, %v1003_v41  ;;  %v5612_v1 = vcombine.high %v991_v53, %v995_v54  ;;  %v5611_v9 = vcombine.low %v991_v53, %v995_v54  ;;  %v627_v53 = vld [vmem:[#allocation13 + $0x540] sm:$0xff] }
  0xed   :  { %v5610_v62 = vcombine.high %v990_v51, %v994_v52  ;;  %v982_v3 = vld [vmem:[#allocation13 + $0x1050] sm:$0xff]  ;;  %v257_v41 = vadd.f32 %v249_v48, %v189_v47  ;;  %v631_v54 = vld [vmem:[#allocation13 + $0x560] sm:$0xff] }
  0xee   :  { %v471_v47 = vld [vmem:[#allocation13 + $0x60] sm:$0xff] }
  0xef   :  { %v595_v48 = vld [vmem:[#allocation13 + $0x440] sm:$0xff] }
 0x145   :  { %v6245_v5 = vpop.f32.mrf.mxu0 }
 0x147   :  { %v6246_v7 = vpop.f32.mrf.mxu0 }
 0x148   :  { %v6247_v8 = vadd.f32 %v6246_v7, %v6245_v5  ;;  %v986_v5 = vld [vmem:[#allocation13 + $0x1070] sm:$0xff]  ;;  %v987_v7 = vld [vmem:[#allocation13 + $0x1078] sm:$0xff] }
 0x149   :  { %v6248_v10 = vpop.f32.mrf.mxu0  ;;  %v5601_v21 = vcombine.low %v982_v3, %v986_v5 }
 0x14a   :  { %v446_v14 = vadd.f32 %v6247_v8, %v5572_v6  ;;  %v983_v6 = vld [vmem:[#allocation13 + $0x1058] sm:$0xff]  ;;  %v5609_v8 = vcombine.low %v990_v51, %v994_v52  ;;  %v5602_v10 = vcombine.high %v982_v3, %v986_v5  ;;  %v499_v51 = vld [vmem:[#allocation13 + $0x140] sm:$0xff]  ;;  %v5822_v5 = vcombine.high %v627_v53, %v631_v54 }
 0x14b   :  { %v6249_v15 = vpop.f32.mrf.mxu0  ;;  %v5604_v11 = vcombine.high %v983_v6, %v987_v7  ;;  %v5603_v22 = vcombine.low %v983_v6, %v987_v7  ;;  %v503_v52 = vld [vmem:[#allocation13 + $0x160] sm:$0xff] }
 0x14c   :  { %v6659_v16 = vpack.c.bf16 %v446_v14, %v446_v14  ;;  %v975_v14 = vld [vmem:[#allocation13 + $0x1018] sm:$0xff]  ;;  %v5694_v3 = vcombine.high %v499_v51, %v503_v52  ;;  %v491_v6 = vld [vmem:[#allocation13 + $0x100] sm:$0xff] }
 0x14d   :  { %v979_v15 = vld [vmem:[#allocation13 + $0x1038] sm:$0xff]  ;;  %v495_v7 = vld [vmem:[#allocation13 + $0x120] sm:$0xff] }
 0x14e   :  { %1389 = vmatmul.mubr.bf16.vlgmr.msra.gmra.mxu1 %v6659_v16  ;;  %1430 = vmatmul.mubr.bf16.vlgmr.msra.gmra.mxu0 %v6659_v16 }
 0x14f   :  { %1439 = vmatpush1.bf16.msra.mxu1 %v5649_v29  ;;  %1480 = vmatpush1.bf16.msra.mxu0 %v5651_v30  ;;  %v5626_v29 = vcombine.high %v1006_v27, %v1010_v28  ;;  %v5628_v30 = vcombine.high %v1007_v31, %v1011_v32  ;;  %v647_v27 = vld [vmem:[#allocation13 + $0x5e0] sm:$0xff]  ;;  %v5593_v31 = vcombine.low %v974_v12, %v978_v13 }
 0x150   :  { %1440 = vmatprep.subr.bf16.mxu1 %v5642_v17  ;;  %1481 = vmatprep.subr.bf16.mxu0 %v5644_v18  ;;  %v159_v17 = vcombine.high %v6612_v45, %v6612_v45  ;;  %v219_v18 = vcombine.high %v6615_v46, %v6615_v46  ;;  %v643_v45 = vld [vmem:[#allocation13 + $0x5c0] sm:$0xff]  ;;  %v5595_v32 = vcombine.low %v975_v14, %v979_v15 }
 0x151   :  { %1470 = vmatprep.mubr.bf16.mxu1 %v6494_v0  ;;  %1511 = vmatprep.mubr.bf16.mxu0 %v6494_v0 }
 0x152   :  { %v187_v46 = vmul.f32 %v159_v17, %v6604_v39  ;;  %v247_v28 = vmul.f32 %v219_v18, %v6609_v43  ;;  %v615_v17 = vld [vmem:[#allocation13 + $0x4e0] sm:$0xff]  ;;  %v5685_v18 = vcombine.low %v491_v6, %v495_v7 }
 0x153   :  { %1441 = vmatpush1.bf16.msra.mxu1 %v5641_v23  ;;  %1482 = vmatpush1.bf16.msra.mxu0 %v5643_v24  ;;  %v5594_v23 = vcombine.high %v974_v12, %v978_v13  ;;  %v5596_v24 = vcombine.high %v975_v14, %v979_v15  ;;  %v483_v13 = vld [vmem:[#allocation13 + $0xc0] sm:$0xff] }
 0x154   :  { %1442 = vmatprep.subr.bf16.mxu1 %v5634_v25  ;;  %1483 = vmatprep.subr.bf16.mxu0 %v5636_v26  ;;  %v515_v25 = vld [vmem:[#allocation13 + $0x1c0] sm:$0xff]  ;;  %v255_v38 = vadd.f32 %v247_v28, %v187_v46 }
 0x155   :  { %v519_v26 = vld [vmem:[#allocation13 + $0x1e0] sm:$0xff] }
 0x156   :  { %v487_v14 = vld [vmem:[#allocation13 + $0xe0] sm:$0xff] }
 0x157   :  { %1443 = vmatpush1.bf16.msra.mxu1 %v5633_v33  ;;  %1484 = vmatpush1.bf16.msra.mxu0 %v5635_v34  ;;  %v5710_v33 = vcombine.high %v515_v25, %v519_v26  ;;  %v5838_v34 = vcombine.high %v643_v45, %v647_v27  ;;  %v611_v15 = vld [vmem:[#allocation13 + $0x4c0] sm:$0xff]  ;;  %v5678_v20 = vcombine.high %v483_v13, %v487_v14 }
 0x158   :  { %1444 = vmatprep.subr.bf16.mxu1 %v5626_v29  ;;  %1485 = vmatprep.subr.bf16.mxu0 %v5628_v30  ;;  %v507_v29 = vld [vmem:[#allocation13 + $0x180] sm:$0xff] }
 0x159   :  { %v511_v30 = vld [vmem:[#allocation13 + $0x1a0] sm:$0xff] }
 0x15a   :  { %v467_v28 = vld [vmem:[#allocation13 + $0x40] sm:$0xff] }
 0x15b   :  { %1445 = vmatpush1.bf16.msra.mxu1 %v5625_v42  ;;  %1486 = vmatpush1.bf16.msra.mxu0 %v5627_v44  ;;  %v5709_v42 = vcombine.low %v515_v25, %v519_v26  ;;  %v5837_v44 = vcombine.low %v643_v45, %v647_v27  ;;  %v607_v25 = vld [vmem:[#allocation13 + $0x4a0] sm:$0xff]  ;;  %v5677_v26 = vcombine.low %v483_v13, %v487_v14 }
 0x15c   :  { %1446 = vmatprep.subr.bf16.mxu1 %v5618_v49  ;;  %1487 = vmatprep.subr.bf16.mxu0 %v5620_v50  ;;  %v5702_v49 = vcombine.high %v507_v29, %v511_v30  ;;  %v5830_v50 = vcombine.high %v635_v35, %v639_v37  ;;  %v5805_v45 = vcombine.low %v611_v15, %v615_v17  ;;  %v567_v13 = vld [vmem:[#allocation13 + $0x360] sm:$0xff] }
 0x15d   :  { %v691_v14 = vld [vmem:[#allocation13 + $0x740] sm:$0xff] }
 0x15f   :  { %1447 = vmatpush1.bf16.msra.mxu1 %v5617_v56  ;;  %1488 = vmatpush1.bf16.msra.mxu0 %v5619_v61  ;;  %v6677_v56 = vpack.c.bf16 %v255_v38, %v255_v38  ;;  %v6679_v61 = vpack.c.bf16 %v257_v41, %v257_v41  ;;  %v591_v38 = vld [vmem:[#allocation13 + $0x420] sm:$0xff]  ;;  %v5661_v41 = vcombine.low %v467_v28, %v471_v47 }
 0x160   :  { %1448 = vmatprep.subr.bf16.mxu1 %v5610_v62  ;;  %1489 = vmatprep.subr.bf16.mxu0 %v5612_v1  ;;  %v5701_v62 = vcombine.low %v507_v29, %v511_v30  ;;  %v5829_v1 = vcombine.low %v635_v35, %v639_v37  ;;  %v459_v30 = vld [vmem:[#allocation13] sm:$0xff] }
 0x161   :  { %v463_v35 = vld [vmem:[#allocation13 + $0x20] sm:$0xff] }
 0x162   :  { %v587_v37 = vld [vmem:[#allocation13 + $0x400] sm:$0xff] }
 0x163   :  { %1449 = vmatpush1.bf16.msra.mxu1 %v5609_v8  ;;  %1490 = vmatpush1.bf16.msra.mxu0 %v5611_v9  ;;  %v619_v8 = vld [vmem:[#allocation13 + $0x500] sm:$0xff] }
 0x164   :  { %1450 = vmatprep.subr.bf16.mxu1 %v5602_v10  ;;  %1491 = vmatprep.subr.bf16.mxu0 %v5604_v11  ;;  %v623_v9 = vld [vmem:[#allocation13 + $0x520] sm:$0xff]  ;;  %v5693_v10 = vcombine.low %v499_v51, %v503_v52  ;;  %v5686_v11 = vcombine.high %v491_v6, %v495_v7 }
 0x165   :  { %v5814_v12 = vcombine.high %v619_v8, %v623_v9  ;;  %v5813_v19 = vcombine.low %v619_v8, %v623_v9  ;;  %v583_v51 = vld [vmem:[#allocation13 + $0x3e0] sm:$0xff] }
 0x166   :  { %v707_v52 = vld [vmem:[#allocation13 + $0x7c0] sm:$0xff] }
 0x167   :  { %1451 = vmatpush1.bf16.msra.mxu1 %v5601_v21  ;;  %1492 = vmatpush1.bf16.msra.mxu0 %v5603_v22  ;;  %v5806_v21 = vcombine.high %v611_v15, %v615_v17  ;;  %v475_v22 = vld [vmem:[#allocation13 + $0x80] sm:$0xff] }
 0x168   :  { %1452 = vmatprep.subr.bf16.mxu1 %v5594_v23  ;;  %1493 = vmatprep.subr.bf16.mxu0 %v5596_v24  ;;  %v479_v23 = vld [vmem:[#allocation13 + $0xa0] sm:$0xff] }
 0x169   :  { %v603_v24 = vld [vmem:[#allocation13 + $0x480] sm:$0xff]  ;;  %v5670_v27 = vcombine.high %v475_v22, %v479_v23 }
 0x16a   :  { %v5798_v46 = vcombine.high %v603_v24, %v607_v25  ;;  %v575_v6 = vld [vmem:[#allocation13 + $0x3a0] sm:$0xff] }
 0x16b   :  { %1453 = vmatpush1.bf16.msra.mxu1 %v5593_v31  ;;  %1494 = vmatpush1.bf16.msra.mxu0 %v5595_v32  ;;  %v599_v31 = vld [vmem:[#allocation13 + $0x460] sm:$0xff]  ;;  %v5669_v32 = vcombine.low %v475_v22, %v479_v23 }
 0x16c   :  { %4080 = vmatprep.subr.bf16.mxu1 %v5710_v33  ;;  %4121 = vmatprep.subr.bf16.mxu0 %v5838_v34  ;;  %v5797_v33 = vcombine.low %v603_v24, %v607_v25  ;;  %v5662_v34 = vcombine.high %v467_v28, %v471_v47  ;;  %v5790_v29 = vcombine.high %v595_v48, %v599_v31  ;;  %v699_v7 = vld [vmem:[#allocation13 + $0x780] sm:$0xff] }
 0x16d   :  { %v703_v8 = vld [vmem:[#allocation13 + $0x7a0] sm:$0xff] }
 0x16e   :  { %1471 = vmatmul.mubr.bf16.vlgmr.msra.gmra.mxu1 %v6659_v16  ;;  %1512 = vmatmul.mubr.bf16.vlgmr.msra.gmra.mxu0 %v6659_v16  ;;  %v5821_v16 = vcombine.low %v627_v53, %v631_v54  ;;  %v711_v53 = vld [vmem:[#allocation13 + $0x7e0] sm:$0xff]  ;;  %v5653_v54 = vcombine.low %v459_v30, %v463_v35 }
 0x16f   :  { %4081 = vmatpush1.bf16.msra.mxu1 %v5709_v42  ;;  %4122 = vmatpush1.bf16.msra.mxu0 %v5837_v44  ;;  %v5789_v42 = vcombine.low %v595_v48, %v599_v31  ;;  %v5654_v44 = vcombine.high %v459_v30, %v463_v35  ;;  %v695_v15 = vld [vmem:[#allocation13 + $0x760] sm:$0xff] }
 0x170   :  { %4082 = vmatprep.subr.bf16.mxu1 %v5702_v49  ;;  %4123 = vmatprep.subr.bf16.mxu0 %v5830_v50  ;;  %v5782_v49 = vcombine.high %v587_v37, %v591_v38  ;;  %v579_v50 = vld [vmem:[#allocation13 + $0x3c0] sm:$0xff] }
 0x171   :  { %4112 = vmatprep.mubr.bf16.mxu1 %v6677_v56  ;;  %4153 = vmatprep.mubr.bf16.mxu0 %v6679_v61  ;;  %v5773_v9 = vcombine.low %v579_v50, %v583_v51  ;;  %v559_v22 = vld [vmem:[#allocation13 + $0x320] sm:$0xff] }
 0x172   :  { %v683_v23 = vld [vmem:[#allocation13 + $0x700] sm:$0xff] }
 0x173   :  { %4083 = vmatpush1.bf16.msra.mxu1 %v5701_v62  ;;  %4124 = vmatpush1.bf16.msra.mxu0 %v5829_v1  ;;  %v5781_v62 = vcombine.low %v587_v37, %v591_v38  ;;  %v5774_v1 = vcombine.high %v579_v50, %v583_v51  ;;  %v687_v24 = vld [vmem:[#allocation13 + $0x720] sm:$0xff] }
 0x174   :  { %4084 = vmatprep.subr.bf16.mxu1 %v5694_v3  ;;  %4125 = vmatprep.subr.bf16.mxu0 %v5822_v5  ;;  %v5902_v3 = vcombine.high %v707_v52, %v711_v53  ;;  %v571_v5 = vld [vmem:[#allocation13 + $0x380] sm:$0xff] }
 0x175   :  { %v5765_v17 = vcombine.low %v571_v5, %v575_v6  ;;  %v551_v28 = vld [vmem:[#allocation13 + $0x2e0] sm:$0xff] }
 0x176   :  { %v675_v47 = vld [vmem:[#allocation13 + $0x6c0] sm:$0xff] }
 0x177   :  { %4085 = vmatpush1.bf16.msra.mxu1 %v5693_v10  ;;  %4126 = vmatpush1.bf16.msra.mxu0 %v5821_v16  ;;  %v5901_v10 = vcombine.low %v707_v52, %v711_v53  ;;  %v5766_v16 = vcombine.high %v571_v5, %v575_v6  ;;  %v679_v48 = vld [vmem:[#allocation13 + $0x6e0] sm:$0xff] }
 0x178   :  { %4086 = vmatprep.subr.bf16.mxu1 %v5686_v11  ;;  %4127 = vmatprep.subr.bf16.mxu0 %v5814_v12  ;;  %v5894_v11 = vcombine.high %v699_v7, %v703_v8  ;;  %v563_v12 = vld [vmem:[#allocation13 + $0x340] sm:$0xff] }
 0x179   :  { %v5757_v25 = vcombine.low %v563_v12, %v567_v13  ;;  %v543_v30 = vld [vmem:[#allocation13 + $0x2a0] sm:$0xff] }
 0x17a   :  { %v667_v35 = vld [vmem:[#allocation13 + $0x680] sm:$0xff] }
 0x17b   :  { %4087 = vmatpush1.bf16.msra.mxu1 %v5685_v18  ;;  %4128 = vmatpush1.bf16.msra.mxu0 %v5813_v19  ;;  %v5893_v18 = vcombine.low %v699_v7, %v703_v8  ;;  %v5758_v19 = vcombine.high %v563_v12, %v567_v13  ;;  %v671_v37 = vld [vmem:[#allocation13 + $0x6a0] sm:$0xff]  ;;  %v176_v8 = vcombine.high %v6636_v58, %v6636_v58 }
 0x17c   :  { %4088 = vmatprep.subr.bf16.mxu1 %v5678_v20  ;;  %4129 = vmatprep.subr.bf16.mxu0 %v5806_v21  ;;  %v5886_v20 = vcombine.high %v691_v14, %v695_v15  ;;  %v555_v21 = vld [vmem:[#allocation13 + $0x300] sm:$0xff] }
 0x17d   :  { %v5749_v31 = vcombine.low %v555_v21, %v559_v22  ;;  %v535_v50 = vld [vmem:[#allocation13 + $0x260] sm:$0xff] }
 0x17e   :  { %v659_v51 = vld [vmem:[#allocation13 + $0x640] sm:$0xff] }
 0x17f   :  { %4089 = vmatpush1.bf16.msra.mxu1 %v5677_v26  ;;  %4130 = vmatpush1.bf16.msra.mxu0 %v5805_v45  ;;  %v5885_v26 = vcombine.low %v691_v14, %v695_v15  ;;  %v5750_v45 = vcombine.high %v555_v21, %v559_v22  ;;  %v663_v52 = vld [vmem:[#allocation13 + $0x660] sm:$0xff] }
 0x180   :  { %4090 = vmatprep.subr.bf16.mxu1 %v5670_v27  ;;  %4131 = vmatprep.subr.bf16.mxu0 %v5798_v46  ;;  %v5878_v27 = vcombine.high %v683_v23, %v687_v24  ;;  %v547_v46 = vld [vmem:[#allocation13 + $0x2c0] sm:$0xff]  ;;  %v5853_v12 = vcombine.low %v659_v51, %v663_v52 }
 0x181   :  { %v5741_v38 = vcombine.low %v547_v46, %v551_v28  ;;  %v527_v5 = vld [vmem:[#allocation13 + $0x220] sm:$0xff] }
 0x182   :  { %v651_v6 = vld [vmem:[#allocation13 + $0x600] sm:$0xff] }
 0x183   :  { %4091 = vmatpush1.bf16.msra.mxu1 %v5669_v32  ;;  %4132 = vmatpush1.bf16.msra.mxu0 %v5797_v33  ;;  %v5877_v32 = vcombine.low %v683_v23, %v687_v24  ;;  %v5742_v33 = vcombine.high %v547_v46, %v551_v28  ;;  %v655_v7 = vld [vmem:[#allocation13 + $0x620] sm:$0xff] }
 0x184   :  { %4092 = vmatprep.subr.bf16.mxu1 %v5662_v34  ;;  %4133 = vmatprep.subr.bf16.mxu0 %v5790_v29  ;;  %v5870_v34 = vcombine.high %v675_v47, %v679_v48  ;;  %v539_v29 = vld [vmem:[#allocation13 + $0x280] sm:$0xff]  ;;  %v5846_v14 = vcombine.high %v651_v6, %v655_v7  ;;  %v5845_v21 = vcombine.low %v651_v6, %v655_v7 }
 0x185   :  { %v5733_v53 = vcombine.low %v539_v29, %v543_v30  ;;  %v771_v15 = vld [vmem:[#allocation13 + $0x9c0] sm:$0xff] }
 0x186   :  { %v899_v58 = vld [vmem:[#allocation13 + $0xdc0] sm:$0xff] }
 0x187   :  { %4093 = vmatpush1.bf16.msra.mxu1 %v5661_v41  ;;  %4134 = vmatpush1.bf16.msra.mxu0 %v5789_v42  ;;  %v5869_v41 = vcombine.low %v675_v47, %v679_v48  ;;  %v5734_v42 = vcombine.high %v539_v29, %v543_v30  ;;  %v895_v46 = vld [vmem:[#allocation13 + $0xda0] sm:$0xff] }
 0x188   :  { %4094 = vmatprep.subr.bf16.mxu1 %v5654_v44  ;;  %4135 = vmatprep.subr.bf16.mxu0 %v5782_v49  ;;  %v5862_v44 = vcombine.high %v667_v35, %v671_v37  ;;  %v531_v49 = vld [vmem:[#allocation13 + $0x240] sm:$0xff] }
 0x189   :  { %v887_v30 = vld [vmem:[#allocation13 + $0xd60] sm:$0xff] }
 0x18b   :  { %4095 = vmatpush1.bf16.msra.mxu1 %v5653_v54  ;;  %4136 = vmatpush1.bf16.msra.mxu0 %v5781_v62  ;;  %v5861_v54 = vcombine.low %v667_v35, %v671_v37  ;;  %v5726_v62 = vcombine.high %v531_v49, %v535_v50 }
 0x18c   :  { %4096 = vmatprep.subr.bf16.mxu1 %v5774_v1  ;;  %4137 = vmatprep.subr.bf16.mxu0 %v5902_v3  ;;  %v5854_v1 = vcombine.high %v659_v51, %v663_v52  ;;  %v523_v3 = vld [vmem:[#allocation13 + $0x200] sm:$0xff] }
 0x18d   :  { %v5718_v13 = vcombine.high %v523_v3, %v527_v5 }
 0x18f   :  { %4097 = vmatpush2.bf16.msra.mxu1 %v5773_v9  ;;  %4138 = vmatpush2.bf16.msra.mxu0 %v5901_v10  ;;  %v236_v9 = vcombine.high %v6639_v59, %v6639_v59  ;;  %v177_v10 = vcombine.high %v6642_v60, %v6642_v60  ;;  %v191_v59 = vmul.f32 %v176_v8, %v6604_v39 }
 0x190   :  { %4098 = vmatprep.subr.bf16.mxu1 %v5766_v16  ;;  %4139 = vmatprep.subr.bf16.mxu0 %v5894_v11  ;;  %v237_v16 = vcombine.high %v6649_v63, %v6649_v63  ;;  %v5725_v11 = vcombine.low %v531_v49, %v535_v50  ;;  %v879_v49 = vld [vmem:[#allocation13 + $0xd20] sm:$0xff] }
 0x191   :  { %v193_v60 = vmul.f32 %v177_v10, %v6604_v39  ;;  %v6699_v39 = vpack.c.bf16 %v6631_v55, %v6631_v55  ;;  %v883_v55 = vld [vmem:[#allocation13 + $0xd40] sm:$0xff] }
 0x192   :  { %v253_v63 = vmul.f32 %v237_v16, %v6609_v43  ;;  %v6077_v51 = vcombine.low %v883_v55, %v887_v30  ;;  %v735_v10 = vld [vmem:[#allocation13 + $0x8a0] sm:$0xff] }
 0x193   :  { %4099 = vmatpush2.bf16.msra.mxu1 %v5765_v17  ;;  %4140 = vmatpush2.bf16.msra.mxu0 %v5893_v18  ;;  %v775_v17 = vld [vmem:[#allocation13 + $0x9e0] sm:$0xff] }
 0x194   :  { %4100 = vmatprep.subr.bf16.mxu1 %v5758_v19  ;;  %4141 = vmatprep.subr.bf16.mxu0 %v5886_v20  ;;  %v903_v18 = vld [vmem:[#allocation13 + $0xde0] sm:$0xff]  ;;  %v251_v19 = vmul.f32 %v236_v9, %v6609_v43  ;;  %v5717_v20 = vcombine.low %v523_v3, %v527_v5  ;;  %v5966_v22 = vcombine.high %v771_v15, %v775_v17 }
 0x195   :  { %v6094_v23 = vcombine.high %v899_v58, %v903_v18  ;;  %v5965_v28 = vcombine.low %v771_v15, %v775_v17  ;;  %v6703_v43 = vpack.c.bf16 %v6633_v57, %v6633_v57  ;;  %v6093_v47 = vcombine.low %v899_v58, %v903_v18  ;;  %v871_v3 = vld [vmem:[#allocation13 + $0xce0] sm:$0xff] }
 0x196   :  { %v259_v24 = vadd.f32 %v251_v19, %v191_v59  ;;  %v731_v9 = vld [vmem:[#allocation13 + $0x880] sm:$0xff] }
 0x197   :  { %4101 = vmatpush2.bf16.msra.mxu1 %v5757_v25  ;;  %4142 = vmatpush2.bf16.msra.mxu0 %v5885_v26  ;;  %v763_v25 = vld [vmem:[#allocation13 + $0x980] sm:$0xff]  ;;  %v261_v26 = vadd.f32 %v253_v63, %v193_v60  ;;  %v5925_v19 = vcombine.low %v731_v9, %v735_v10 }
 0x198   :  { %4102 = vmatprep.subr.bf16.mxu1 %v5750_v45  ;;  %4143 = vmatprep.subr.bf16.mxu0 %v5878_v27  ;;  %v767_v45 = vld [vmem:[#allocation13 + $0x9a0] sm:$0xff]  ;;  %v6705_v48 = vpack.c.bf16 %v259_v24, %v259_v24 }
 0x199   :  { %v891_v27 = vld [vmem:[#allocation13 + $0xd80] sm:$0xff]  ;;  %v6709_v29 = vpack.c.bf16 %v261_v26, %v261_v26  ;;  %v5957_v57 = vcombine.low %v763_v25, %v767_v45 }
 0x19a   :  { %v6085_v35 = vcombine.low %v891_v27, %v895_v46  ;;  %v859_v16 = vld [vmem:[#allocation13 + $0xc80] sm:$0xff] }
 0x19b   :  { %4103 = vmatpush2.bf16.msra.mxu1 %v5749_v31  ;;  %4144 = vmatpush2.bf16.msra.mxu0 %v5877_v32  ;;  %v5958_v31 = vcombine.high %v763_v25, %v767_v45  ;;  %v6086_v32 = vcombine.high %v891_v27, %v895_v46  ;;  %v723_v17 = vld [vmem:[#allocation13 + $0x840] sm:$0xff] }
 0x19c   :  { %4104 = vmatprep.subr.bf16.mxu1 %v5742_v33  ;;  %4145 = vmatprep.subr.bf16.mxu0 %v5870_v34  ;;  %v755_v33 = vld [vmem:[#allocation13 + $0x940] sm:$0xff] }
 0x19d   :  { %v759_v34 = vld [vmem:[#allocation13 + $0x960] sm:$0xff] }
 0x19e   :  { %v5950_v37 = vcombine.high %v755_v33, %v759_v34  ;;  %v5949_v50 = vcombine.low %v755_v33, %v759_v34  ;;  %v727_v58 = vld [vmem:[#allocation13 + $0x860] sm:$0xff] }
 0x19f   :  { %4105 = vmatpush2.bf16.msra.mxu1 %v5741_v38  ;;  %4146 = vmatpush2.bf16.msra.mxu0 %v5869_v41  ;;  %v6078_v38 = vcombine.high %v883_v55, %v887_v30  ;;  %v747_v41 = vld [vmem:[#allocation13 + $0x900] sm:$0xff]  ;;  %v5918_v63 = vcombine.high %v723_v17, %v727_v58  ;;  %v5917_v25 = vcombine.low %v723_v17, %v727_v58 }
 0x1a0   :  { %4106 = vmatprep.subr.bf16.mxu1 %v5734_v42  ;;  %4147 = vmatprep.subr.bf16.mxu0 %v5862_v44  ;;  %v751_v42 = vld [vmem:[#allocation13 + $0x920] sm:$0xff] }
 0x1a1   :  { %v875_v44 = vld [vmem:[#allocation13 + $0xd00] sm:$0xff]  ;;  %v5942_v52 = vcombine.high %v747_v41, %v751_v42  ;;  %v5941_v5 = vcombine.low %v747_v41, %v751_v42 }
 0x1a2   :  { %v6069_v6 = vcombine.low %v875_v44, %v879_v49  ;;  %v851_v18 = vld [vmem:[#allocation13 + $0xc40] sm:$0xff] }
 0x1a3   :  { %4107 = vmatpush2.bf16.msra.mxu1 %v5733_v53  ;;  %4148 = vmatpush2.bf16.msra.mxu0 %v5861_v54  ;;  %v6070_v53 = vcombine.high %v875_v44, %v879_v49  ;;  %v739_v54 = vld [vmem:[#allocation13 + $0x8c0] sm:$0xff] }
 0x1a4   :  { %4108 = vmatprep.subr.bf16.mxu1 %v5726_v62  ;;  %4149 = vmatprep.subr.bf16.mxu0 %v5854_v1  ;;  %v743_v62 = vld [vmem:[#allocation13 + $0x8e0] sm:$0xff] }
 0x1a5   :  { %v867_v1 = vld [vmem:[#allocation13 + $0xcc0] sm:$0xff]  ;;  %v5934_v7 = vcombine.high %v739_v54, %v743_v62 }
 0x1a6   :  { %v6062_v8 = vcombine.high %v867_v1, %v871_v3  ;;  %v855_v59 = vld [vmem:[#allocation13 + $0xc60] sm:$0xff] }
 0x1a7   :  { %4109 = vmatpush2.bf16.msra.mxu1 %v5725_v11  ;;  %4150 = vmatpush2.bf16.msra.mxu0 %v5853_v12  ;;  %v863_v11 = vld [vmem:[#allocation13 + $0xca0] sm:$0xff]  ;;  %v5933_v12 = vcombine.low %v739_v54, %v743_v62  ;;  %v6045_v26 = vcombine.low %v851_v18, %v855_v59 }
 0x1a8   :  { %4110 = vmatprep.subr.bf16.mxu1 %v5718_v13  ;;  %4151 = vmatprep.subr.bf16.mxu0 %v5846_v14  ;;  %v6061_v13 = vcombine.low %v867_v1, %v871_v3  ;;  %v5926_v14 = vcombine.high %v731_v9, %v735_v10  ;;  %v6054_v15 = vcombine.high %v859_v16, %v863_v11  ;;  %v847_v24 = vld [vmem:[#allocation13 + $0xc20] sm:$0xff] }
 0x1a9   :  { %v6053_v60 = vcombine.low %v859_v16, %v863_v11  ;;  %v835_v46 = vld [vmem:[#allocation13 + $0xbc0] sm:$0xff] }
 0x1aa   :  { %v827_v30 = vld [vmem:[#allocation13 + $0xb80] sm:$0xff] }
 0x1ab   :  { %4111 = vmatpush2.bf16.msra.mxu1 %v5717_v20  ;;  %4152 = vmatpush2.bf16.msra.mxu0 %v5845_v21  ;;  %v6046_v20 = vcombine.high %v851_v18, %v855_v59  ;;  %v715_v21 = vld [vmem:[#allocation13 + $0x800] sm:$0xff] }
 0x1ac   :  { %4162 = vmatprep.subr.bf16.mxu1 %v5966_v22  ;;  %4203 = vmatprep.subr.bf16.mxu0 %v6094_v23  ;;  %v719_v22 = vld [vmem:[#allocation13 + $0x820] sm:$0xff] }
 0x1ad   :  { %v843_v23 = vld [vmem:[#allocation13 + $0xc00] sm:$0xff]  ;;  %v5910_v45 = vcombine.high %v715_v21, %v719_v22 }
 0x1ae   :  { %4113 = vmatmul.mubr.bf16.vlgmr.msra.gmra.mxu1 %v6699_v39  ;;  %4154 = vmatmul.mubr.bf16.vlgmr.msra.gmra.mxu0 %v6703_v43  ;;  %v6038_v27 = vcombine.high %v843_v23, %v847_v24  ;;  %v6037_v33 = vcombine.low %v843_v23, %v847_v24  ;;  %v819_v49 = vld [vmem:[#allocation13 + $0xb40] sm:$0xff] }
 0x1af   :  { %4163 = vmatpush1.bf16.msra.mxu1 %v5965_v28  ;;  %4194 = vmatprep.mubr.bf16.mxu1 %v6705_v48  ;;  %v839_v28 = vld [vmem:[#allocation13 + $0xbe0] sm:$0xff] }
 0x1b0   :  { %4204 = vmatpush1.bf16.msra.mxu0 %v6093_v47  ;;  %4235 = vmatprep.mubr.bf16.mxu0 %v6709_v29  ;;  %v963_v47 = vld [vmem:[#allocation13 + $0xfc0] sm:$0xff]  ;;  %v6030_v34 = vcombine.high %v835_v46, %v839_v28 }
 0x1b1   :  { %4164 = vmatprep.subr.bf16.mxu1 %v5958_v31  ;;  %4205 = vmatprep.subr.bf16.mxu0 %v6086_v32  ;;  %v967_v31 = vld [vmem:[#allocation13 + $0xfe0] sm:$0xff]  ;;  %v5909_v32 = vcombine.low %v715_v21, %v719_v22 }
 0x1b2   :  { %v6158_v55 = vcombine.high %v963_v47, %v967_v31  ;;  %v6157_v41 = vcombine.low %v963_v47, %v967_v31  ;;  %v811_v3 = vld [vmem:[#allocation13 + $0xb00] sm:$0xff] }
 0x1b3   :  { %4165 = vmatpush1.bf16.msra.mxu1 %v5957_v57  ;;  %v831_v57 = vld [vmem:[#allocation13 + $0xba0] sm:$0xff] }
 0x1b4   :  { %4206 = vmatpush1.bf16.msra.mxu0 %v6085_v35  ;;  %4166 = vmatprep.subr.bf16.mxu1 %v5950_v37  ;;  %v955_v35 = vld [vmem:[#allocation13 + $0xf80] sm:$0xff]  ;;  %v6022_v42 = vcombine.high %v827_v30, %v831_v57 }
 0x1b5   :  { %4207 = vmatprep.subr.bf16.mxu0 %v6078_v38  ;;  %v959_v37 = vld [vmem:[#allocation13 + $0xfa0] sm:$0xff]  ;;  %v6029_v38 = vcombine.low %v835_v46, %v839_v28 }
 0x1b6   :  { %v6150_v44 = vcombine.high %v955_v35, %v959_v37  ;;  %v6149_v54 = vcombine.low %v955_v35, %v959_v37  ;;  %v803_v11 = vld [vmem:[#allocation13 + $0xac0] sm:$0xff]  ;;  %v516_v37 = vld [vmem:[#allocation13 + $0x1c8] sm:$0xff] }
 0x1b7   :  { %4167 = vmatpush1.bf16.msra.mxu1 %v5949_v50  ;;  %v823_v50 = vld [vmem:[#allocation13 + $0xb60] sm:$0xff] }
 0x1b8   :  { %4208 = vmatpush1.bf16.msra.mxu0 %v6077_v51  ;;  %4168 = vmatprep.subr.bf16.mxu1 %v5942_v52  ;;  %v947_v51 = vld [vmem:[#allocation13 + $0xf40] sm:$0xff]  ;;  %v6014_v62 = vcombine.high %v819_v49, %v823_v50 }
 0x1b9   :  { %4209 = vmatprep.subr.bf16.mxu0 %v6070_v53  ;;  %v951_v52 = vld [vmem:[#allocation13 + $0xf60] sm:$0xff]  ;;  %v6021_v53 = vcombine.low %v827_v30, %v831_v57 }
 0x1ba   :  { %v6142_v1 = vcombine.high %v947_v51, %v951_v52  ;;  %v6141_v9 = vcombine.low %v947_v51, %v951_v52  ;;  %v795_v59 = vld [vmem:[#allocation13 + $0xa80] sm:$0xff]  ;;  %v508_v52 = vld [vmem:[#allocation13 + $0x188] sm:$0xff] }
 0x1bb   :  { %4169 = vmatpush1.bf16.msra.mxu1 %v5941_v5  ;;  %v815_v5 = vld [vmem:[#allocation13 + $0xb20] sm:$0xff] }
 0x1bc   :  { %4210 = vmatpush1.bf16.msra.mxu0 %v6069_v6  ;;  %4170 = vmatprep.subr.bf16.mxu1 %v5934_v7  ;;  %v939_v6 = vld [vmem:[#allocation13 + $0xf00] sm:$0xff]  ;;  %v6006_v10 = vcombine.high %v811_v3, %v815_v5 }
 0x1bd   :  { %4211 = vmatprep.subr.bf16.mxu0 %v6062_v8  ;;  %v943_v7 = vld [vmem:[#allocation13 + $0xf20] sm:$0xff]  ;;  %v6013_v8 = vcombine.low %v819_v49, %v823_v50 }
 0x1be   :  { %v6134_v16 = vcombine.high %v939_v6, %v943_v7  ;;  %v6133_v17 = vcombine.low %v939_v6, %v943_v7  ;;  %v787_v24 = vld [vmem:[#allocation13 + $0xa40] sm:$0xff]  ;;  %v6719_v6 = vpack.c.bf16 %v6657_v4, %v6657_v4 }
 0x1bf   :  { %4171 = vmatpush1.bf16.msra.mxu1 %v5933_v12  ;;  %v807_v12 = vld [vmem:[#allocation13 + $0xae0] sm:$0xff] }
 0x1c0   :  { %4212 = vmatpush1.bf16.msra.mxu0 %v6061_v13  ;;  %4172 = vmatprep.subr.bf16.mxu1 %v5926_v14  ;;  %v931_v13 = vld [vmem:[#allocation13 + $0xec0] sm:$0xff]  ;;  %v5998_v58 = vcombine.high %v803_v11, %v807_v12 }
 0x1c1   :  { %4213 = vmatprep.subr.bf16.mxu0 %v6054_v15  ;;  %v935_v14 = vld [vmem:[#allocation13 + $0xee0] sm:$0xff]  ;;  %v6005_v15 = vcombine.low %v811_v3, %v815_v5  ;;  %v6715_v3 = vpack.c.bf16 %v6653_v2, %v6653_v2 }
 0x1c2   :  { %v6126_v18 = vcombine.high %v931_v13, %v935_v14  ;;  %v6125_v21 = vcombine.low %v931_v13, %v935_v14  ;;  %v779_v31 = vld [vmem:[#allocation13 + $0xa00] sm:$0xff]  ;;  %v492_v14 = vld [vmem:[#allocation13 + $0x108] sm:$0xff] }
 0x1c3   :  { %4173 = vmatpush1.bf16.msra.mxu1 %v5925_v19  ;;  %v799_v19 = vld [vmem:[#allocation13 + $0xaa0] sm:$0xff] }
 0x1c4   :  { %4214 = vmatpush1.bf16.msra.mxu0 %v6053_v60  ;;  %4174 = vmatprep.subr.bf16.mxu1 %v5918_v63  ;;  %v923_v60 = vld [vmem:[#allocation13 + $0xe80] sm:$0xff]  ;;  %v5990_v22 = vcombine.high %v795_v59, %v799_v19 }
 0x1c5   :  { %4215 = vmatprep.subr.bf16.mxu0 %v6046_v20  ;;  %v927_v63 = vld [vmem:[#allocation13 + $0xea0] sm:$0xff]  ;;  %v5997_v20 = vcombine.low %v803_v11, %v807_v12  ;;  %v632_v11 = vld [vmem:[#allocation13 + $0x568] sm:$0xff] }
 0x1c6   :  { %v6118_v23 = vcombine.high %v923_v60, %v927_v63  ;;  %v6117_v46 = vcombine.low %v923_v60, %v927_v63  ;;  %v484_v63 = vld [vmem:[#allocation13 + $0xc8] sm:$0xff] }
 0x1c7   :  { %4175 = vmatpush1.bf16.msra.mxu1 %v5917_v25  ;;  %v791_v25 = vld [vmem:[#allocation13 + $0xa60] sm:$0xff] }
 0x1c8   :  { %4216 = vmatpush1.bf16.msra.mxu0 %v6045_v26  ;;  %4176 = vmatprep.subr.bf16.mxu1 %v5910_v45  ;;  %v915_v26 = vld [vmem:[#allocation13 + $0xe40] sm:$0xff]  ;;  %v5982_v28 = vcombine.high %v787_v24, %v791_v25 }
 0x1c9   :  { %4217 = vmatprep.subr.bf16.mxu0 %v6038_v27  ;;  %v919_v45 = vld [vmem:[#allocation13 + $0xe60] sm:$0xff]  ;;  %v5989_v27 = vcombine.low %v795_v59, %v799_v19 }
 0x1ca   :  { %v6110_v47 = vcombine.high %v915_v26, %v919_v45  ;;  %v6109_v30 = vcombine.low %v915_v26, %v919_v45  ;;  %v476_v45 = vld [vmem:[#allocation13 + $0x88] sm:$0xff] }
 0x1cb   :  { %4177 = vmatpush1.bf16.msra.mxu1 %v5909_v32  ;;  %v783_v32 = vld [vmem:[#allocation13 + $0xa20] sm:$0xff] }
 0x1cc   :  { %4218 = vmatpush1.bf16.msra.mxu0 %v6037_v33  ;;  %4178 = vmatprep.subr.bf16.mxu1 %v6030_v34  ;;  %v907_v33 = vld [vmem:[#allocation13 + $0xe00] sm:$0xff]  ;;  %v5974_v57 = vcombine.high %v779_v31, %v783_v32 }
 0x1cd   :  { %4219 = vmatprep.subr.bf16.mxu0 %v6158_v55  ;;  %v911_v34 = vld [vmem:[#allocation13 + $0xe20] sm:$0xff]  ;;  %v5981_v55 = vcombine.low %v787_v24, %v791_v25 }
 0x1ce   :  { %v6102_v35 = vcombine.high %v907_v33, %v911_v34  ;;  %v6101_v49 = vcombine.low %v907_v33, %v911_v34  ;;  %v468_v34 = vld [vmem:[#allocation13 + $0x48] sm:$0xff] }
 0x1cf   :  { %4179 = vmatpush2.bf16.msra.mxu1 %v6029_v38  ;;  %v520_v38 = vld [vmem:[#allocation13 + $0x1e8] sm:$0xff] }
 0x1d0   :  { %4220 = vmatpush2.bf16.msra.mxu0 %v6157_v41  ;;  %4180 = vmatprep.subr.bf16.mxu1 %v6022_v42  ;;  %v644_v41 = vld [vmem:[#allocation13 + $0x5c8] sm:$0xff]  ;;  %v5712_v50 = vcombine.high %v516_v37, %v520_v38 }
 0x1d1   :  { %4221 = vmatprep.subr.bf16.mxu0 %v6150_v44  ;;  %v648_v42 = vld [vmem:[#allocation13 + $0x5e8] sm:$0xff]  ;;  %v5973_v44 = vcombine.low %v779_v31, %v783_v32 }
 0x1d2   :  { %v5840_v51 = vcombine.high %v644_v41, %v648_v42  ;;  %v5839_v5 = vcombine.low %v644_v41, %v648_v42  ;;  %v460_v42 = vld [vmem:[#allocation13 + $0x8] sm:$0xff] }
 0x1d3   :  { %4181 = vmatpush2.bf16.msra.mxu1 %v6021_v53  ;;  %v512_v53 = vld [vmem:[#allocation13 + $0x1a8] sm:$0xff] }
 0x1d4   :  { %4222 = vmatpush2.bf16.msra.mxu0 %v6149_v54  ;;  %4182 = vmatprep.subr.bf16.mxu1 %v6014_v62  ;;  %v5711_v54 = vcombine.low %v516_v37, %v520_v38  ;;  %v636_v62 = vld [vmem:[#allocation13 + $0x588] sm:$0xff]  ;;  %v5704_v7 = vcombine.high %v508_v52, %v512_v53  ;;  %v5703_v2 = vcombine.low %v508_v52, %v512_v53 }
 0x1d5   :  { %4223 = vmatprep.subr.bf16.mxu0 %v6142_v1  ;;  %v640_v1 = vld [vmem:[#allocation13 + $0x5a8] sm:$0xff] }
 0x1d6   :  { %v5831_v12 = vcombine.low %v636_v62, %v640_v1 }
 0x1d7   :  { %4183 = vmatpush2.bf16.msra.mxu1 %v6013_v8  ;;  %v500_v8 = vld [vmem:[#allocation13 + $0x148] sm:$0xff] }
 0x1d8   :  { %4224 = vmatpush2.bf16.msra.mxu0 %v6141_v9  ;;  %4184 = vmatprep.subr.bf16.mxu1 %v6006_v10  ;;  %v504_v9 = vld [vmem:[#allocation13 + $0x168] sm:$0xff]  ;;  %v5832_v10 = vcombine.high %v636_v62, %v640_v1 }
 0x1d9   :  { %4225 = vmatprep.subr.bf16.mxu0 %v6134_v16  ;;  %v628_v16 = vld [vmem:[#allocation13 + $0x548] sm:$0xff]  ;;  %v5696_v13 = vcombine.high %v500_v8, %v504_v9 }
 0x1da   :  { %v5824_v4 = vcombine.high %v628_v16, %v632_v11  ;;  %v5823_v59 = vcombine.low %v628_v16, %v632_v11  ;;  %v580_v62 = vld [vmem:[#allocation13 + $0x3c8] sm:$0xff] }
 0x1db   :  { %4185 = vmatpush2.bf16.msra.mxu1 %v6005_v15  ;;  %v496_v15 = vld [vmem:[#allocation13 + $0x128] sm:$0xff] }
 0x1dc   :  { %4226 = vmatpush2.bf16.msra.mxu0 %v6133_v17  ;;  %4186 = vmatprep.subr.bf16.mxu1 %v5998_v58  ;;  %v620_v17 = vld [vmem:[#allocation13 + $0x508] sm:$0xff]  ;;  %v5688_v19 = vcombine.high %v492_v14, %v496_v15 }
 0x1dd   :  { %4227 = vmatprep.subr.bf16.mxu0 %v6126_v18  ;;  %v624_v58 = vld [vmem:[#allocation13 + $0x528] sm:$0xff]  ;;  %v5695_v18 = vcombine.low %v500_v8, %v504_v9 }
 0x1de   :  { %v5816_v60 = vcombine.high %v620_v17, %v624_v58  ;;  %v5815_v24 = vcombine.low %v620_v17, %v624_v58  ;;  %v584_v1 = vld [vmem:[#allocation13 + $0x3e8] sm:$0xff] }
 0x1df   :  { %4187 = vmatpush2.bf16.msra.mxu1 %v5997_v20  ;;  %v488_v20 = vld [vmem:[#allocation13 + $0xe8] sm:$0xff] }
 0x1e0   :  { %4228 = vmatpush2.bf16.msra.mxu0 %v6125_v21  ;;  %4188 = vmatprep.subr.bf16.mxu1 %v5990_v22  ;;  %v612_v21 = vld [vmem:[#allocation13 + $0x4c8] sm:$0xff]  ;;  %v5680_v25 = vcombine.high %v484_v63, %v488_v20 }
 0x1e1   :  { %4229 = vmatprep.subr.bf16.mxu0 %v6118_v23  ;;  %v616_v22 = vld [vmem:[#allocation13 + $0x4e8] sm:$0xff]  ;;  %v5687_v23 = vcombine.low %v492_v14, %v496_v15 }
 0x1e2   :  { %v5808_v26 = vcombine.high %v612_v21, %v616_v22  ;;  %v5807_v31 = vcombine.low %v612_v21, %v616_v22  ;;  %v572_v11 = vld [vmem:[#allocation13 + $0x388] sm:$0xff] }
 0x1e3   :  { %4189 = vmatpush2.bf16.msra.mxu1 %v5989_v27  ;;  %v480_v27 = vld [vmem:[#allocation13 + $0xa8] sm:$0xff] }
 0x1e4   :  { %4230 = vmatpush2.bf16.msra.mxu0 %v6117_v46  ;;  %4190 = vmatprep.subr.bf16.mxu1 %v5982_v28  ;;  %v604_v46 = vld [vmem:[#allocation13 + $0x488] sm:$0xff]  ;;  %v5672_v32 = vcombine.high %v476_v45, %v480_v27 }
 0x1e5   :  { %4231 = vmatprep.subr.bf16.mxu0 %v6110_v47  ;;  %v608_v28 = vld [vmem:[#allocation13 + $0x4a8] sm:$0xff]  ;;  %v5679_v47 = vcombine.low %v484_v63, %v488_v20 }
 0x1e6   :  { %v5800_v33 = vcombine.high %v604_v46, %v608_v28  ;;  %v5799_v37 = vcombine.low %v604_v46, %v608_v28  ;;  %v564_v58 = vld [vmem:[#allocation13 + $0x348] sm:$0xff] }
 0x1e7   :  { %4191 = vmatpush2.bf16.msra.mxu1 %v5981_v55  ;;  %v472_v55 = vld [vmem:[#allocation13 + $0x68] sm:$0xff] }
 0x1e8   :  { %4232 = vmatpush2.bf16.msra.mxu0 %v6109_v30  ;;  %4192 = vmatprep.subr.bf16.mxu1 %v5974_v57  ;;  %v596_v30 = vld [vmem:[#allocation13 + $0x448] sm:$0xff]  ;;  %v5664_v38 = vcombine.high %v468_v34, %v472_v55 }
 0x1e9   :  { %4233 = vmatprep.subr.bf16.mxu0 %v6102_v35  ;;  %v600_v57 = vld [vmem:[#allocation13 + $0x468] sm:$0xff]  ;;  %v5671_v35 = vcombine.low %v476_v45, %v480_v27 }
 0x1ea   :  { %v5792_v41 = vcombine.high %v596_v30, %v600_v57  ;;  %v5791_v52 = vcombine.low %v596_v30, %v600_v57  ;;  %v696_v63 = vld [vmem:[#allocation13 + $0x768] sm:$0xff] }
 0x1eb   :  { %4193 = vmatpush2.bf16.msra.mxu1 %v5973_v44  ;;  %v464_v44 = vld [vmem:[#allocation13 + $0x28] sm:$0xff] }
 0x1ec   :  { %4234 = vmatpush2.bf16.msra.mxu0 %v6101_v49  ;;  %4244 = vmatprep.subr.bf16.mxu1 %v5712_v50  ;;  %v588_v49 = vld [vmem:[#allocation13 + $0x408] sm:$0xff]  ;;  %v5656_v53 = vcombine.high %v460_v42, %v464_v44  ;;  %v5655_v8 = vcombine.low %v460_v42, %v464_v44 }
 0x1ed   :  { %4285 = vmatprep.subr.bf16.mxu0 %v5840_v51  ;;  %v592_v50 = vld [vmem:[#allocation13 + $0x428] sm:$0xff]  ;;  %v5663_v51 = vcombine.low %v468_v34, %v472_v55 }
 0x1ee   :  { %4195 = vmatmul.mubr.bf16.vlgmr.msra.gmra.mxu1 %v6715_v3  ;;  %v5783_v9 = vcombine.low %v588_v49, %v592_v50  ;;  %v560_v45 = vld [vmem:[#allocation13 + $0x328] sm:$0xff] }
 0x1ef   :  { %4236 = vmatmul.mubr.bf16.vlgmr.msra.gmra.mxu0 %v6719_v6  ;;  %4245 = vmatpush1.bf16.msra.mxu1 %v5711_v54  ;;  %v5784_v54 = vcombine.high %v588_v49, %v592_v50  ;;  %v684_v28 = vld [vmem:[#allocation13 + $0x708] sm:$0xff] }
 0x1f0   :  { %4276 = vmatprep.mubr.bf16.mxu1 %v6677_v56  ;;  %4286 = vmatpush1.bf16.msra.mxu0 %v5839_v5  ;;  %v708_v5 = vld [vmem:[#allocation13 + $0x7c8] sm:$0xff] }
 0x1f1   :  { %4317 = vmatprep.mubr.bf16.mxu0 %v6679_v61  ;;  %4246 = vmatprep.subr.bf16.mxu1 %v5704_v7  ;;  %v712_v7 = vld [vmem:[#allocation13 + $0x7e8] sm:$0xff] }
 0x1f2   :  { %4287 = vmatprep.subr.bf16.mxu0 %v5832_v10  ;;  %v5776_v10 = vcombine.high %v580_v62, %v584_v1  ;;  %v5904_v16 = vcombine.high %v708_v5, %v712_v7  ;;  %v5903_v14 = vcombine.low %v708_v5, %v712_v7  ;;  %v548_v57 = vld [vmem:[#allocation13 + $0x2c8] sm:$0xff] }
 0x1f3   :  { %4247 = vmatpush1.bf16.msra.mxu1 %v5703_v2  ;;  %v576_v2 = vld [vmem:[#allocation13 + $0x3a8] sm:$0xff] }
 0x1f4   :  { %4288 = vmatpush1.bf16.msra.mxu0 %v5831_v12  ;;  %4248 = vmatprep.subr.bf16.mxu1 %v5696_v13  ;;  %v700_v12 = vld [vmem:[#allocation13 + $0x788] sm:$0xff]  ;;  %v5768_v15 = vcombine.high %v572_v11, %v576_v2  ;;  %v5767_v20 = vcombine.low %v572_v11, %v576_v2 }
 0x1f5   :  { %4289 = vmatprep.subr.bf16.mxu0 %v5824_v4  ;;  %v704_v13 = vld [vmem:[#allocation13 + $0x7a8] sm:$0xff]  ;;  %v5775_v4 = vcombine.low %v580_v62, %v584_v1 }
 0x1f6   :  { %v5896_v17 = vcombine.high %v700_v12, %v704_v13  ;;  %v540_v50 = vld [vmem:[#allocation13 + $0x288] sm:$0xff] }
 0x1f7   :  { %4249 = vmatpush1.bf16.msra.mxu1 %v5695_v18  ;;  %v568_v18 = vld [vmem:[#allocation13 + $0x368] sm:$0xff] }
 0x1f8   :  { %4290 = vmatpush1.bf16.msra.mxu0 %v5823_v59  ;;  %4250 = vmatprep.subr.bf16.mxu1 %v5688_v19  ;;  %v532_v7 = vld [vmem:[#allocation13 + $0x248] sm:$0xff] }
 0x1f9   :  { %4291 = vmatprep.subr.bf16.mxu0 %v5816_v60  ;;  %v692_v60 = vld [vmem:[#allocation13 + $0x748] sm:$0xff] }
 0x1fa   :  { %v5887_v34 = vcombine.low %v692_v60, %v696_v63 }
 0x1fb   :  { %4251 = vmatpush1.bf16.msra.mxu1 %v5687_v23  ;;  %v5895_v23 = vcombine.low %v700_v12, %v704_v13  ;;  %v524_v13 = vld [vmem:[#allocation13 + $0x208] sm:$0xff] }
 0x1fc   :  { %4292 = vmatpush1.bf16.msra.mxu0 %v5815_v24  ;;  %4252 = vmatprep.subr.bf16.mxu1 %v5680_v25  ;;  %v5760_v24 = vcombine.high %v564_v58, %v568_v18  ;;  %v5888_v25 = vcombine.high %v692_v60, %v696_v63  ;;  %v772_v63 = vld [vmem:[#allocation13 + $0x9c8] sm:$0xff] }
 0x1fd   :  { %4293 = vmatprep.subr.bf16.mxu0 %v5808_v26  ;;  %v556_v26 = vld [vmem:[#allocation13 + $0x308] sm:$0xff] }
 0x1fe   :  { %v5752_v55 = vcombine.high %v556_v26, %v560_v45 }
 0x1ff   :  { %4253 = vmatpush1.bf16.msra.mxu1 %v5679_v47  ;;  %v688_v47 = vld [vmem:[#allocation13 + $0x728] sm:$0xff] }
 0x200   :  { %4294 = vmatpush1.bf16.msra.mxu0 %v5807_v31  ;;  %4254 = vmatprep.subr.bf16.mxu1 %v5672_v32  ;;  %v5759_v31 = vcombine.low %v564_v58, %v568_v18  ;;  %v5880_v30 = vcombine.high %v684_v28, %v688_v47  ;;  %v5879_v42 = vcombine.low %v684_v28, %v688_v47  ;;  %v768_v28 = vld [vmem:[#allocation13 + $0x9a8] sm:$0xff] }
 0x201   :  { %4295 = vmatprep.subr.bf16.mxu0 %v5800_v33 }
 0x203   :  { %4255 = vmatpush1.bf16.msra.mxu1 %v5671_v35  ;;  %v552_v35 = vld [vmem:[#allocation13 + $0x2e8] sm:$0xff] }
 0x204   :  { %4296 = vmatpush1.bf16.msra.mxu0 %v5799_v37  ;;  %4256 = vmatprep.subr.bf16.mxu1 %v5664_v38  ;;  %v676_v37 = vld [vmem:[#allocation13 + $0x6c8] sm:$0xff]  ;;  %v5744_v44 = vcombine.high %v548_v57, %v552_v35 }
 0x205   :  { %4297 = vmatprep.subr.bf16.mxu0 %v5792_v41  ;;  %v680_v38 = vld [vmem:[#allocation13 + $0x6e8] sm:$0xff]  ;;  %v5751_v41 = vcombine.low %v556_v26, %v560_v45 }
 0x206   :  { %v5872_v49 = vcombine.high %v676_v37, %v680_v38  ;;  %v5871_v62 = vcombine.low %v676_v37, %v680_v38  ;;  %v884_v38 = vld [vmem:[#allocation13 + $0xd48] sm:$0xff] }
 0x207   :  { %4257 = vmatpush1.bf16.msra.mxu1 %v5663_v51  ;;  %v544_v51 = vld [vmem:[#allocation13 + $0x2a8] sm:$0xff] }
 0x208   :  { %4298 = vmatpush1.bf16.msra.mxu0 %v5791_v52  ;;  %4258 = vmatprep.subr.bf16.mxu1 %v5656_v53  ;;  %v668_v52 = vld [vmem:[#allocation13 + $0x688] sm:$0xff]  ;;  %v5736_v1 = vcombine.high %v540_v50, %v544_v51 }
 0x209   :  { %4299 = vmatprep.subr.bf16.mxu0 %v5784_v54  ;;  %v672_v53 = vld [vmem:[#allocation13 + $0x6a8] sm:$0xff]  ;;  %v5743_v54 = vcombine.low %v548_v57, %v552_v35 }
 0x20a   :  { %v5864_v5 = vcombine.high %v668_v52, %v672_v53  ;;  %v5863_v11 = vcombine.low %v668_v52, %v672_v53  ;;  %v748_v53 = vld [vmem:[#allocation13 + $0x908] sm:$0xff] }
 0x20b   :  { %4259 = vmatpush1.bf16.msra.mxu1 %v5655_v8  ;;  %v536_v8 = vld [vmem:[#allocation13 + $0x268] sm:$0xff] }
 0x20c   :  { %4300 = vmatpush1.bf16.msra.mxu0 %v5783_v9  ;;  %4260 = vmatprep.subr.bf16.mxu1 %v5776_v10  ;;  %v660_v9 = vld [vmem:[#allocation13 + $0x648] sm:$0xff]  ;;  %v5728_v2 = vcombine.high %v532_v7, %v536_v8 }
 0x20d   :  { %4301 = vmatprep.subr.bf16.mxu0 %v5904_v16  ;;  %v664_v10 = vld [vmem:[#allocation13 + $0x668] sm:$0xff]  ;;  %v5735_v16 = vcombine.low %v540_v50, %v544_v51 }
 0x20e   :  { %v6725_v59 = vpop.f32.mrf.mxu1  ;;  %v6727_v19 = vpop.f32.mrf.mxu0  ;;  %v5856_v12 = vcombine.high %v660_v9, %v664_v10  ;;  %v5855_v58 = vcombine.low %v660_v9, %v664_v10 }
 0x20f   :  { %4261 = vmatpush2.bf16.msra.mxu1 %v5775_v4  ;;  %v528_v4 = vld [vmem:[#allocation13 + $0x228] sm:$0xff] }
 0x210   :  { %4302 = vmatpush2.bf16.msra.mxu0 %v5903_v14  ;;  %v6729_v21 = vpop.f32.mrf.mxu1  ;;  %v6731_v22 = vpop.f32.mrf.mxu0  ;;  %4262 = vmatprep.subr.bf16.mxu1 %v5768_v15  ;;  %v652_v14 = vld [vmem:[#allocation13 + $0x608] sm:$0xff]  ;;  %v5720_v18 = vcombine.high %v524_v13, %v528_v4 }
 0x211   :  { %4303 = vmatprep.subr.bf16.mxu0 %v5896_v17  ;;  %v656_v15 = vld [vmem:[#allocation13 + $0x628] sm:$0xff]  ;;  %v5727_v17 = vcombine.low %v532_v7, %v536_v8 }
 0x212   :  { %v1394_v27 = vpop.f32.mrf.mxu1  ;;  %v1435_v46 = vpop.f32.mrf.mxu0  ;;  %v5848_v60 = vcombine.high %v652_v14, %v656_v15  ;;  %v5847_v26 = vcombine.low %v652_v14, %v656_v15  ;;  %v880_v7 = vld [vmem:[#allocation13 + $0xd28] sm:$0xff] }
 0x213   :  { %4263 = vmatpush2.bf16.msra.mxu1 %v5767_v20  ;;  %v776_v20 = vld [vmem:[#allocation13 + $0x9e8] sm:$0xff] }
 0x214   :  { %4304 = vmatpush2.bf16.msra.mxu0 %v5895_v23  ;;  %v1395_v32 = vpop.f32.mrf.mxu1  ;;  %v1436_v33 = vpop.f32.mrf.mxu0  ;;  %4264 = vmatprep.subr.bf16.mxu1 %v5760_v24  ;;  %v900_v23 = vld [vmem:[#allocation13 + $0xdc8] sm:$0xff]  ;;  %v5968_v45 = vcombine.high %v772_v63, %v776_v20  ;;  %v5967_v47 = vcombine.low %v772_v63, %v776_v20 }
 0x215   :  { %4305 = vmatprep.subr.bf16.mxu0 %v5888_v25  ;;  %v904_v24 = vld [vmem:[#allocation13 + $0xde8] sm:$0xff]  ;;  %v5719_v25 = vcombine.low %v524_v13, %v528_v4 }
 0x216   :  { %v6096_v27 = vcombine.high %v900_v23, %v904_v24  ;;  %v764_v46 = vld [vmem:[#allocation13 + $0x988] sm:$0xff]  ;;  %v6095_v33 = vcombine.low %v900_v23, %v904_v24 }
 0x217   :  { %4265 = vmatpush2.bf16.msra.mxu1 %v5759_v31  ;;  %v892_v31 = vld [vmem:[#allocation13 + $0xd88] sm:$0xff] }
 0x218   :  { %4306 = vmatpush2.bf16.msra.mxu0 %v5887_v34  ;;  %4266 = vmatprep.subr.bf16.mxu1 %v5752_v55  ;;  %v896_v32 = vld [vmem:[#allocation13 + $0xda8] sm:$0xff]  ;;  %v5960_v34 = vcombine.high %v764_v46, %v768_v28 }
 0x219   :  { %4307 = vmatprep.subr.bf16.mxu0 %v5880_v30  ;;  %v756_v55 = vld [vmem:[#allocation13 + $0x948] sm:$0xff]  ;;  %v6088_v37 = vcombine.high %v892_v31, %v896_v32  ;;  %v6087_v50 = vcombine.low %v892_v31, %v896_v32 }
 0x21a   :  { %v760_v30 = vld [vmem:[#allocation13 + $0x968] sm:$0xff] }
 0x21b   :  { %4267 = vmatpush2.bf16.msra.mxu1 %v5751_v41  ;;  %v888_v41 = vld [vmem:[#allocation13 + $0xd68] sm:$0xff]  ;;  %v5952_v51 = vcombine.high %v756_v55, %v760_v30  ;;  %v5951_v8 = vcombine.low %v756_v55, %v760_v30 }
 0x21c   :  { %4308 = vmatpush2.bf16.msra.mxu0 %v5879_v42  ;;  %4268 = vmatprep.subr.bf16.mxu1 %v5744_v44  ;;  %v5959_v42 = vcombine.low %v764_v46, %v768_v28  ;;  %v6080_v52 = vcombine.high %v884_v38, %v888_v41  ;;  %v744_v13 = vld [vmem:[#allocation13 + $0x8e8] sm:$0xff] }
 0x21d   :  { %4309 = vmatprep.subr.bf16.mxu0 %v5872_v49  ;;  %v868_v4 = vld [vmem:[#allocation13 + $0xcc8] sm:$0xff] }
 0x21e   :  { %v872_v14 = vld [vmem:[#allocation13 + $0xce8] sm:$0xff] }
 0x21f   :  { %4269 = vmatpush2.bf16.msra.mxu1 %v5743_v54  ;;  %v752_v54 = vld [vmem:[#allocation13 + $0x928] sm:$0xff] }
 0x220   :  { %4310 = vmatpush2.bf16.msra.mxu0 %v5871_v62  ;;  %4270 = vmatprep.subr.bf16.mxu1 %v5736_v1  ;;  %v5943_v15 = vcombine.low %v748_v53, %v752_v54  ;;  %v736_v63 = vld [vmem:[#allocation13 + $0x8a8] sm:$0xff] }
 0x221   :  { %4311 = vmatprep.subr.bf16.mxu0 %v5864_v5  ;;  %v876_v5 = vld [vmem:[#allocation13 + $0xd08] sm:$0xff] }
 0x222   :  { %v860_v20 = vld [vmem:[#allocation13 + $0xc88] sm:$0xff] }
 0x223   :  { %4271 = vmatpush2.bf16.msra.mxu1 %v5735_v16  ;;  %v6079_v16 = vcombine.low %v884_v38, %v888_v41  ;;  %v864_v23 = vld [vmem:[#allocation13 + $0xca8] sm:$0xff] }
 0x224   :  { %4312 = vmatpush2.bf16.msra.mxu0 %v5863_v11  ;;  %4272 = vmatprep.subr.bf16.mxu1 %v5728_v2  ;;  %v5944_v11 = vcombine.high %v748_v53, %v752_v54  ;;  %v6072_v2 = vcombine.high %v876_v5, %v880_v7  ;;  %v728_v46 = vld [vmem:[#allocation13 + $0x868] sm:$0xff]  ;;  %v6055_v32 = vcombine.low %v860_v20, %v864_v23 }
 0x225   :  { %4313 = vmatprep.subr.bf16.mxu0 %v5856_v12  ;;  %v740_v12 = vld [vmem:[#allocation13 + $0x8c8] sm:$0xff] }
 0x226   :  { %v5935_v24 = vcombine.low %v740_v12, %v744_v13  ;;  %v852_v28 = vld [vmem:[#allocation13 + $0xc48] sm:$0xff] }
 0x227   :  { %4273 = vmatpush2.bf16.msra.mxu1 %v5727_v17  ;;  %v6071_v17 = vcombine.low %v876_v5, %v880_v7  ;;  %v716_v55 = vld [vmem:[#allocation13 + $0x808] sm:$0xff] }
 0x228   :  { %4314 = vmatpush2.bf16.msra.mxu0 %v5855_v58  ;;  %4274 = vmatprep.subr.bf16.mxu1 %v5720_v18  ;;  %v5936_v58 = vcombine.high %v740_v12, %v744_v13  ;;  %v6064_v18 = vcombine.high %v868_v4, %v872_v14  ;;  %v720_v30 = vld [vmem:[#allocation13 + $0x828] sm:$0xff] }
 0x229   :  { %4315 = vmatprep.subr.bf16.mxu0 %v5848_v60  ;;  %v732_v60 = vld [vmem:[#allocation13 + $0x888] sm:$0xff] }
 0x22a   :  { %v5927_v31 = vcombine.low %v732_v60, %v736_v63  ;;  %v848_v38 = vld [vmem:[#allocation13 + $0xc28] sm:$0xff] }
 0x22b   :  { %4275 = vmatpush2.bf16.msra.mxu1 %v5719_v25  ;;  %v6063_v25 = vcombine.low %v868_v4, %v872_v14  ;;  %v840_v53 = vld [vmem:[#allocation13 + $0xbe8] sm:$0xff] }
 0x22c   :  { %4316 = vmatpush2.bf16.msra.mxu0 %v5847_v26  ;;  %4326 = vmatprep.subr.bf16.mxu1 %v5968_v45  ;;  %v5928_v26 = vcombine.high %v732_v60, %v736_v63  ;;  %v6056_v45 = vcombine.high %v860_v20, %v864_v23  ;;  %v964_v54 = vld [vmem:[#allocation13 + $0xfc8] sm:$0xff] }
 0x22d   :  { %4367 = vmatprep.subr.bf16.mxu0 %v6096_v27  ;;  %v724_v27 = vld [vmem:[#allocation13 + $0x848] sm:$0xff] }
 0x22e   :  { %v6733_v57 = vpop.f32.mrf.mxu1  ;;  %v6735_v35 = vpop.f32.mrf.mxu0  ;;  %4277 = vmatmul.mubr.bf16.vlgmr.msra.gmra.mxu1 %v6699_v39  ;;  %v5919_v41 = vcombine.low %v724_v27, %v728_v46  ;;  %v820_v14 = vld [vmem:[#allocation13 + $0xb48] sm:$0xff] }
 0x22f   :  { %4318 = vmatmul.mubr.bf16.vlgmr.msra.gmra.mxu0 %v6703_v43  ;;  %4327 = vmatpush1.bf16.msra.mxu1 %v5967_v47  ;;  %v856_v47 = vld [vmem:[#allocation13 + $0xc68] sm:$0xff] }
 0x230   :  { %4358 = vmatprep.mubr.bf16.mxu1 %v6705_v48  ;;  %4368 = vmatpush1.bf16.msra.mxu0 %v6095_v33  ;;  %v6740_v44 = vpop.f32.mrf.mxu1  ;;  %v6742_v49 = vpop.f32.mrf.mxu0  ;;  %v5920_v33 = vcombine.high %v724_v27, %v728_v46  ;;  %v812_v23 = vld [vmem:[#allocation13 + $0xb08] sm:$0xff] }
 0x231   :  { %4399 = vmatprep.mubr.bf16.mxu0 %v6709_v29  ;;  %4328 = vmatprep.subr.bf16.mxu1 %v5960_v34  ;;  %v6048_v34 = vcombine.high %v852_v28, %v856_v47 }
 0x232   :  { %v1476_v62 = vpop.f32.mrf.mxu1  ;;  %v1517_v1 = vpop.f32.mrf.mxu0  ;;  %4369 = vmatprep.subr.bf16.mxu0 %v6088_v37  ;;  %v844_v37 = vld [vmem:[#allocation13 + $0xc08] sm:$0xff] }
 0x233   :  { %4329 = vmatpush1.bf16.msra.mxu1 %v5959_v42  ;;  %v6047_v42 = vcombine.low %v852_v28, %v856_v47  ;;  %v968_v62 = vld [vmem:[#allocation13 + $0xfe8] sm:$0xff]  ;;  %v5911_v1 = vcombine.low %v716_v55, %v720_v30  ;;  %v6039_v5 = vcombine.low %v844_v37, %v848_v38 }
 0x234   :  { %4370 = vmatpush1.bf16.msra.mxu0 %v6087_v50  ;;  %v1477_v9 = vpop.f32.mrf.mxu1  ;;  %v1518_v10 = vpop.f32.mrf.mxu0  ;;  %4330 = vmatprep.subr.bf16.mxu1 %v5952_v51  ;;  %v5912_v50 = vcombine.high %v716_v55, %v720_v30  ;;  %v6040_v51 = vcombine.high %v844_v37, %v848_v38  ;;  %v6159_v12 = vcombine.low %v964_v54, %v968_v62  ;;  %v804_v47 = vld [vmem:[#allocation13 + $0xac8] sm:$0xff] }
 0x235   :  { %4371 = vmatprep.subr.bf16.mxu0 %v6080_v52  ;;  %v836_v52 = vld [vmem:[#allocation13 + $0xbc8] sm:$0xff] }
 0x236   :  { %v6032_v7 = vcombine.high %v836_v52, %v840_v53  ;;  %v828_v9 = vld [vmem:[#allocation13 + $0xb88] sm:$0xff] }
 0x237   :  { %4331 = vmatpush1.bf16.msra.mxu1 %v5951_v8  ;;  %v6160_v8 = vcombine.high %v964_v54, %v968_v62  ;;  %v832_v10 = vld [vmem:[#allocation13 + $0xba8] sm:$0xff] }
 0x238   :  { %4372 = vmatpush1.bf16.msra.mxu0 %v6079_v16  ;;  %4332 = vmatprep.subr.bf16.mxu1 %v5944_v11  ;;  %v956_v16 = vld [vmem:[#allocation13 + $0xf88] sm:$0xff]  ;;  %v6024_v13 = vcombine.high %v828_v9, %v832_v10 }
 0x239   :  { %4373 = vmatprep.subr.bf16.mxu0 %v6072_v2  ;;  %v960_v11 = vld [vmem:[#allocation13 + $0xfa8] sm:$0xff]  ;;  %v6031_v2 = vcombine.low %v836_v52, %v840_v53 }
 0x23a   :  { %v6152_v4 = vcombine.high %v956_v16, %v960_v11  ;;  %v6151_v60 = vcombine.low %v956_v16, %v960_v11  ;;  %v796_v38 = vld [vmem:[#allocation13 + $0xa88] sm:$0xff] }
 0x23b   :  { %4333 = vmatpush1.bf16.msra.mxu1 %v5943_v15  ;;  %v824_v15 = vld [vmem:[#allocation13 + $0xb68] sm:$0xff] }
 0x23c   :  { %4374 = vmatpush1.bf16.msra.mxu0 %v6071_v17  ;;  %4334 = vmatprep.subr.bf16.mxu1 %v5936_v58  ;;  %v948_v17 = vld [vmem:[#allocation13 + $0xf48] sm:$0xff]  ;;  %v6016_v63 = vcombine.high %v820_v14, %v824_v15 }
 0x23d   :  { %4375 = vmatprep.subr.bf16.mxu0 %v6064_v18  ;;  %v952_v58 = vld [vmem:[#allocation13 + $0xf68] sm:$0xff]  ;;  %v6023_v18 = vcombine.low %v828_v9, %v832_v10 }
 0x23e   :  { %v6144_v20 = vcombine.high %v948_v17, %v952_v58  ;;  %v6143_v27 = vcombine.low %v948_v17, %v952_v58  ;;  %v788_v62 = vld [vmem:[#allocation13 + $0xa48] sm:$0xff]  ;;  %v517_v58 = vld [vmem:[#allocation13 + $0x1d0] sm:$0xff] }
 0x23f   :  { %4335 = vmatpush1.bf16.msra.mxu1 %v5935_v24  ;;  %v816_v24 = vld [vmem:[#allocation13 + $0xb28] sm:$0xff] }
 0x240   :  { %4376 = vmatpush1.bf16.msra.mxu0 %v6063_v25  ;;  %4336 = vmatprep.subr.bf16.mxu1 %v5928_v26  ;;  %v940_v25 = vld [vmem:[#allocation13 + $0xf08] sm:$0xff]  ;;  %v6008_v46 = vcombine.high %v812_v23, %v816_v24 }
 0x241   :  { %4377 = vmatprep.subr.bf16.mxu0 %v6056_v45  ;;  %v944_v26 = vld [vmem:[#allocation13 + $0xf28] sm:$0xff]  ;;  %v6015_v45 = vcombine.low %v820_v14, %v824_v15 }
 0x242   :  { %v6136_v28 = vcombine.high %v940_v25, %v944_v26  ;;  %v6135_v55 = vcombine.low %v940_v25, %v944_v26  ;;  %v780_v11 = vld [vmem:[#allocation13 + $0xa08] sm:$0xff]  ;;  %v509_v26 = vld [vmem:[#allocation13 + $0x190] sm:$0xff] }
 0x243   :  { %4337 = vmatpush1.bf16.msra.mxu1 %v5927_v31  ;;  %v808_v31 = vld [vmem:[#allocation13 + $0xae8] sm:$0xff] }
 0x244   :  { %4378 = vmatpush1.bf16.msra.mxu0 %v6055_v32  ;;  %4338 = vmatprep.subr.bf16.mxu1 %v5920_v33  ;;  %v932_v32 = vld [vmem:[#allocation13 + $0xec8] sm:$0xff]  ;;  %v6000_v30 = vcombine.high %v804_v47, %v808_v31 }
 0x245   :  { %4379 = vmatprep.subr.bf16.mxu0 %v6048_v34  ;;  %v936_v33 = vld [vmem:[#allocation13 + $0xee8] sm:$0xff]  ;;  %v6007_v34 = vcombine.low %v812_v23, %v816_v24 }
 0x246   :  { %v6128_v37 = vcombine.high %v932_v32, %v936_v33  ;;  %v6127_v52 = vcombine.low %v932_v32, %v936_v33  ;;  %v501_v32 = vld [vmem:[#allocation13 + $0x150] sm:$0xff] }
 0x247   :  { %4339 = vmatpush1.bf16.msra.mxu1 %v5919_v41  ;;  %v800_v41 = vld [vmem:[#allocation13 + $0xaa8] sm:$0xff]  ;;  %v505_v33 = vld [vmem:[#allocation13 + $0x170] sm:$0xff] }
 0x248   :  { %4380 = vmatpush1.bf16.msra.mxu0 %v6047_v42  ;;  %4340 = vmatprep.subr.bf16.mxu1 %v5912_v50  ;;  %v924_v42 = vld [vmem:[#allocation13 + $0xe88] sm:$0xff]  ;;  %v5992_v53 = vcombine.high %v796_v38, %v800_v41 }
 0x249   :  { %4381 = vmatprep.subr.bf16.mxu0 %v6040_v51  ;;  %v928_v50 = vld [vmem:[#allocation13 + $0xea8] sm:$0xff]  ;;  %v5999_v51 = vcombine.low %v804_v47, %v808_v31 }
 0x24a   :  { %v6120_v54 = vcombine.high %v924_v42, %v928_v50  ;;  %v6119_v9 = vcombine.low %v924_v42, %v928_v50 }
 0x24b   :  { %4341 = vmatpush1.bf16.msra.mxu1 %v5911_v1  ;;  %v792_v1 = vld [vmem:[#allocation13 + $0xa68] sm:$0xff] }
 0x24c   :  { %4382 = vmatpush1.bf16.msra.mxu0 %v6039_v5  ;;  %4342 = vmatprep.subr.bf16.mxu1 %v6032_v7  ;;  %v916_v5 = vld [vmem:[#allocation13 + $0xe48] sm:$0xff]  ;;  %v5984_v10 = vcombine.high %v788_v62, %v792_v1 }
 0x24d   :  { %4383 = vmatprep.subr.bf16.mxu0 %v6160_v8  ;;  %v920_v7 = vld [vmem:[#allocation13 + $0xe68] sm:$0xff]  ;;  %v5991_v8 = vcombine.low %v796_v38, %v800_v41  ;;  %v633_v38 = vld [vmem:[#allocation13 + $0x570] sm:$0xff] }
 0x24e   :  { %v6112_v16 = vcombine.high %v916_v5, %v920_v7  ;;  %v6111_v14 = vcombine.low %v916_v5, %v920_v7  ;;  %v497_v5 = vld [vmem:[#allocation13 + $0x130] sm:$0xff] }
 0x24f   :  { %4343 = vmatpush2.bf16.msra.mxu1 %v6031_v2  ;;  %v784_v2 = vld [vmem:[#allocation13 + $0xa28] sm:$0xff] }
 0x250   :  { %4384 = vmatpush2.bf16.msra.mxu0 %v6159_v12  ;;  %4344 = vmatprep.subr.bf16.mxu1 %v6024_v13  ;;  %v908_v12 = vld [vmem:[#allocation13 + $0xe08] sm:$0xff]  ;;  %v5976_v15 = vcombine.high %v780_v11, %v784_v2 }
 0x251   :  { %4385 = vmatprep.subr.bf16.mxu0 %v6152_v4  ;;  %v912_v13 = vld [vmem:[#allocation13 + $0xe28] sm:$0xff]  ;;  %v5983_v4 = vcombine.low %v788_v62, %v792_v1 }
 0x252   :  { %v6104_v17 = vcombine.high %v908_v12, %v912_v13  ;;  %v6103_v23 = vcombine.low %v908_v12, %v912_v13 }
 0x253   :  { %4345 = vmatpush2.bf16.msra.mxu1 %v6023_v18  ;;  %v521_v18 = vld [vmem:[#allocation13 + $0x1f0] sm:$0xff] }
 0x254   :  { %4386 = vmatpush2.bf16.msra.mxu0 %v6151_v60  ;;  %4346 = vmatprep.subr.bf16.mxu1 %v6016_v63  ;;  %v645_v60 = vld [vmem:[#allocation13 + $0x5d0] sm:$0xff]  ;;  %v5714_v24 = vcombine.high %v517_v58, %v521_v18 }
 0x255   :  { %4387 = vmatprep.subr.bf16.mxu0 %v6144_v20  ;;  %v649_v63 = vld [vmem:[#allocation13 + $0x5f0] sm:$0xff]  ;;  %v5975_v20 = vcombine.low %v780_v11, %v784_v2  ;;  %v5697_v11 = vcombine.low %v501_v32, %v505_v33 }
 0x256   :  { %v5842_v25 = vcombine.high %v645_v60, %v649_v63  ;;  %v5841_v47 = vcombine.low %v645_v60, %v649_v63 }
 0x257   :  { %4347 = vmatpush2.bf16.msra.mxu1 %v6015_v45  ;;  %v513_v45 = vld [vmem:[#allocation13 + $0x1b0] sm:$0xff] }
 0x258   :  { %4388 = vmatpush2.bf16.msra.mxu0 %v6143_v27  ;;  %4348 = vmatprep.subr.bf16.mxu1 %v6008_v46  ;;  %v5713_v27 = vcombine.low %v517_v58, %v521_v18  ;;  %v637_v46 = vld [vmem:[#allocation13 + $0x590] sm:$0xff]  ;;  %v5706_v31 = vcombine.high %v509_v26, %v513_v45  ;;  %v5705_v42 = vcombine.low %v509_v26, %v513_v45 }
 0x259   :  { %4389 = vmatprep.subr.bf16.mxu0 %v6136_v28  ;;  %v641_v28 = vld [vmem:[#allocation13 + $0x5b0] sm:$0xff] }
 0x25a   :  { %v617_v58 = vld [vmem:[#allocation13 + $0x4f0] sm:$0xff] }
 0x25b   :  { %4349 = vmatpush2.bf16.msra.mxu1 %v6007_v34  ;;  %v609_v26 = vld [vmem:[#allocation13 + $0x4b0] sm:$0xff] }
 0x25c   :  { %4390 = vmatpush2.bf16.msra.mxu0 %v6135_v55  ;;  %4350 = vmatprep.subr.bf16.mxu1 %v6000_v30  ;;  %v5834_v30 = vcombine.high %v637_v46, %v641_v28 }
 0x25d   :  { %4391 = vmatprep.subr.bf16.mxu0 %v6128_v37  ;;  %v629_v37 = vld [vmem:[#allocation13 + $0x550] sm:$0xff] }
 0x25e   :  { %v5826_v1 = vcombine.high %v629_v37, %v633_v38  ;;  %v5825_v13 = vcombine.low %v629_v37, %v633_v38  ;;  %v461_v38 = vld [vmem:[#allocation13 + $0x10] sm:$0xff] }
 0x25f   :  { %4351 = vmatpush2.bf16.msra.mxu1 %v5999_v51 }
 0x260   :  { %4392 = vmatpush2.bf16.msra.mxu0 %v6127_v52  ;;  %4352 = vmatprep.subr.bf16.mxu1 %v5992_v53  ;;  %v5833_v52 = vcombine.low %v637_v46, %v641_v28  ;;  %v5698_v53 = vcombine.high %v501_v32, %v505_v33  ;;  %v597_v32 = vld [vmem:[#allocation13 + $0x450] sm:$0xff] }
 0x261   :  { %4393 = vmatprep.subr.bf16.mxu0 %v6120_v54  ;;  %v601_v33 = vld [vmem:[#allocation13 + $0x470] sm:$0xff] }
 0x262   :  { %v5794_v37 = vcombine.high %v597_v32, %v601_v33 }
 0x263   :  { %4353 = vmatpush2.bf16.msra.mxu1 %v5991_v8 }
 0x264   :  { %4394 = vmatpush2.bf16.msra.mxu0 %v6119_v9  ;;  %4354 = vmatprep.subr.bf16.mxu1 %v5984_v10  ;;  %v621_v9 = vld [vmem:[#allocation13 + $0x510] sm:$0xff] }
 0x265   :  { %4395 = vmatprep.subr.bf16.mxu0 %v6112_v16  ;;  %v625_v10 = vld [vmem:[#allocation13 + $0x530] sm:$0xff] }
 0x266   :  { %v5817_v60 = vcombine.low %v621_v9, %v625_v10 }
 0x267   :  { %4355 = vmatpush2.bf16.msra.mxu1 %v5983_v4 }
 0x268   :  { %4396 = vmatpush2.bf16.msra.mxu0 %v6111_v14  ;;  %4356 = vmatprep.subr.bf16.mxu1 %v5976_v15  ;;  %v485_v14 = vld [vmem:[#allocation13 + $0xd0] sm:$0xff] }
 0x269   :  { %4397 = vmatprep.subr.bf16.mxu0 %v6104_v17  ;;  %v489_v15 = vld [vmem:[#allocation13 + $0xf0] sm:$0xff] }
 0x26a   :  { %v613_v17 = vld [vmem:[#allocation13 + $0x4d0] sm:$0xff]  ;;  %v5682_v63 = vcombine.high %v485_v14, %v489_v15  ;;  %v5681_v45 = vcombine.low %v485_v14, %v489_v15 }
 0x26b   :  { %4357 = vmatpush2.bf16.msra.mxu1 %v5975_v20  ;;  %v5810_v20 = vcombine.high %v613_v17, %v617_v58 }
 0x26c   :  { %4398 = vmatpush2.bf16.msra.mxu0 %v6103_v23  ;;  %4408 = vmatprep.subr.bf16.mxu1 %v5714_v24  ;;  %v477_v23 = vld [vmem:[#allocation13 + $0x90] sm:$0xff] }
 0x26d   :  { %4449 = vmatprep.subr.bf16.mxu0 %v5842_v25  ;;  %v481_v24 = vld [vmem:[#allocation13 + $0xb0] sm:$0xff] }
 0x26e   :  { %v4114_v34 = vpop.f32.mrf.mxu1  ;;  %v4155_v55 = vpop.f32.mrf.mxu0  ;;  %4359 = vmatmul.mubr.bf16.vlgmr.msra.gmra.mxu1 %v6715_v3  ;;  %v605_v25 = vld [vmem:[#allocation13 + $0x490] sm:$0xff]  ;;  %v5674_v46 = vcombine.high %v477_v23, %v481_v24 }
 0x26f   :  { %v4115_v41 = vadd.f32 %v4114_v34, %v6725_v59  ;;  %4400 = vmatmul.mubr.bf16.vlgmr.msra.gmra.mxu0 %v6719_v6  ;;  %4409 = vmatpush1.bf16.msra.mxu1 %v5713_v27  ;;  %v493_v59 = vld [vmem:[#allocation13 + $0x110] sm:$0xff]  ;;  %v5809_v27 = vcombine.low %v613_v17, %v617_v58  ;;  %v5802_v28 = vcombine.high %v605_v25, %v609_v26 }
 0x270   :  { %4440 = vmatprep.mubr.bf16.mxu1 %v6677_v56  ;;  %4450 = vmatpush1.bf16.msra.mxu0 %v5841_v47  ;;  %v4116_v50 = vpop.f32.mrf.mxu1  ;;  %v4157_v51 = vpop.f32.mrf.mxu0  ;;  %v5690_v4 = vcombine.high %v493_v59, %v497_v5  ;;  %v5689_v18 = vcombine.low %v493_v59, %v497_v5  ;;  %v469_v47 = vld [vmem:[#allocation13 + $0x50] sm:$0xff]  ;;  %v5673_v34 = vcombine.low %v477_v23, %v481_v24 }
 0x271   :  { %v6749_v54 = vadd.f32 %v4155_v55, %v4115_v41  ;;  %4481 = vmatprep.mubr.bf16.mxu0 %v6679_v61  ;;  %v4117_v62 = vadd.f32 %v4116_v50, %v6729_v21  ;;  %4410 = vmatprep.subr.bf16.mxu1 %v5706_v31  ;;  %v5818_v21 = vcombine.high %v621_v9, %v625_v10  ;;  %v473_v31 = vld [vmem:[#allocation13 + $0x70] sm:$0xff] }
 0x272   :  { %v4118_v7 = vpop.f32.mrf.mxu1  ;;  %v4159_v8 = vpop.f32.mrf.mxu0  ;;  %4451 = vmatprep.subr.bf16.mxu0 %v5834_v30  ;;  %v5801_v55 = vcombine.low %v605_v25, %v609_v26  ;;  %v5666_v30 = vcombine.high %v469_v47, %v473_v31  ;;  %v465_v41 = vld [vmem:[#allocation13 + $0x30] sm:$0xff] }
 0x273   :  { %v6753_v16 = vadd.f32 %v4157_v51, %v4117_v62  ;;  %4411 = vmatpush1.bf16.msra.mxu1 %v5705_v42  ;;  %v589_v42 = vld [vmem:[#allocation13 + $0x410] sm:$0xff]  ;;  %v5665_v51 = vcombine.low %v469_v47, %v473_v31  ;;  %v5657_v8 = vcombine.low %v461_v38, %v465_v41 }
 0x274   :  { %4452 = vmatpush1.bf16.msra.mxu0 %v5833_v52  ;;  %v4119_v2 = vpop.f32.mrf.mxu1  ;;  %v4160_v12 = vpop.f32.mrf.mxu0  ;;  %4412 = vmatprep.subr.bf16.mxu1 %v5698_v53  ;;  %v593_v50 = vld [vmem:[#allocation13 + $0x430] sm:$0xff]  ;;  %v5793_v52 = vcombine.low %v597_v32, %v601_v33  ;;  %v5658_v53 = vcombine.high %v461_v38, %v465_v41 }
 0x275   :  { %4453 = vmatprep.subr.bf16.mxu0 %v5826_v1  ;;  %v5786_v62 = vcombine.high %v589_v42, %v593_v50  ;;  %v581_v1 = vld [vmem:[#allocation13 + $0x3d0] sm:$0xff]  ;;  %v5785_v9 = vcombine.low %v589_v42, %v593_v50 }
 0x276   :  { %v585_v59 = vld [vmem:[#allocation13 + $0x3f0] sm:$0xff] }
 0x277   :  { %4413 = vmatpush1.bf16.msra.mxu1 %v5697_v11  ;;  %v709_v5 = vld [vmem:[#allocation13 + $0x7d0] sm:$0xff]  ;;  %v5778_v10 = vcombine.high %v581_v1, %v585_v59 }
 0x278   :  { %4454 = vmatpush1.bf16.msra.mxu0 %v5825_v13  ;;  %4414 = vmatprep.subr.bf16.mxu1 %v5690_v4  ;;  %v713_v7 = vld [vmem:[#allocation13 + $0x7f0] sm:$0xff] }
 0x279   :  { %4455 = vmatprep.subr.bf16.mxu0 %v5818_v21  ;;  %v5906_v11 = vcombine.high %v709_v5, %v713_v7  ;;  %v573_v2 = vld [vmem:[#allocation13 + $0x390] sm:$0xff]  ;;  %v5777_v21 = vcombine.low %v581_v1, %v585_v59  ;;  %v5905_v14 = vcombine.low %v709_v5, %v713_v7 }
 0x27a   :  { %v577_v12 = vld [vmem:[#allocation13 + $0x3b0] sm:$0xff] }
 0x27b   :  { %4415 = vmatpush1.bf16.msra.mxu1 %v5689_v18  ;;  %v701_v13 = vld [vmem:[#allocation13 + $0x790] sm:$0xff]  ;;  %v5770_v15 = vcombine.high %v573_v2, %v577_v12 }
 0x27c   :  { %4456 = vmatpush1.bf16.msra.mxu0 %v5817_v60  ;;  %4416 = vmatprep.subr.bf16.mxu1 %v5682_v63  ;;  %v705_v4 = vld [vmem:[#allocation13 + $0x7b0] sm:$0xff] }
 0x27d   :  { %4457 = vmatprep.subr.bf16.mxu0 %v5810_v20  ;;  %v5898_v17 = vcombine.high %v701_v13, %v705_v4  ;;  %v565_v58 = vld [vmem:[#allocation13 + $0x350] sm:$0xff]  ;;  %v5769_v20 = vcombine.low %v573_v2, %v577_v12  ;;  %v5897_v23 = vcombine.low %v701_v13, %v705_v4 }
 0x27e   :  { %v569_v18 = vld [vmem:[#allocation13 + $0x370] sm:$0xff] }
 0x27f   :  { %4417 = vmatpush1.bf16.msra.mxu1 %v5681_v45  ;;  %v693_v60 = vld [vmem:[#allocation13 + $0x750] sm:$0xff]  ;;  %v5762_v24 = vcombine.high %v565_v58, %v569_v18 }
 0x280   :  { %4458 = vmatpush1.bf16.msra.mxu0 %v5809_v27  ;;  %4418 = vmatprep.subr.bf16.mxu1 %v5674_v46  ;;  %v697_v63 = vld [vmem:[#allocation13 + $0x770] sm:$0xff] }
 0x281   :  { %4459 = vmatprep.subr.bf16.mxu0 %v5802_v28  ;;  %v5890_v25 = vcombine.high %v693_v60, %v697_v63  ;;  %v557_v26 = vld [vmem:[#allocation13 + $0x310] sm:$0xff]  ;;  %v5761_v28 = vcombine.low %v565_v58, %v569_v18  ;;  %v5889_v47 = vcombine.low %v693_v60, %v697_v63 }
 0x282   :  { %v561_v45 = vld [vmem:[#allocation13 + $0x330] sm:$0xff] }
 0x283   :  { %4419 = vmatpush1.bf16.msra.mxu1 %v5673_v34  ;;  %v685_v27 = vld [vmem:[#allocation13 + $0x710] sm:$0xff]  ;;  %v5754_v31 = vcombine.high %v557_v26, %v561_v45 }
 0x284   :  { %4460 = vmatpush1.bf16.msra.mxu0 %v5801_v55  ;;  %4420 = vmatprep.subr.bf16.mxu1 %v5666_v30  ;;  %v689_v46 = vld [vmem:[#allocation13 + $0x730] sm:$0xff] }
 0x285   :  { %4461 = vmatprep.subr.bf16.mxu0 %v5794_v37  ;;  %v5882_v32 = vcombine.high %v685_v27, %v689_v46  ;;  %v549_v33 = vld [vmem:[#allocation13 + $0x2d0] sm:$0xff]  ;;  %v5753_v37 = vcombine.low %v557_v26, %v561_v45  ;;  %v5881_v38 = vcombine.low %v685_v27, %v689_v46 }
 0x286   :  { %v553_v34 = vld [vmem:[#allocation13 + $0x2f0] sm:$0xff] }
 0x287   :  { %4421 = vmatpush1.bf16.msra.mxu1 %v5665_v51  ;;  %v677_v55 = vld [vmem:[#allocation13 + $0x6d0] sm:$0xff]  ;;  %v5746_v41 = vcombine.high %v549_v33, %v553_v34 }
 0x288   :  { %4462 = vmatpush1.bf16.msra.mxu0 %v5793_v52  ;;  %4422 = vmatprep.subr.bf16.mxu1 %v5658_v53  ;;  %v681_v30 = vld [vmem:[#allocation13 + $0x6f0] sm:$0xff] }
 0x289   :  { %4463 = vmatprep.subr.bf16.mxu0 %v5786_v62  ;;  %v5874_v42 = vcombine.high %v677_v55, %v681_v30  ;;  %v541_v50 = vld [vmem:[#allocation13 + $0x290] sm:$0xff]  ;;  %v5745_v62 = vcombine.low %v549_v33, %v553_v34  ;;  %v5873_v1 = vcombine.low %v677_v55, %v681_v30 }
 0x28a   :  { %v545_v51 = vld [vmem:[#allocation13 + $0x2b0] sm:$0xff] }
 0x28b   :  { %4423 = vmatpush1.bf16.msra.mxu1 %v5657_v8  ;;  %v669_v52 = vld [vmem:[#allocation13 + $0x690] sm:$0xff]  ;;  %v5738_v59 = vcombine.high %v541_v50, %v545_v51 }
 0x28c   :  { %4464 = vmatpush1.bf16.msra.mxu0 %v5785_v9  ;;  %4424 = vmatprep.subr.bf16.mxu1 %v5778_v10  ;;  %v673_v53 = vld [vmem:[#allocation13 + $0x6b0] sm:$0xff] }
 0x28d   :  { %4465 = vmatprep.subr.bf16.mxu0 %v5906_v11  ;;  %v5866_v5 = vcombine.high %v669_v52, %v673_v53  ;;  %v533_v7 = vld [vmem:[#allocation13 + $0x250] sm:$0xff]  ;;  %v5737_v11 = vcombine.low %v541_v50, %v545_v51  ;;  %v5865_v2 = vcombine.low %v669_v52, %v673_v53 }
 0x28e   :  { %v537_v8 = vld [vmem:[#allocation13 + $0x270] sm:$0xff] }
 0x28f   :  { %4425 = vmatpush2.bf16.msra.mxu1 %v5777_v21  ;;  %v661_v9 = vld [vmem:[#allocation13 + $0x650] sm:$0xff]  ;;  %v5730_v12 = vcombine.high %v533_v7, %v537_v8 }
 0x290   :  { %4466 = vmatpush2.bf16.msra.mxu0 %v5905_v14  ;;  %4426 = vmatprep.subr.bf16.mxu1 %v5770_v15  ;;  %v665_v10 = vld [vmem:[#allocation13 + $0x670] sm:$0xff] }
 0x291   :  { %4467 = vmatprep.subr.bf16.mxu0 %v5898_v17  ;;  %v5858_v13 = vcombine.high %v661_v9, %v665_v10  ;;  %v525_v4 = vld [vmem:[#allocation13 + $0x210] sm:$0xff]  ;;  %v5729_v17 = vcombine.low %v533_v7, %v537_v8  ;;  %v5857_v58 = vcombine.low %v661_v9, %v665_v10 }
 0x292   :  { %v529_v21 = vld [vmem:[#allocation13 + $0x230] sm:$0xff] }
 0x293   :  { %4427 = vmatpush2.bf16.msra.mxu1 %v5769_v20  ;;  %v653_v14 = vld [vmem:[#allocation13 + $0x610] sm:$0xff]  ;;  %v5722_v18 = vcombine.high %v525_v4, %v529_v21 }
 0x294   :  { %4468 = vmatpush2.bf16.msra.mxu0 %v5897_v23  ;;  %4428 = vmatprep.subr.bf16.mxu1 %v5762_v24  ;;  %v657_v15 = vld [vmem:[#allocation13 + $0x630] sm:$0xff] }
 0x295   :  { %4469 = vmatprep.subr.bf16.mxu0 %v5890_v25  ;;  %v5850_v60 = vcombine.high %v653_v14, %v657_v15  ;;  %v773_v63 = vld [vmem:[#allocation13 + $0x9d0] sm:$0xff]  ;;  %v5721_v25 = vcombine.low %v525_v4, %v529_v21  ;;  %v5849_v26 = vcombine.low %v653_v14, %v657_v15 }
 0x296   :  { %v777_v20 = vld [vmem:[#allocation13 + $0x9f0] sm:$0xff] }
 0x297   :  { %4429 = vmatpush2.bf16.msra.mxu1 %v5761_v28  ;;  %v901_v23 = vld [vmem:[#allocation13 + $0xdd0] sm:$0xff]  ;;  %v5970_v45 = vcombine.high %v773_v63, %v777_v20 }
 0x298   :  { %4470 = vmatpush2.bf16.msra.mxu0 %v5889_v47  ;;  %4430 = vmatprep.subr.bf16.mxu1 %v5754_v31  ;;  %v905_v24 = vld [vmem:[#allocation13 + $0xdf0] sm:$0xff]  ;;  %v5969_v47 = vcombine.low %v773_v63, %v777_v20 }
 0x299   :  { %4471 = vmatprep.subr.bf16.mxu0 %v5882_v32  ;;  %v6098_v27 = vcombine.high %v901_v23, %v905_v24  ;;  %v765_v46 = vld [vmem:[#allocation13 + $0x990] sm:$0xff]  ;;  %v6097_v33 = vcombine.low %v901_v23, %v905_v24 }
 0x29a   :  { %v769_v28 = vld [vmem:[#allocation13 + $0x9b0] sm:$0xff] }
 0x29b   :  { %4431 = vmatpush2.bf16.msra.mxu1 %v5753_v37  ;;  %v893_v31 = vld [vmem:[#allocation13 + $0xd90] sm:$0xff]  ;;  %v5962_v34 = vcombine.high %v765_v46, %v769_v28  ;;  %v5961_v52 = vcombine.low %v765_v46, %v769_v28 }
 0x29c   :  { %4472 = vmatpush2.bf16.msra.mxu0 %v5881_v38  ;;  %4432 = vmatprep.subr.bf16.mxu1 %v5746_v41  ;;  %v897_v32 = vld [vmem:[#allocation13 + $0xdb0] sm:$0xff] }
 0x29d   :  { %4473 = vmatprep.subr.bf16.mxu0 %v5874_v42  ;;  %v757_v55 = vld [vmem:[#allocation13 + $0x950] sm:$0xff]  ;;  %v6090_v38 = vcombine.high %v893_v31, %v897_v32 }
 0x29e   :  { %v761_v30 = vld [vmem:[#allocation13 + $0x970] sm:$0xff] }
 0x29f   :  { %4433 = vmatpush2.bf16.msra.mxu1 %v5745_v62  ;;  %v885_v41 = vld [vmem:[#allocation13 + $0xd50] sm:$0xff]  ;;  %v6089_v62 = vcombine.low %v893_v31, %v897_v32  ;;  %v5953_v4 = vcombine.low %v757_v55, %v761_v30 }
 0x2a0   :  { %4474 = vmatpush2.bf16.msra.mxu0 %v5873_v1  ;;  %4434 = vmatprep.subr.bf16.mxu1 %v5738_v59  ;;  %v889_v42 = vld [vmem:[#allocation13 + $0xd70] sm:$0xff]  ;;  %v5954_v1 = vcombine.high %v757_v55, %v761_v30 }
 0x2a1   :  { %4475 = vmatprep.subr.bf16.mxu0 %v5866_v5  ;;  %v749_v8 = vld [vmem:[#allocation13 + $0x910] sm:$0xff]  ;;  %v6081_v14 = vcombine.low %v885_v41, %v889_v42 }
 0x2a2   :  { %v753_v9 = vld [vmem:[#allocation13 + $0x930] sm:$0xff] }
 0x2a3   :  { %4435 = vmatpush2.bf16.msra.mxu1 %v5737_v11  ;;  %v877_v11 = vld [vmem:[#allocation13 + $0xd10] sm:$0xff]  ;;  %v5946_v15 = vcombine.high %v749_v8, %v753_v9  ;;  %v5945_v20 = vcombine.low %v749_v8, %v753_v9 }
 0x2a4   :  { %4476 = vmatpush2.bf16.msra.mxu0 %v5865_v2  ;;  %4436 = vmatprep.subr.bf16.mxu1 %v5730_v12  ;;  %v881_v2 = vld [vmem:[#allocation13 + $0xd30] sm:$0xff] }
 0x2a5   :  { %4477 = vmatprep.subr.bf16.mxu0 %v5858_v13  ;;  %v873_v63 = vld [vmem:[#allocation13 + $0xcf0] sm:$0xff]  ;;  %v6073_v23 = vcombine.low %v877_v11, %v881_v2 }
 0x2a6   :  { %v865_v46 = vld [vmem:[#allocation13 + $0xcb0] sm:$0xff] }
 0x2a7   :  { %4437 = vmatpush2.bf16.msra.mxu1 %v5729_v17  ;;  %v6074_v17 = vcombine.high %v877_v11, %v881_v2  ;;  %v853_v55 = vld [vmem:[#allocation13 + $0xc50] sm:$0xff] }
 0x2a8   :  { %4478 = vmatpush2.bf16.msra.mxu0 %v5857_v58  ;;  %4438 = vmatprep.subr.bf16.mxu1 %v5722_v18  ;;  %v741_v58 = vld [vmem:[#allocation13 + $0x8d0] sm:$0xff] }
 0x2a9   :  { %4479 = vmatprep.subr.bf16.mxu0 %v5850_v60  ;;  %v745_v18 = vld [vmem:[#allocation13 + $0x8f0] sm:$0xff] }
 0x2aa   :  { %v869_v60 = vld [vmem:[#allocation13 + $0xcd0] sm:$0xff]  ;;  %v5938_v24 = vcombine.high %v741_v58, %v745_v18  ;;  %v5937_v28 = vcombine.low %v741_v58, %v745_v18 }
 0x2ab   :  { %4439 = vmatpush2.bf16.msra.mxu1 %v5721_v25  ;;  %v6066_v25 = vcombine.high %v869_v60, %v873_v63  ;;  %v857_v30 = vld [vmem:[#allocation13 + $0xc70] sm:$0xff] }
 0x2ac   :  { %4480 = vmatpush2.bf16.msra.mxu0 %v5849_v26  ;;  %4490 = vmatprep.subr.bf16.mxu1 %v5970_v45  ;;  %v733_v26 = vld [vmem:[#allocation13 + $0x890] sm:$0xff] }
 0x2ad   :  { %4531 = vmatprep.subr.bf16.mxu0 %v6098_v27  ;;  %v737_v45 = vld [vmem:[#allocation13 + $0x8b0] sm:$0xff] }
 0x2ae   :  { %v4196_v37 = vpop.f32.mrf.mxu1  ;;  %4441 = vmatmul.mubr.bf16.vlgmr.msra.gmra.mxu1 %v6699_v39  ;;  %v861_v27 = vld [vmem:[#allocation13 + $0xc90] sm:$0xff]  ;;  %v5930_v31 = vcombine.high %v733_v26, %v737_v45 }
 0x2af   :  { %v4197_v50 = vadd.f32 %v4196_v37, %v6749_v54  ;;  %v4237_v51 = vpop.f32.mrf.mxu0  ;;  %4482 = vmatmul.mubr.bf16.vlgmr.msra.gmra.mxu0 %v6703_v43  ;;  %4491 = vmatpush1.bf16.msra.mxu1 %v5969_v47  ;;  %v6082_v54 = vcombine.high %v885_v41, %v889_v42  ;;  %v6065_v47 = vcombine.low %v869_v60, %v873_v63  ;;  %v841_v8 = vld [vmem:[#allocation13 + $0xbf0] sm:$0xff] }
 0x2b0   :  { %4522 = vmatprep.mubr.bf16.mxu1 %v6705_v48  ;;  %4532 = vmatpush1.bf16.msra.mxu0 %v6097_v33  ;;  %v4198_v53 = vpop.f32.mrf.mxu1  ;;  %v6058_v32 = vcombine.high %v861_v27, %v865_v46  ;;  %v725_v33 = vld [vmem:[#allocation13 + $0x850] sm:$0xff]  ;;  %v5929_v37 = vcombine.low %v733_v26, %v737_v45  ;;  %v6050_v42 = vcombine.high %v853_v55, %v857_v30 }
 0x2b1   :  { %v6759_v59 = vadd.f32 %v4237_v51, %v4197_v50  ;;  %4563 = vmatprep.mubr.bf16.mxu0 %v6709_v29  ;;  %v4199_v5 = vadd.f32 %v4198_v53, %v6753_v16  ;;  %v4239_v7 = vpop.f32.mrf.mxu0  ;;  %4492 = vmatprep.subr.bf16.mxu1 %v5962_v34  ;;  %v729_v34 = vld [vmem:[#allocation13 + $0x870] sm:$0xff] }
 0x2b2   :  { %v4200_v10 = vpop.f32.mrf.mxu1  ;;  %4533 = vmatprep.subr.bf16.mxu0 %v6090_v38  ;;  %v6057_v38 = vcombine.low %v861_v27, %v865_v46  ;;  %v5922_v41 = vcombine.high %v725_v33, %v729_v34  ;;  %v717_v50 = vld [vmem:[#allocation13 + $0x810] sm:$0xff] }
 0x2b3   :  { %v6763_v12 = vadd.f32 %v4239_v7, %v4199_v5  ;;  %v4241_v13 = vpop.f32.mrf.mxu0  ;;  %4493 = vmatpush1.bf16.msra.mxu1 %v5961_v52  ;;  %v721_v51 = vld [vmem:[#allocation13 + $0x830] sm:$0xff] }
 0x2b4   :  { %4534 = vmatpush1.bf16.msra.mxu0 %v6089_v62  ;;  %v4201_v21 = vpop.f32.mrf.mxu1  ;;  %4494 = vmatprep.subr.bf16.mxu1 %v5954_v1  ;;  %v845_v52 = vld [vmem:[#allocation13 + $0xc10] sm:$0xff]  ;;  %v5921_v62 = vcombine.low %v725_v33, %v729_v34  ;;  %v6049_v1 = vcombine.low %v853_v55, %v857_v30  ;;  %v5914_v5 = vcombine.high %v717_v50, %v721_v51 }
 0x2b5   :  { %v4242_v16 = vpop.f32.mrf.mxu0  ;;  %4535 = vmatprep.subr.bf16.mxu0 %v6082_v54  ;;  %v849_v53 = vld [vmem:[#allocation13 + $0xc30] sm:$0xff]  ;;  %v5913_v11 = vcombine.low %v717_v50, %v721_v51 }
 0x2b6   :  { %v6042_v7 = vcombine.high %v845_v52, %v849_v53  ;;  %v837_v54 = vld [vmem:[#allocation13 + $0xbd0] sm:$0xff]  ;;  %v6041_v2 = vcombine.low %v845_v52, %v849_v53 }
 0x2b7   :  { %4495 = vmatpush1.bf16.msra.mxu1 %v5953_v4  ;;  %v965_v9 = vld [vmem:[#allocation13 + $0xfd0] sm:$0xff]  ;;  %v6034_v13 = vcombine.high %v837_v54, %v841_v8 }
 0x2b8   :  { %4536 = vmatpush1.bf16.msra.mxu0 %v6081_v14  ;;  %4496 = vmatprep.subr.bf16.mxu1 %v5946_v15  ;;  %v969_v10 = vld [vmem:[#allocation13 + $0xff0] sm:$0xff] }
 0x2b9   :  { %4537 = vmatprep.subr.bf16.mxu0 %v6074_v17  ;;  %v6162_v4 = vcombine.high %v965_v9, %v969_v10  ;;  %v829_v21 = vld [vmem:[#allocation13 + $0xb90] sm:$0xff]  ;;  %v6033_v17 = vcombine.low %v837_v54, %v841_v8  ;;  %v6161_v58 = vcombine.low %v965_v9, %v969_v10 }
 0x2ba   :  { %v833_v14 = vld [vmem:[#allocation13 + $0xbb0] sm:$0xff] }
 0x2bb   :  { %4497 = vmatpush1.bf16.msra.mxu1 %v5945_v20  ;;  %v957_v15 = vld [vmem:[#allocation13 + $0xf90] sm:$0xff]  ;;  %v6026_v18 = vcombine.high %v829_v21, %v833_v14 }
 0x2bc   :  { %4538 = vmatpush1.bf16.msra.mxu0 %v6073_v23  ;;  %4498 = vmatprep.subr.bf16.mxu1 %v5938_v24  ;;  %v961_v16 = vld [vmem:[#allocation13 + $0xfb0] sm:$0xff] }
 0x2bd   :  { %4539 = vmatprep.subr.bf16.mxu0 %v6066_v25  ;;  %v6154_v60 = vcombine.high %v957_v15, %v961_v16  ;;  %v821_v63 = vld [vmem:[#allocation13 + $0xb50] sm:$0xff]  ;;  %v6025_v25 = vcombine.low %v829_v21, %v833_v14  ;;  %v6153_v26 = vcombine.low %v957_v15, %v961_v16 }
 0x2be   :  { %v825_v20 = vld [vmem:[#allocation13 + $0xb70] sm:$0xff] }
 0x2bf   :  { %4499 = vmatpush1.bf16.msra.mxu1 %v5937_v28  ;;  %v949_v23 = vld [vmem:[#allocation13 + $0xf50] sm:$0xff]  ;;  %v6018_v45 = vcombine.high %v821_v63, %v825_v20 }
 0x2c0   :  { %4540 = vmatpush1.bf16.msra.mxu0 %v6065_v47  ;;  %4500 = vmatprep.subr.bf16.mxu1 %v5930_v31  ;;  %v953_v24 = vld [vmem:[#allocation13 + $0xf70] sm:$0xff] }
 0x2c1   :  { %4541 = vmatprep.subr.bf16.mxu0 %v6058_v32  ;;  %v6146_v27 = vcombine.high %v949_v23, %v953_v24  ;;  %v813_v46 = vld [vmem:[#allocation13 + $0xb10] sm:$0xff]  ;;  %v6017_v32 = vcombine.low %v821_v63, %v825_v20  ;;  %v6145_v33 = vcombine.low %v949_v23, %v953_v24  ;;  %v518_v24 = vld [vmem:[#allocation13 + $0x1d8] sm:$0xff] }
 0x2c2   :  { %v817_v28 = vld [vmem:[#allocation13 + $0xb30] sm:$0xff] }
 0x2c3   :  { %4501 = vmatpush1.bf16.msra.mxu1 %v5929_v37  ;;  %v941_v47 = vld [vmem:[#allocation13 + $0xf10] sm:$0xff]  ;;  %v6010_v34 = vcombine.high %v813_v46, %v817_v28 }
 0x2c4   :  { %4542 = vmatpush1.bf16.msra.mxu0 %v6057_v38  ;;  %4502 = vmatprep.subr.bf16.mxu1 %v5922_v41  ;;  %v945_v31 = vld [vmem:[#allocation13 + $0xf30] sm:$0xff] }
 0x2c5   :  { %4543 = vmatprep.subr.bf16.mxu0 %v6050_v42  ;;  %v6138_v55 = vcombine.high %v941_v47, %v945_v31  ;;  %v805_v30 = vld [vmem:[#allocation13 + $0xad0] sm:$0xff]  ;;  %v6009_v42 = vcombine.low %v813_v46, %v817_v28  ;;  %v6137_v50 = vcombine.low %v941_v47, %v945_v31  ;;  %v510_v31 = vld [vmem:[#allocation13 + $0x198] sm:$0xff] }
 0x2c6   :  { %v809_v37 = vld [vmem:[#allocation13 + $0xaf0] sm:$0xff] }
 0x2c7   :  { %4503 = vmatpush1.bf16.msra.mxu1 %v5921_v62  ;;  %v933_v38 = vld [vmem:[#allocation13 + $0xed0] sm:$0xff]  ;;  %v6002_v51 = vcombine.high %v805_v30, %v809_v37 }
 0x2c8   :  { %4544 = vmatpush1.bf16.msra.mxu0 %v6049_v1  ;;  %4504 = vmatprep.subr.bf16.mxu1 %v5914_v5  ;;  %v937_v41 = vld [vmem:[#allocation13 + $0xef0] sm:$0xff] }
 0x2c9   :  { %4545 = vmatprep.subr.bf16.mxu0 %v6042_v7  ;;  %v6130_v52 = vcombine.high %v933_v38, %v937_v41  ;;  %v797_v53 = vld [vmem:[#allocation13 + $0xa90] sm:$0xff]  ;;  %v6001_v7 = vcombine.low %v805_v30, %v809_v37  ;;  %v6129_v54 = vcombine.low %v933_v38, %v937_v41  ;;  %v502_v38 = vld [vmem:[#allocation13 + $0x158] sm:$0xff] }
 0x2ca   :  { %v801_v62 = vld [vmem:[#allocation13 + $0xab0] sm:$0xff]  ;;  %v506_v41 = vld [vmem:[#allocation13 + $0x178] sm:$0xff] }
 0x2cb   :  { %4505 = vmatpush1.bf16.msra.mxu1 %v5913_v11  ;;  %v925_v1 = vld [vmem:[#allocation13 + $0xe90] sm:$0xff]  ;;  %v5994_v8 = vcombine.high %v797_v53, %v801_v62 }
 0x2cc   :  { %4546 = vmatpush1.bf16.msra.mxu0 %v6041_v2  ;;  %4506 = vmatprep.subr.bf16.mxu1 %v6034_v13  ;;  %v929_v5 = vld [vmem:[#allocation13 + $0xeb0] sm:$0xff] }
 0x2cd   :  { %4547 = vmatprep.subr.bf16.mxu0 %v6162_v4  ;;  %v6122_v9 = vcombine.high %v925_v1, %v929_v5  ;;  %v789_v10 = vld [vmem:[#allocation13 + $0xa50] sm:$0xff]  ;;  %v5993_v4 = vcombine.low %v797_v53, %v801_v62  ;;  %v6121_v21 = vcombine.low %v925_v1, %v929_v5 }
 0x2ce   :  { %v793_v11 = vld [vmem:[#allocation13 + $0xa70] sm:$0xff] }
 0x2cf   :  { %4507 = vmatpush2.bf16.msra.mxu1 %v6033_v17  ;;  %v917_v2 = vld [vmem:[#allocation13 + $0xe50] sm:$0xff]  ;;  %v5986_v14 = vcombine.high %v789_v10, %v793_v11 }
 0x2d0   :  { %4548 = vmatpush2.bf16.msra.mxu0 %v6161_v58  ;;  %4508 = vmatprep.subr.bf16.mxu1 %v6026_v18  ;;  %v921_v13 = vld [vmem:[#allocation13 + $0xe70] sm:$0xff] }
 0x2d1   :  { %4549 = vmatprep.subr.bf16.mxu0 %v6154_v60  ;;  %v6114_v15 = vcombine.high %v917_v2, %v921_v13  ;;  %v781_v16 = vld [vmem:[#allocation13 + $0xa10] sm:$0xff]  ;;  %v5985_v60 = vcombine.low %v789_v10, %v793_v11  ;;  %v6113_v63 = vcombine.low %v917_v2, %v921_v13  ;;  %v494_v11 = vld [vmem:[#allocation13 + $0x118] sm:$0xff] }
 0x2d2   :  { %v785_v17 = vld [vmem:[#allocation13 + $0xa30] sm:$0xff]  ;;  %v498_v2 = vld [vmem:[#allocation13 + $0x138] sm:$0xff] }
 0x2d3   :  { %4509 = vmatpush2.bf16.msra.mxu1 %v6025_v25  ;;  %v909_v58 = vld [vmem:[#allocation13 + $0xe10] sm:$0xff]  ;;  %v5978_v20 = vcombine.high %v781_v16, %v785_v17  ;;  %v522_v25 = vld [vmem:[#allocation13 + $0x1f8] sm:$0xff] }
 0x2d4   :  { %4550 = vmatpush2.bf16.msra.mxu0 %v6153_v26  ;;  %4510 = vmatprep.subr.bf16.mxu1 %v6018_v45  ;;  %v913_v18 = vld [vmem:[#allocation13 + $0xe30] sm:$0xff]  ;;  %v646_v26 = vld [vmem:[#allocation13 + $0x5d8] sm:$0xff]  ;;  %v5716_v28 = vcombine.high %v518_v24, %v522_v25 }
 0x2d5   :  { %4551 = vmatprep.subr.bf16.mxu0 %v6146_v27  ;;  %v6106_v23 = vcombine.high %v909_v58, %v913_v18  ;;  %v650_v45 = vld [vmem:[#allocation13 + $0x5f8] sm:$0xff]  ;;  %v5977_v27 = vcombine.low %v781_v16, %v785_v17  ;;  %v6105_v46 = vcombine.low %v909_v58, %v913_v18  ;;  %v5692_v17 = vcombine.high %v494_v11, %v498_v2 }
 0x2d6   :  { %v5844_v47 = vcombine.high %v646_v26, %v650_v45  ;;  %v5843_v30 = vcombine.low %v646_v26, %v650_v45  ;;  %v486_v18 = vld [vmem:[#allocation13 + $0xd8] sm:$0xff] }
 0x2d7   :  { %4511 = vmatpush2.bf16.msra.mxu1 %v6017_v32  ;;  %v514_v32 = vld [vmem:[#allocation13 + $0x1b8] sm:$0xff] }
 0x2d8   :  { %4552 = vmatpush2.bf16.msra.mxu0 %v6145_v33  ;;  %4512 = vmatprep.subr.bf16.mxu1 %v6010_v34  ;;  %v5715_v33 = vcombine.low %v518_v24, %v522_v25  ;;  %v638_v34 = vld [vmem:[#allocation13 + $0x598] sm:$0xff]  ;;  %v5708_v37 = vcombine.high %v510_v31, %v514_v32  ;;  %v5707_v1 = vcombine.low %v510_v31, %v514_v32 }
 0x2d9   :  { %4553 = vmatprep.subr.bf16.mxu0 %v6138_v55  ;;  %v642_v55 = vld [vmem:[#allocation13 + $0x5b8] sm:$0xff] }
 0x2da   :  { %v478_v45 = vld [vmem:[#allocation13 + $0x98] sm:$0xff] }
 0x2db   :  { %4513 = vmatpush2.bf16.msra.mxu1 %v6009_v42 }
 0x2dc   :  { %4554 = vmatpush2.bf16.msra.mxu0 %v6137_v50  ;;  %4514 = vmatprep.subr.bf16.mxu1 %v6002_v51  ;;  %v5836_v50 = vcombine.high %v638_v34, %v642_v55  ;;  %v630_v51 = vld [vmem:[#allocation13 + $0x558] sm:$0xff] }
 0x2dd   :  { %4555 = vmatprep.subr.bf16.mxu0 %v6130_v52  ;;  %v634_v52 = vld [vmem:[#allocation13 + $0x578] sm:$0xff] }
 0x2df   :  { %4515 = vmatpush2.bf16.msra.mxu1 %v6001_v7  ;;  %v5835_v7 = vcombine.low %v638_v34, %v642_v55  ;;  %v470_v34 = vld [vmem:[#allocation13 + $0x58] sm:$0xff] }
 0x2e0   :  { %4556 = vmatpush2.bf16.msra.mxu0 %v6129_v54  ;;  %4516 = vmatprep.subr.bf16.mxu1 %v5994_v8  ;;  %v5700_v54 = vcombine.high %v502_v38, %v506_v41  ;;  %v474_v55 = vld [vmem:[#allocation13 + $0x78] sm:$0xff] }
 0x2e1   :  { %4557 = vmatprep.subr.bf16.mxu0 %v6122_v9 }
 0x2e3   :  { %4517 = vmatpush2.bf16.msra.mxu1 %v5993_v4  ;;  %v622_v4 = vld [vmem:[#allocation13 + $0x518] sm:$0xff] }
 0x2e4   :  { %4558 = vmatpush2.bf16.msra.mxu0 %v6121_v21  ;;  %4518 = vmatprep.subr.bf16.mxu1 %v5986_v14  ;;  %v626_v21 = vld [vmem:[#allocation13 + $0x538] sm:$0xff] }
 0x2e5   :  { %4559 = vmatprep.subr.bf16.mxu0 %v6114_v15  ;;  %v5699_v15 = vcombine.low %v502_v38, %v506_v41  ;;  %v5820_v58 = vcombine.high %v622_v4, %v626_v21  ;;  %v5819_v24 = vcombine.low %v622_v4, %v626_v21 }
 0x2e7   :  { %4519 = vmatpush2.bf16.msra.mxu1 %v5985_v60  ;;  %v490_v60 = vld [vmem:[#allocation13 + $0xf8] sm:$0xff] }
 0x2e8   :  { %4560 = vmatpush2.bf16.msra.mxu0 %v6113_v63  ;;  %4520 = vmatprep.subr.bf16.mxu1 %v5978_v20  ;;  %v614_v63 = vld [vmem:[#allocation13 + $0x4d8] sm:$0xff]  ;;  %v5684_v25 = vcombine.high %v486_v18, %v490_v60 }
 0x2e9   :  { %4561 = vmatprep.subr.bf16.mxu0 %v6106_v23  ;;  %v618_v20 = vld [vmem:[#allocation13 + $0x4f8] sm:$0xff]  ;;  %v5691_v23 = vcombine.low %v494_v11, %v498_v2 }
 0x2ea   :  { %v5812_v26 = vcombine.high %v614_v63, %v618_v20  ;;  %v5811_v31 = vcombine.low %v614_v63, %v618_v20  ;;  %v714_v11 = vld [vmem:[#allocation13 + $0x7f8] sm:$0xff] }
 0x2eb   :  { %4521 = vmatpush2.bf16.msra.mxu1 %v5977_v27  ;;  %v482_v27 = vld [vmem:[#allocation13 + $0xb8] sm:$0xff] }
 0x2ec   :  { %4562 = vmatpush2.bf16.msra.mxu0 %v6105_v46  ;;  %4572 = vmatprep.subr.bf16.mxu1 %v5716_v28  ;;  %v606_v46 = vld [vmem:[#allocation13 + $0x498] sm:$0xff]  ;;  %v5676_v32 = vcombine.high %v478_v45, %v482_v27  ;;  %v5675_v38 = vcombine.low %v478_v45, %v482_v27 }
 0x2ed   :  { %4613 = vmatprep.subr.bf16.mxu0 %v5844_v47  ;;  %v610_v28 = vld [vmem:[#allocation13 + $0x4b8] sm:$0xff]  ;;  %v5683_v47 = vcombine.low %v486_v18, %v490_v60 }
 0x2ee   :  { %v4278_v42 = vpop.f32.mrf.mxu1  ;;  %4523 = vmatmul.mubr.bf16.vlgmr.msra.gmra.mxu1 %v6715_v3  ;;  %v5803_v41 = vcombine.low %v606_v46, %v610_v28  ;;  %v566_v60 = vld [vmem:[#allocation13 + $0x358] sm:$0xff] }
 0x2ef   :  { %v4279_v53 = vadd.f32 %v4278_v42, %v6727_v19  ;;  %v4319_v62 = vpop.f32.mrf.mxu0  ;;  %4564 = vmatmul.mubr.bf16.vlgmr.msra.gmra.mxu0 %v6719_v6  ;;  %4573 = vmatpush1.bf16.msra.mxu1 %v5715_v33  ;;  %v5828_v19 = vcombine.high %v630_v51, %v634_v52  ;;  %v5804_v33 = vcombine.high %v606_v46, %v610_v28  ;;  %v570_v63 = vld [vmem:[#allocation13 + $0x378] sm:$0xff] }
 0x2f0   :  { %4604 = vmatprep.mubr.bf16.mxu1 %v6677_v56  ;;  %4614 = vmatpush1.bf16.msra.mxu0 %v5843_v30  ;;  %v4280_v5 = vpop.f32.mrf.mxu1  ;;  %v598_v30 = vld [vmem:[#allocation13 + $0x458] sm:$0xff]  ;;  %v5668_v42 = vcombine.high %v470_v34, %v474_v55 }
 0x2f1   :  { %v6769_v8 = vadd.f32 %v4319_v62, %v4279_v53  ;;  %4645 = vmatprep.mubr.bf16.mxu0 %v6679_v61  ;;  %v4281_v9 = vadd.f32 %v4280_v5, %v6731_v22  ;;  %v4321_v10 = vpop.f32.mrf.mxu0  ;;  %4574 = vmatprep.subr.bf16.mxu1 %v5708_v37  ;;  %v5827_v61 = vcombine.low %v630_v51, %v634_v52  ;;  %v602_v37 = vld [vmem:[#allocation13 + $0x478] sm:$0xff] }
 0x2f2   :  { %v4282_v13 = vpop.f32.mrf.mxu1  ;;  %4615 = vmatprep.subr.bf16.mxu0 %v5836_v50  ;;  %v5796_v50 = vcombine.high %v598_v30, %v602_v37  ;;  %v462_v51 = vld [vmem:[#allocation13 + $0x18] sm:$0xff]  ;;  %v5795_v5 = vcombine.low %v598_v30, %v602_v37 }
 0x2f3   :  { %v6773_v56 = vadd.f32 %v4321_v10, %v4281_v9  ;;  %v4323_v14 = vpop.f32.mrf.mxu0  ;;  %4575 = vmatpush1.bf16.msra.mxu1 %v5707_v1  ;;  %v466_v52 = vld [vmem:[#allocation13 + $0x38] sm:$0xff]  ;;  %v5667_v1 = vcombine.low %v470_v34, %v474_v55 }
 0x2f4   :  { %4616 = vmatpush1.bf16.msra.mxu0 %v5835_v7  ;;  %v4283_v16 = vpop.f32.mrf.mxu1  ;;  %4576 = vmatprep.subr.bf16.mxu1 %v5700_v54  ;;  %v590_v53 = vld [vmem:[#allocation13 + $0x418] sm:$0xff]  ;;  %v5660_v7 = vcombine.high %v462_v51, %v466_v52  ;;  %v5659_v2 = vcombine.low %v462_v51, %v466_v52 }
 0x2f5   :  { %v4324_v22 = vpop.f32.mrf.mxu0  ;;  %4617 = vmatprep.subr.bf16.mxu0 %v5828_v19  ;;  %v594_v62 = vld [vmem:[#allocation13 + $0x438] sm:$0xff] }
 0x2f6   :  { %v5788_v54 = vcombine.high %v590_v53, %v594_v62  ;;  %v582_v9 = vld [vmem:[#allocation13 + $0x3d8] sm:$0xff]  ;;  %v5787_v13 = vcombine.low %v590_v53, %v594_v62 }
 0x2f7   :  { %4577 = vmatpush1.bf16.msra.mxu1 %v5699_v15  ;;  %v586_v10 = vld [vmem:[#allocation13 + $0x3f8] sm:$0xff] }
 0x2f8   :  { %4618 = vmatpush1.bf16.msra.mxu0 %v5827_v61  ;;  %4578 = vmatprep.subr.bf16.mxu1 %v5692_v17  ;;  %v710_v19 = vld [vmem:[#allocation13 + $0x7d8] sm:$0xff]  ;;  %v5780_v4 = vcombine.high %v582_v9, %v586_v10  ;;  %v5779_v17 = vcombine.low %v582_v9, %v586_v10 }
 0x2f9   :  { %4619 = vmatprep.subr.bf16.mxu0 %v5820_v58  ;;  %v5908_v21 = vcombine.high %v710_v19, %v714_v11  ;;  %v574_v14 = vld [vmem:[#allocation13 + $0x398] sm:$0xff]  ;;  %v5907_v22 = vcombine.low %v710_v19, %v714_v11 }
 0x2fa   :  { %v578_v15 = vld [vmem:[#allocation13 + $0x3b8] sm:$0xff] }
 0x2fb   :  { %4579 = vmatpush1.bf16.msra.mxu1 %v5691_v23  ;;  %v702_v16 = vld [vmem:[#allocation13 + $0x798] sm:$0xff]  ;;  %v5772_v58 = vcombine.high %v574_v14, %v578_v15 }
 0x2fc   :  { %4620 = vmatpush1.bf16.msra.mxu0 %v5819_v24  ;;  %4580 = vmatprep.subr.bf16.mxu1 %v5684_v25  ;;  %v706_v61 = vld [vmem:[#allocation13 + $0x7b8] sm:$0xff]  ;;  %v5771_v24 = vcombine.low %v574_v14, %v578_v15 }
 0x2fd   :  { %4621 = vmatprep.subr.bf16.mxu0 %v5812_v26  ;;  %v5900_v18 = vcombine.high %v702_v16, %v706_v61  ;;  %v694_v20 = vld [vmem:[#allocation13 + $0x758] sm:$0xff]  ;;  %v5899_v25 = vcombine.low %v702_v16, %v706_v61  ;;  %v5764_v26 = vcombine.high %v566_v60, %v570_v63 }
 0x2fe   :  { %v698_v23 = vld [vmem:[#allocation13 + $0x778] sm:$0xff] }
 0x2ff   :  { %4581 = vmatpush1.bf16.msra.mxu1 %v5683_v47  ;;  %v5892_v45 = vcombine.high %v694_v20, %v698_v23  ;;  %v558_v27 = vld [vmem:[#allocation13 + $0x318] sm:$0xff] }
 0x300   :  { %4622 = vmatpush1.bf16.msra.mxu0 %v5811_v31  ;;  %4582 = vmatprep.subr.bf16.mxu1 %v5676_v32  ;;  %v562_v46 = vld [vmem:[#allocation13 + $0x338] sm:$0xff]  ;;  %v5763_v31 = vcombine.low %v566_v60, %v570_v63  ;;  %v5891_v32 = vcombine.low %v694_v20, %v698_v23 }
 0x301   :  { %4623 = vmatprep.subr.bf16.mxu0 %v5804_v33  ;;  %v686_v28 = vld [vmem:[#allocation13 + $0x718] sm:$0xff]  ;;  %v5756_v33 = vcombine.high %v558_v27, %v562_v46 }
 0x302   :  { %v690_v47 = vld [vmem:[#allocation13 + $0x738] sm:$0xff] }
 0x303   :  { %4583 = vmatpush1.bf16.msra.mxu1 %v5675_v38  ;;  %v5884_v34 = vcombine.high %v686_v28, %v690_v47  ;;  %v550_v55 = vld [vmem:[#allocation13 + $0x2d8] sm:$0xff] }
 0x304   :  { %4624 = vmatpush1.bf16.msra.mxu0 %v5803_v41  ;;  %4584 = vmatprep.subr.bf16.mxu1 %v5668_v42  ;;  %v554_v30 = vld [vmem:[#allocation13 + $0x2f8] sm:$0xff]  ;;  %v5755_v41 = vcombine.low %v558_v27, %v562_v46  ;;  %v5883_v42 = vcombine.low %v686_v28, %v690_v47 }
 0x305   :  { %4625 = vmatprep.subr.bf16.mxu0 %v5796_v50  ;;  %v678_v37 = vld [vmem:[#allocation13 + $0x6d8] sm:$0xff]  ;;  %v5748_v50 = vcombine.high %v550_v55, %v554_v30 }
 0x306   :  { %v682_v38 = vld [vmem:[#allocation13 + $0x6f8] sm:$0xff] }
 0x307   :  { %4585 = vmatpush1.bf16.msra.mxu1 %v5667_v1  ;;  %v5876_v51 = vcombine.high %v678_v37, %v682_v38  ;;  %v542_v52 = vld [vmem:[#allocation13 + $0x298] sm:$0xff] }
 0x308   :  { %4626 = vmatpush1.bf16.msra.mxu0 %v5795_v5  ;;  %4586 = vmatprep.subr.bf16.mxu1 %v5660_v7  ;;  %v546_v53 = vld [vmem:[#allocation13 + $0x2b8] sm:$0xff]  ;;  %v5747_v5 = vcombine.low %v550_v55, %v554_v30  ;;  %v5875_v7 = vcombine.low %v678_v37, %v682_v38 }
 0x309   :  { %4627 = vmatprep.subr.bf16.mxu0 %v5788_v54  ;;  %v670_v62 = vld [vmem:[#allocation13 + $0x698] sm:$0xff]  ;;  %v5740_v54 = vcombine.high %v542_v52, %v546_v53 }
 0x30a   :  { %v674_v1 = vld [vmem:[#allocation13 + $0x6b8] sm:$0xff] }
 0x30b   :  { %4587 = vmatpush1.bf16.msra.mxu1 %v5659_v2  ;;  %v5868_v9 = vcombine.high %v670_v62, %v674_v1  ;;  %v534_v10 = vld [vmem:[#allocation13 + $0x258] sm:$0xff] }
 0x30c   :  { %4628 = vmatpush1.bf16.msra.mxu0 %v5787_v13  ;;  %4588 = vmatprep.subr.bf16.mxu1 %v5780_v4  ;;  %v538_v19 = vld [vmem:[#allocation13 + $0x278] sm:$0xff]  ;;  %v5739_v13 = vcombine.low %v542_v52, %v546_v53  ;;  %v5867_v4 = vcombine.low %v670_v62, %v674_v1 }
 0x30d   :  { %4629 = vmatprep.subr.bf16.mxu0 %v5908_v21  ;;  %v662_v11 = vld [vmem:[#allocation13 + $0x658] sm:$0xff]  ;;  %v5732_v21 = vcombine.high %v534_v10, %v538_v19 }
 0x30e   :  { %v666_v2 = vld [vmem:[#allocation13 + $0x678] sm:$0xff] }
 0x30f   :  { %4589 = vmatpush2.bf16.msra.mxu1 %v5779_v17  ;;  %v5860_v14 = vcombine.high %v662_v11, %v666_v2  ;;  %v526_v15 = vld [vmem:[#allocation13 + $0x218] sm:$0xff] }
 0x310   :  { %4630 = vmatpush2.bf16.msra.mxu0 %v5907_v22  ;;  %4590 = vmatprep.subr.bf16.mxu1 %v5772_v58  ;;  %v530_v16 = vld [vmem:[#allocation13 + $0x238] sm:$0xff]  ;;  %v5731_v22 = vcombine.low %v534_v10, %v538_v19  ;;  %v5859_v58 = vcombine.low %v662_v11, %v666_v2 }
 0x311   :  { %4631 = vmatprep.subr.bf16.mxu0 %v5900_v18  ;;  %v654_v61 = vld [vmem:[#allocation13 + $0x618] sm:$0xff]  ;;  %v5724_v18 = vcombine.high %v526_v15, %v530_v16 }
 0x312   :  { %v658_v17 = vld [vmem:[#allocation13 + $0x638] sm:$0xff] }
 0x313   :  { %4591 = vmatpush2.bf16.msra.mxu1 %v5771_v24  ;;  %v5852_v60 = vcombine.high %v654_v61, %v658_v17  ;;  %v774_v63 = vld [vmem:[#allocation13 + $0x9d8] sm:$0xff] }
 0x314   :  { %4632 = vmatpush2.bf16.msra.mxu0 %v5899_v25  ;;  %4592 = vmatprep.subr.bf16.mxu1 %v5764_v26  ;;  %v778_v20 = vld [vmem:[#allocation13 + $0x9f8] sm:$0xff]  ;;  %v5723_v25 = vcombine.low %v526_v15, %v530_v16  ;;  %v5851_v26 = vcombine.low %v654_v61, %v658_v17 }
 0x315   :  { %4633 = vmatprep.subr.bf16.mxu0 %v5892_v45  ;;  %v902_v23 = vld [vmem:[#allocation13 + $0xdd8] sm:$0xff]  ;;  %v5972_v45 = vcombine.high %v774_v63, %v778_v20  ;;  %v5971_v47 = vcombine.low %v774_v63, %v778_v20 }
 0x316   :  { %v906_v24 = vld [vmem:[#allocation13 + $0xdf8] sm:$0xff] }
 0x317   :  { %4593 = vmatpush2.bf16.msra.mxu1 %v5763_v31  ;;  %v6100_v27 = vcombine.high %v902_v23, %v906_v24  ;;  %v766_v46 = vld [vmem:[#allocation13 + $0x998] sm:$0xff] }
 0x318   :  { %4634 = vmatpush2.bf16.msra.mxu0 %v5891_v32  ;;  %4594 = vmatprep.subr.bf16.mxu1 %v5756_v33  ;;  %v770_v28 = vld [vmem:[#allocation13 + $0x9b8] sm:$0xff]  ;;  %v6099_v33 = vcombine.low %v902_v23, %v906_v24 }
 0x319   :  { %4635 = vmatprep.subr.bf16.mxu0 %v5884_v34  ;;  %v894_v31 = vld [vmem:[#allocation13 + $0xd98] sm:$0xff]  ;;  %v5964_v34 = vcombine.high %v766_v46, %v770_v28  ;;  %v5963_v52 = vcombine.low %v766_v46, %v770_v28 }
 0x31a   :  { %v898_v32 = vld [vmem:[#allocation13 + $0xdb8] sm:$0xff] }
 0x31b   :  { %4595 = vmatpush2.bf16.msra.mxu1 %v5755_v41  ;;  %v758_v55 = vld [vmem:[#allocation13 + $0x958] sm:$0xff]  ;;  %v6092_v38 = vcombine.high %v894_v31, %v898_v32  ;;  %v6091_v62 = vcombine.low %v894_v31, %v898_v32 }
 0x31c   :  { %4636 = vmatpush2.bf16.msra.mxu0 %v5883_v42  ;;  %4596 = vmatprep.subr.bf16.mxu1 %v5748_v50  ;;  %v762_v30 = vld [vmem:[#allocation13 + $0x978] sm:$0xff] }
 0x31d   :  { %4637 = vmatprep.subr.bf16.mxu0 %v5876_v51  ;;  %v886_v41 = vld [vmem:[#allocation13 + $0xd58] sm:$0xff]  ;;  %v5956_v1 = vcombine.high %v758_v55, %v762_v30  ;;  %v5955_v2 = vcombine.low %v758_v55, %v762_v30 }
 0x31e   :  { %v890_v42 = vld [vmem:[#allocation13 + $0xd78] sm:$0xff] }
 0x31f   :  { %4597 = vmatpush2.bf16.msra.mxu1 %v5747_v5  ;;  %v878_v10 = vld [vmem:[#allocation13 + $0xd18] sm:$0xff] }
 0x320   :  { %4638 = vmatpush2.bf16.msra.mxu0 %v5875_v7  ;;  %4598 = vmatprep.subr.bf16.mxu1 %v5740_v54  ;;  %v750_v54 = vld [vmem:[#allocation13 + $0x918] sm:$0xff] }
 0x321   :  { %4639 = vmatprep.subr.bf16.mxu0 %v5868_v9  ;;  %v754_v9 = vld [vmem:[#allocation13 + $0x938] sm:$0xff] }
 0x322   :  { %v882_v19 = vld [vmem:[#allocation13 + $0xd38] sm:$0xff]  ;;  %v5947_v17 = vcombine.low %v750_v54, %v754_v9 }
 0x323   :  { %4599 = vmatpush2.bf16.msra.mxu1 %v5739_v13  ;;  %v746_v15 = vld [vmem:[#allocation13 + $0x8f8] sm:$0xff] }
 0x324   :  { %4640 = vmatpush2.bf16.msra.mxu0 %v5867_v4  ;;  %4600 = vmatprep.subr.bf16.mxu1 %v5732_v21  ;;  %v5948_v4 = vcombine.high %v750_v54, %v754_v9  ;;  %v6076_v21 = vcombine.high %v878_v10, %v882_v19  ;;  %v870_v16 = vld [vmem:[#allocation13 + $0xcd8] sm:$0xff] }
 0x325   :  { %4641 = vmatprep.subr.bf16.mxu0 %v5860_v14  ;;  %v742_v14 = vld [vmem:[#allocation13 + $0x8d8] sm:$0xff] }
 0x326   :  { %v874_v61 = vld [vmem:[#allocation13 + $0xcf8] sm:$0xff]  ;;  %v5939_v24 = vcombine.low %v742_v14, %v746_v15 }
 0x327   :  { %4601 = vmatpush2.bf16.msra.mxu1 %v5731_v22  ;;  %v6075_v22 = vcombine.low %v878_v10, %v882_v19  ;;  %v738_v63 = vld [vmem:[#allocation13 + $0x8b8] sm:$0xff] }
 0x328   :  { %4642 = vmatpush2.bf16.msra.mxu0 %v5859_v58  ;;  %4602 = vmatprep.subr.bf16.mxu1 %v5724_v18  ;;  %v5940_v58 = vcombine.high %v742_v14, %v746_v15  ;;  %v6068_v18 = vcombine.high %v870_v16, %v874_v61  ;;  %v862_v20 = vld [vmem:[#allocation13 + $0xc98] sm:$0xff] }
 0x329   :  { %4643 = vmatprep.subr.bf16.mxu0 %v5852_v60  ;;  %v734_v60 = vld [vmem:[#allocation13 + $0x898] sm:$0xff] }
 0x32a   :  { %v866_v23 = vld [vmem:[#allocation13 + $0xcb8] sm:$0xff]  ;;  %v5931_v31 = vcombine.low %v734_v60, %v738_v63 }
 0x32b   :  { %4603 = vmatpush2.bf16.msra.mxu1 %v5723_v25  ;;  %v6067_v25 = vcombine.low %v870_v16, %v874_v61  ;;  %v730_v46 = vld [vmem:[#allocation13 + $0x878] sm:$0xff]  ;;  %v6059_v32 = vcombine.low %v862_v20, %v866_v23 }
 0x32c   :  { %4644 = vmatpush2.bf16.msra.mxu0 %v5851_v26  ;;  %4654 = vmatprep.subr.bf16.mxu1 %v5972_v45  ;;  %v5932_v26 = vcombine.high %v734_v60, %v738_v63  ;;  %v6060_v45 = vcombine.high %v862_v20, %v866_v23  ;;  %v854_v28 = vld [vmem:[#allocation13 + $0xc58] sm:$0xff] }
 0x32d   :  { %4695 = vmatprep.subr.bf16.mxu0 %v6100_v27  ;;  %v726_v27 = vld [vmem:[#allocation13 + $0x858] sm:$0xff] }
 0x32e   :  { %v4360_v37 = vpop.f32.mrf.mxu1  ;;  %4605 = vmatmul.mubr.bf16.vlgmr.msra.gmra.mxu1 %v6699_v39  ;;  %v718_v55 = vld [vmem:[#allocation13 + $0x818] sm:$0xff] }
 0x32f   :  { %v4361_v50 = vadd.f32 %v4360_v37, %v6769_v8  ;;  %v4401_v51 = vpop.f32.mrf.mxu0  ;;  %4646 = vmatmul.mubr.bf16.vlgmr.msra.gmra.mxu0 %v6703_v43  ;;  %4655 = vmatpush1.bf16.msra.mxu1 %v5971_v47  ;;  %v6084_v8 = vcombine.high %v886_v41, %v890_v42  ;;  %v858_v47 = vld [vmem:[#allocation13 + $0xc78] sm:$0xff] }
 0x330   :  { %4686 = vmatprep.mubr.bf16.mxu1 %v6705_v48  ;;  %4696 = vmatpush1.bf16.msra.mxu0 %v6099_v33  ;;  %v4362_v53 = vpop.f32.mrf.mxu1  ;;  %v5924_v33 = vcombine.high %v726_v27, %v730_v46  ;;  %v722_v30 = vld [vmem:[#allocation13 + $0x838] sm:$0xff] }
 0x331   :  { %v6779_v5 = vadd.f32 %v4401_v51, %v4361_v50  ;;  %4727 = vmatprep.mubr.bf16.mxu0 %v6709_v29  ;;  %v4363_v39 = vadd.f32 %v4362_v53, %v6773_v56  ;;  %v4403_v7 = vpop.f32.mrf.mxu0  ;;  %4656 = vmatprep.subr.bf16.mxu1 %v5964_v34  ;;  %v6083_v29 = vcombine.low %v886_v41, %v890_v42  ;;  %v846_v37 = vld [vmem:[#allocation13 + $0xc18] sm:$0xff] }
 0x332   :  { %v4364_v43 = vpop.f32.mrf.mxu1  ;;  %4697 = vmatprep.subr.bf16.mxu0 %v6092_v38  ;;  %v6052_v34 = vcombine.high %v854_v28, %v858_v47  ;;  %v850_v38 = vld [vmem:[#allocation13 + $0xc38] sm:$0xff]  ;;  %v5923_v41 = vcombine.low %v726_v27, %v730_v46  ;;  %v6051_v42 = vcombine.low %v854_v28, %v858_v47  ;;  %v5916_v50 = vcombine.high %v718_v55, %v722_v30 }
 0x333   :  { %v6783_v48 = vadd.f32 %v4403_v7, %v4363_v39  ;;  %v4405_v11 = vpop.f32.mrf.mxu0  ;;  %4657 = vmatpush1.bf16.msra.mxu1 %v5963_v52  ;;  %v6044_v51 = vcombine.high %v846_v37, %v850_v38  ;;  %v838_v52 = vld [vmem:[#allocation13 + $0xbd8] sm:$0xff]  ;;  %v5915_v39 = vcombine.low %v718_v55, %v722_v30  ;;  %v6043_v7 = vcombine.low %v846_v37, %v850_v38 }
 0x334   :  { %4698 = vmatpush1.bf16.msra.mxu0 %v6091_v62  ;;  %v4365_v13 = vpop.f32.mrf.mxu1  ;;  %4658 = vmatprep.subr.bf16.mxu1 %v5956_v1  ;;  %v842_v53 = vld [vmem:[#allocation13 + $0xbf8] sm:$0xff] }
 0x335   :  { %v4406_v56 = vpop.f32.mrf.mxu0  ;;  %4699 = vmatprep.subr.bf16.mxu0 %v6084_v8  ;;  %v966_v62 = vld [vmem:[#allocation13 + $0xfd8] sm:$0xff]  ;;  %v6036_v8 = vcombine.high %v838_v52, %v842_v53  ;;  %v6035_v11 = vcombine.low %v838_v52, %v842_v53 }
 0x336   :  { %v970_v1 = vld [vmem:[#allocation13 + $0xff8] sm:$0xff] }
 0x337   :  { %4659 = vmatpush1.bf16.msra.mxu1 %v5955_v2  ;;  %v6164_v54 = vcombine.high %v966_v62, %v970_v1  ;;  %v830_v9 = vld [vmem:[#allocation13 + $0xb98] sm:$0xff]  ;;  %v6163_v2 = vcombine.low %v966_v62, %v970_v1 }
 0x338   :  { %4700 = vmatpush1.bf16.msra.mxu0 %v6083_v29  ;;  %4660 = vmatprep.subr.bf16.mxu1 %v5948_v4  ;;  %v834_v43 = vld [vmem:[#allocation13 + $0xbb8] sm:$0xff] }
 0x339   :  { %4701 = vmatprep.subr.bf16.mxu0 %v6076_v21  ;;  %v958_v10 = vld [vmem:[#allocation13 + $0xf98] sm:$0xff]  ;;  %v6028_v13 = vcombine.high %v830_v9, %v834_v43  ;;  %v6027_v15 = vcombine.low %v830_v9, %v834_v43 }
 0x33a   :  { %v962_v19 = vld [vmem:[#allocation13 + $0xfb8] sm:$0xff] }
 0x33b   :  { %4661 = vmatpush1.bf16.msra.mxu1 %v5947_v17  ;;  %v6156_v29 = vcombine.high %v958_v10, %v962_v19  ;;  %v822_v4 = vld [vmem:[#allocation13 + $0xb58] sm:$0xff]  ;;  %v6155_v16 = vcombine.low %v958_v10, %v962_v19 }
 0x33c   :  { %4702 = vmatpush1.bf16.msra.mxu0 %v6075_v22  ;;  %4662 = vmatprep.subr.bf16.mxu1 %v5940_v58  ;;  %v826_v56 = vld [vmem:[#allocation13 + $0xb78] sm:$0xff] }
 0x33d   :  { %4703 = vmatprep.subr.bf16.mxu0 %v6068_v18  ;;  %v950_v21 = vld [vmem:[#allocation13 + $0xf58] sm:$0xff]  ;;  %v6020_v61 = vcombine.high %v822_v4, %v826_v56  ;;  %v6019_v63 = vcombine.low %v822_v4, %v826_v56  ;;  %v4799_v4 = vld [vmem:[#allocation13 + $0x13e8] sm:$0xff] }
 0x33e   :  { %v954_v14 = vld [vmem:[#allocation13 + $0xf78] sm:$0xff] }
 0x33f   :  { %4663 = vmatpush1.bf16.msra.mxu1 %v5939_v24  ;;  %v6148_v17 = vcombine.high %v950_v21, %v954_v14  ;;  %v814_v22 = vld [vmem:[#allocation13 + $0xb18] sm:$0xff]  ;;  %v6147_v20 = vcombine.low %v950_v21, %v954_v14 }
 0x340   :  { %4704 = vmatpush1.bf16.msra.mxu0 %v6067_v25  ;;  %4664 = vmatprep.subr.bf16.mxu1 %v5932_v26  ;;  %v818_v58 = vld [vmem:[#allocation13 + $0xb38] sm:$0xff] }
 0x341   :  { %4705 = vmatprep.subr.bf16.mxu0 %v6060_v45  ;;  %v942_v18 = vld [vmem:[#allocation13 + $0xf18] sm:$0xff]  ;;  %v6012_v23 = vcombine.high %v814_v22, %v818_v58  ;;  %v6011_v46 = vcombine.low %v814_v22, %v818_v58  ;;  %v4791_v22 = vld [vmem:[#allocation13 + $0x13a8] sm:$0xff] }
 0x342   :  { %v946_v60 = vld [vmem:[#allocation13 + $0xf38] sm:$0xff] }
 0x343   :  { %4665 = vmatpush1.bf16.msra.mxu1 %v5931_v31  ;;  %v6140_v24 = vcombine.high %v942_v18, %v946_v60  ;;  %v806_v25 = vld [vmem:[#allocation13 + $0xad8] sm:$0xff]  ;;  %v6139_v28 = vcombine.low %v942_v18, %v946_v60 }
 0x344   :  { %4706 = vmatpush1.bf16.msra.mxu0 %v6059_v32  ;;  %4666 = vmatprep.subr.bf16.mxu1 %v5924_v33  ;;  %v810_v26 = vld [vmem:[#allocation13 + $0xaf8] sm:$0xff] }
 0x345   :  { %4707 = vmatprep.subr.bf16.mxu0 %v6052_v34  ;;  %v934_v45 = vld [vmem:[#allocation13 + $0xed8] sm:$0xff]  ;;  %v6004_v47 = vcombine.high %v806_v25, %v810_v26  ;;  %v6003_v30 = vcombine.low %v806_v25, %v810_v26  ;;  %v4779_v25 = vld [vmem:[#allocation13 + $0x1348] sm:$0xff] }
 0x346   :  { %v938_v27 = vld [vmem:[#allocation13 + $0xef8] sm:$0xff]  ;;  %v4783_v26 = vld [vmem:[#allocation13 + $0x1368] sm:$0xff] }
 0x347   :  { %4667 = vmatpush1.bf16.msra.mxu1 %v5923_v41  ;;  %v6132_v31 = vcombine.high %v934_v45, %v938_v27  ;;  %v798_v32 = vld [vmem:[#allocation13 + $0xa98] sm:$0xff]  ;;  %v6131_v37 = vcombine.low %v934_v45, %v938_v27 }
 0x348   :  { %4708 = vmatpush1.bf16.msra.mxu0 %v6051_v42  ;;  %4668 = vmatprep.subr.bf16.mxu1 %v5916_v50  ;;  %v802_v33 = vld [vmem:[#allocation13 + $0xab8] sm:$0xff] }
 0x349   :  { %4709 = vmatprep.subr.bf16.mxu0 %v6044_v51  ;;  %v926_v34 = vld [vmem:[#allocation13 + $0xe98] sm:$0xff]  ;;  %v5996_v38 = vcombine.high %v798_v32, %v802_v33  ;;  %v5995_v53 = vcombine.low %v798_v32, %v802_v33 }
 0x34a   :  { %v930_v55 = vld [vmem:[#allocation13 + $0xeb8] sm:$0xff] }
 0x34b   :  { %4669 = vmatpush1.bf16.msra.mxu1 %v5915_v39  ;;  %v6124_v41 = vcombine.high %v926_v34, %v930_v55  ;;  %v790_v42 = vld [vmem:[#allocation13 + $0xa58] sm:$0xff]  ;;  %v6123_v62 = vcombine.low %v926_v34, %v930_v55  ;;  %v4770_v55 = vld [vmem:[#allocation13 + $0x1300] sm:$0xff] }
 0x34c   :  { %4710 = vmatpush1.bf16.msra.mxu0 %v6043_v7  ;;  %4670 = vmatprep.subr.bf16.mxu1 %v6036_v8  ;;  %v794_v50 = vld [vmem:[#allocation13 + $0xa78] sm:$0xff] }
 0x34d   :  { %4711 = vmatprep.subr.bf16.mxu0 %v6164_v54  ;;  %v918_v51 = vld [vmem:[#allocation13 + $0xe58] sm:$0xff]  ;;  %v5988_v1 = vcombine.high %v790_v42, %v794_v50  ;;  %v5987_v43 = vcombine.low %v790_v42, %v794_v50 }
 0x34e   :  { %v922_v52 = vld [vmem:[#allocation13 + $0xe78] sm:$0xff] }
 0x34f   :  { %4671 = vmatpush2.bf16.msra.mxu1 %v6035_v11  ;;  %v6116_v39 = vcombine.high %v918_v51, %v922_v52  ;;  %v782_v7 = vld [vmem:[#allocation13 + $0xa18] sm:$0xff]  ;;  %v6115_v10 = vcombine.low %v918_v51, %v922_v52 }
 0x350   :  { %4712 = vmatpush2.bf16.msra.mxu0 %v6163_v2  ;;  %4672 = vmatprep.subr.bf16.mxu1 %v6028_v13  ;;  %v786_v8 = vld [vmem:[#allocation13 + $0xa38] sm:$0xff]  ;;  %v4794_v2 = vld [vmem:[#allocation13 + $0x13c0] sm:$0xff] }
 0x351   :  { %4713 = vmatprep.subr.bf16.mxu0 %v6156_v29  ;;  %v910_v54 = vld [vmem:[#allocation13 + $0xe18] sm:$0xff]  ;;  %v5980_v19 = vcombine.high %v782_v7, %v786_v8  ;;  %v4798_v13 = vld [vmem:[#allocation13 + $0x13e0] sm:$0xff]  ;;  %v4795_v29 = vld [vmem:[#allocation13 + $0x13c8] sm:$0xff]  ;;  %v5979_v56 = vcombine.low %v782_v7, %v786_v8 }
 0x352   :  { %v914_v9 = vld [vmem:[#allocation13 + $0xe38] sm:$0xff]  ;;  %v6222_v14 = vcombine.high %v4794_v2, %v4798_v13  ;;  %v6221_v58 = vcombine.low %v4794_v2, %v4798_v13  ;;  %v6223_v18 = vcombine.low %v4795_v29, %v4799_v4  ;;  %v4767_v7 = vld [vmem:[#allocation13 + $0x12e8] sm:$0xff] }
 0x353   :  { %4673 = vmatpush2.bf16.msra.mxu1 %v6027_v15  ;;  %v6108_v11 = vcombine.high %v910_v54, %v914_v9  ;;  %v6107_v21 = vcombine.low %v910_v54, %v914_v9  ;;  %v6224_v15 = vcombine.high %v4795_v29, %v4799_v4  ;;  %v4759_v2 = vld [vmem:[#allocation13 + $0x12a8] sm:$0xff] }
 0x354   :  { %4714 = vmatpush2.bf16.msra.mxu0 %v6155_v16  ;;  %4674 = vmatprep.subr.bf16.mxu1 %v6020_v61  ;;  %v4786_v16 = vld [vmem:[#allocation13 + $0x1380] sm:$0xff] }
 0x355   :  { %4715 = vmatprep.subr.bf16.mxu0 %v6148_v17  ;;  %v4790_v61 = vld [vmem:[#allocation13 + $0x13a0] sm:$0xff]  ;;  %v4787_v17 = vld [vmem:[#allocation13 + $0x1388] sm:$0xff] }
 0x356   :  { %v6214_v60 = vcombine.high %v4786_v16, %v4790_v61 }
 0x357   :  { %4675 = vmatpush2.bf16.msra.mxu1 %v6019_v63  ;;  %v6216_v63 = vcombine.high %v4787_v17, %v4791_v22 }
 0x358   :  { %4716 = vmatpush2.bf16.msra.mxu0 %v6147_v20  ;;  %4676 = vmatprep.subr.bf16.mxu1 %v6012_v23  ;;  %v4778_v20 = vld [vmem:[#allocation13 + $0x1340] sm:$0xff] }
 0x359   :  { %4717 = vmatprep.subr.bf16.mxu0 %v6140_v24  ;;  %v4782_v23 = vld [vmem:[#allocation13 + $0x1360] sm:$0xff] }
 0x35a   :  { %v6205_v42 = vcombine.low %v4778_v20, %v4782_v23 }
 0x35b   :  { %4677 = vmatpush2.bf16.msra.mxu1 %v6011_v46  ;;  %v6213_v46 = vcombine.low %v4786_v16, %v4790_v61  ;;  %v4751_v16 = vld [vmem:[#allocation13 + $0x1268] sm:$0xff] }
 0x35c   :  { %4718 = vmatpush2.bf16.msra.mxu0 %v6139_v28  ;;  %4678 = vmatprep.subr.bf16.mxu1 %v6004_v47  ;;  %v6215_v47 = vcombine.low %v4787_v17, %v4791_v22 }
 0x35d   :  { %4719 = vmatprep.subr.bf16.mxu0 %v6132_v31  ;;  %v6206_v31 = vcombine.high %v4778_v20, %v4782_v23  ;;  %v4743_v20 = vld [vmem:[#allocation13 + $0x1228] sm:$0xff] }
 0x35f   :  { %4679 = vmatpush2.bf16.msra.mxu1 %v6003_v30  ;;  %v4774_v30 = vld [vmem:[#allocation13 + $0x1320] sm:$0xff] }
 0x360   :  { %4720 = vmatpush2.bf16.msra.mxu0 %v6131_v37  ;;  %4680 = vmatprep.subr.bf16.mxu1 %v5996_v38  ;;  %v4775_v37 = vld [vmem:[#allocation13 + $0x1328] sm:$0xff]  ;;  %v6198_v51 = vcombine.high %v4770_v55, %v4774_v30  ;;  %v6197_v8 = vcombine.low %v4770_v55, %v4774_v30  ;;  %v4788_v55 = vld [vmem:[#allocation13 + $0x1390] sm:$0xff] }
 0x361   :  { %4721 = vmatprep.subr.bf16.mxu0 %v6124_v41  ;;  %v4792_v30 = vld [vmem:[#allocation13 + $0x13b0] sm:$0xff] }
 0x363   :  { %4681 = vmatpush2.bf16.msra.mxu1 %v5995_v53 }
 0x364   :  { %4722 = vmatpush2.bf16.msra.mxu0 %v6123_v62  ;;  %4682 = vmatprep.subr.bf16.mxu1 %v5988_v1  ;;  %v4762_v62 = vld [vmem:[#allocation13 + $0x12c0] sm:$0xff] }
 0x365   :  { %4723 = vmatprep.subr.bf16.mxu0 %v6116_v39  ;;  %v4766_v1 = vld [vmem:[#allocation13 + $0x12e0] sm:$0xff]  ;;  %v4763_v39 = vld [vmem:[#allocation13 + $0x12c8] sm:$0xff] }
 0x366   :  { %v6190_v9 = vcombine.high %v4762_v62, %v4766_v1  ;;  %v6189_v13 = vcombine.low %v4762_v62, %v4766_v1  ;;  %v6191_v29 = vcombine.low %v4763_v39, %v4767_v7  ;;  %v4785_v62 = vld [vmem:[#allocation13 + $0x1378] sm:$0xff]  ;;  %v6217_v1 = vcombine.low %v4788_v55, %v4792_v30 }
 0x367   :  { %4683 = vmatpush2.bf16.msra.mxu1 %v5987_v43  ;;  %v6192_v43 = vcombine.high %v4763_v39, %v4767_v7 }
 0x368   :  { %4724 = vmatpush2.bf16.msra.mxu0 %v6115_v10  ;;  %4684 = vmatprep.subr.bf16.mxu1 %v5980_v19  ;;  %v4754_v10 = vld [vmem:[#allocation13 + $0x1280] sm:$0xff] }
 0x369   :  { %4725 = vmatprep.subr.bf16.mxu0 %v6108_v11  ;;  %v4758_v19 = vld [vmem:[#allocation13 + $0x12a0] sm:$0xff]  ;;  %v4755_v11 = vld [vmem:[#allocation13 + $0x1288] sm:$0xff] }
 0x36a   :  { %v6182_v4 = vcombine.high %v4754_v10, %v4758_v19  ;;  %v6181_v61 = vcombine.low %v4754_v10, %v4758_v19  ;;  %v6183_v17 = vcombine.low %v4755_v11, %v4759_v2  ;;  %v4777_v10 = vld [vmem:[#allocation13 + $0x1338] sm:$0xff] }
 0x36b   :  { %4685 = vmatpush2.bf16.msra.mxu1 %v5979_v56  ;;  %v6184_v56 = vcombine.high %v4755_v11, %v4759_v2 }
 0x36c   :  { %4726 = vmatpush2.bf16.msra.mxu0 %v6107_v21  ;;  %5122 = vmatprep.subr.bf16.mxu1 %v6222_v14  ;;  %v4746_v21 = vld [vmem:[#allocation13 + $0x1240] sm:$0xff] }
 0x36d   :  { %5163 = vmatprep.subr.bf16.mxu0 %v6224_v15  ;;  %v4750_v14 = vld [vmem:[#allocation13 + $0x1260] sm:$0xff]  ;;  %v4747_v15 = vld [vmem:[#allocation13 + $0x1248] sm:$0xff] }
 0x36e   :  { %v4442_v24 = vpop.f32.mrf.mxu1  ;;  %4687 = vmatmul.mubr.bf16.vlgmr.msra.gmra.mxu1 %v6715_v3  ;;  %v6208_v3 = vcombine.high %v4779_v25, %v4783_v26  ;;  %v6174_v22 = vcombine.high %v4746_v21, %v4750_v14  ;;  %v6173_v23 = vcombine.low %v4746_v21, %v4750_v14  ;;  %v4769_v21 = vld [vmem:[#allocation13 + $0x12f8] sm:$0xff] }
 0x36f   :  { %v4443_v45 = vadd.f32 %v4442_v24, %v6733_v57  ;;  %v4483_v27 = vpop.f32.mrf.mxu0  ;;  %4728 = vmatmul.mubr.bf16.vlgmr.msra.gmra.mxu0 %v6719_v6  ;;  %5123 = vmatpush1.bf16.msra.mxu1 %v6221_v58  ;;  %v4771_v6 = vld [vmem:[#allocation13 + $0x1308] sm:$0xff]  ;;  %v6176_v58 = vcombine.high %v4747_v15, %v4751_v16  ;;  %v6175_v24 = vcombine.low %v4747_v15, %v4751_v16 }
 0x370   :  { %5164 = vmatpush1.bf16.msra.mxu0 %v6223_v18  ;;  %v4444_v28 = vpop.f32.mrf.mxu1  ;;  %5124 = vmatprep.subr.bf16.mxu1 %v6214_v60  ;;  %v6200_v53 = vcombine.high %v4771_v6, %v4775_v37  ;;  %v6199_v54 = vcombine.low %v4771_v6, %v4775_v37  ;;  %v4738_v18 = vld [vmem:[#allocation13 + $0x1200] sm:$0xff]  ;;  %v4789_v6 = vld [vmem:[#allocation13 + $0x1398] sm:$0xff] }
 0x371   :  { %v6788_v32 = vadd.f32 %v4483_v27, %v4443_v45  ;;  %v4445_v33 = vadd.f32 %v4444_v28, %v6740_v44  ;;  %v4485_v34 = vpop.f32.mrf.mxu0  ;;  %5165 = vmatprep.subr.bf16.mxu0 %v6216_v63  ;;  %5154 = vmatprep.mubr.bf16.mxu1 %v6494_v0  ;;  %v6207_v44 = vcombine.low %v4779_v25, %v4783_v26  ;;  %v4742_v60 = vld [vmem:[#allocation13 + $0x1220] sm:$0xff]  ;;  %v4739_v63 = vld [vmem:[#allocation13 + $0x1208] sm:$0xff]  ;;  %v4796_v45 = vld [vmem:[#allocation13 + $0x13d0] sm:$0xff] }
 0x372   :  { %v4446_v57 = vpop.f32.mrf.mxu1  ;;  %5195 = vmatprep.mubr.bf16.mxu0 %v6494_v0  ;;  %v6166_v25 = vcombine.high %v4738_v18, %v4742_v60  ;;  %v6168_v26 = vcombine.high %v4739_v63, %v4743_v20  ;;  %v4800_v27 = vld [vmem:[#allocation13 + $0x13f0] sm:$0xff]  ;;  %v4801_v28 = vld [vmem:[#allocation13 + $0x13f8] sm:$0xff] }
 0x373   :  { %v6793_v38 = vadd.f32 %v4485_v34, %v4445_v33  ;;  %v4487_v41 = vpop.f32.mrf.mxu0  ;;  %5125 = vmatpush1.bf16.msra.mxu1 %v6213_v46  ;;  %v4797_v46 = vld [vmem:[#allocation13 + $0x13d8] sm:$0xff]  ;;  %v6167_v33 = vcombine.low %v4739_v63, %v4743_v20  ;;  %v6226_v34 = vcombine.high %v4796_v45, %v4800_v27 }
 0x374   :  { %5166 = vmatpush1.bf16.msra.mxu0 %v6215_v47  ;;  %v4447_v50 = vpop.f32.mrf.mxu1  ;;  %5126 = vmatprep.subr.bf16.mxu1 %v6206_v31  ;;  %v6165_v47 = vcombine.low %v4738_v18, %v4742_v60  ;;  %v4736_v31 = vld [vmem:[#allocation7] sm:$0x3]  ;;  %v6225_v41 = vcombine.low %v4796_v45, %v4800_v27 }
 0x375   :  { %v4488_v52 = vpop.f32.mrf.mxu0  ;;  %5167 = vmatprep.subr.bf16.mxu0 %v6208_v3  ;;  %v6228_v3 = vcombine.high %v4797_v46, %v4801_v28  ;;  %v6795_v57 = vpack.c.bf16 %v4736_v31, %v4736_v31  ;;  %v4793_v37 = vld [vmem:[#allocation13 + $0x13b8] sm:$0xff]  ;;  %v6218_v50 = vcombine.high %v4788_v55, %v4792_v30  ;;  %v4744_v31 = vld [vmem:[#allocation13 + $0x1230] sm:$0xff] }
 0x376   :  { %v4784_v52 = vld [vmem:[#allocation13 + $0x1370] sm:$0xff]  ;;  %v6219_v39 = vcombine.low %v4789_v6, %v4793_v37 }
 0x377   :  { %5127 = vmatpush1.bf16.msra.mxu1 %v6205_v42  ;;  %v6227_v42 = vcombine.low %v4797_v46, %v4801_v28 }
 0x378   :  { %5168 = vmatpush1.bf16.msra.mxu0 %v6207_v44  ;;  %5128 = vmatprep.subr.bf16.mxu1 %v6198_v51  ;;  %v6220_v44 = vcombine.high %v4789_v6, %v4793_v37  ;;  %v4780_v51 = vld [vmem:[#allocation13 + $0x1350] sm:$0xff] }
 0x379   :  { %5169 = vmatprep.subr.bf16.mxu0 %v6200_v53  ;;  %v4781_v53 = vld [vmem:[#allocation13 + $0x1358] sm:$0xff]  ;;  %v6210_v7 = vcombine.high %v4780_v51, %v4784_v52  ;;  %v6209_v19 = vcombine.low %v4780_v51, %v4784_v52 }
 0x37a   :  { %v6211_v11 = vcombine.low %v4781_v53, %v4785_v62 }
 0x37b   :  { %5129 = vmatpush1.bf16.msra.mxu1 %v6197_v8  ;;  %v6212_v8 = vcombine.high %v4781_v53, %v4785_v62 }
 0x37c   :  { %5170 = vmatpush1.bf16.msra.mxu0 %v6199_v54  ;;  %5130 = vmatprep.subr.bf16.mxu1 %v6190_v9  ;;  %v4772_v54 = vld [vmem:[#allocation13 + $0x1310] sm:$0xff] }
 0x37d   :  { %5171 = vmatprep.subr.bf16.mxu0 %v6192_v43  ;;  %v4776_v9 = vld [vmem:[#allocation13 + $0x1330] sm:$0xff]  ;;  %v4773_v43 = vld [vmem:[#allocation13 + $0x1318] sm:$0xff] }
 0x37e   :  { %v6202_v2 = vcombine.high %v4772_v54, %v4776_v9  ;;  %v6201_v14 = vcombine.low %v4772_v54, %v4776_v9  ;;  %v6203_v15 = vcombine.low %v4773_v43, %v4777_v10 }
 0x37f   :  { %5131 = vmatpush1.bf16.msra.mxu1 %v6189_v13  ;;  %v6204_v13 = vcombine.high %v4773_v43, %v4777_v10 }
 0x380   :  { %5172 = vmatpush1.bf16.msra.mxu0 %v6191_v29  ;;  %5132 = vmatprep.subr.bf16.mxu1 %v6182_v4  ;;  %v4764_v29 = vld [vmem:[#allocation13 + $0x12d0] sm:$0xff] }
 0x381   :  { %5173 = vmatprep.subr.bf16.mxu0 %v6184_v56  ;;  %v4768_v4 = vld [vmem:[#allocation13 + $0x12f0] sm:$0xff]  ;;  %v4765_v56 = vld [vmem:[#allocation13 + $0x12d8] sm:$0xff] }
 0x382   :  { %v6194_v16 = vcombine.high %v4764_v29, %v4768_v4  ;;  %v6193_v18 = vcombine.low %v4764_v29, %v4768_v4  ;;  %v6195_v60 = vcombine.low %v4765_v56, %v4769_v21 }
 0x383   :  { %5133 = vmatpush1.bf16.msra.mxu1 %v6181_v61  ;;  %v4756_v61 = vld [vmem:[#allocation13 + $0x1290] sm:$0xff] }
 0x384   :  { %5174 = vmatpush1.bf16.msra.mxu0 %v6183_v17  ;;  %5134 = vmatprep.subr.bf16.mxu1 %v6174_v22  ;;  %v4760_v17 = vld [vmem:[#allocation13 + $0x12b0] sm:$0xff]  ;;  %v4757_v22 = vld [vmem:[#allocation13 + $0x1298] sm:$0xff] }
 0x385   :  { %5175 = vmatprep.subr.bf16.mxu0 %v6176_v58  ;;  %v4761_v58 = vld [vmem:[#allocation13 + $0x12b8] sm:$0xff]  ;;  %v6186_v63 = vcombine.high %v4756_v61, %v4760_v17  ;;  %v6185_v45 = vcombine.low %v4756_v61, %v4760_v17 }
 0x386   :  { %v6188_v20 = vcombine.high %v4757_v22, %v4761_v58  ;;  %v6187_v27 = vcombine.low %v4757_v22, %v4761_v58  ;;  %v5298_v58 = vsub.s32 0, %v6602_v36 }
 0x387   :  { %5135 = vmatpush1.bf16.msra.mxu1 %v6173_v23  ;;  %v4748_v23 = vld [vmem:[#allocation13 + $0x1250] sm:$0xff] }
 0x388   :  { %5176 = vmatpush1.bf16.msra.mxu0 %v6175_v24  ;;  %5136 = vmatprep.subr.bf16.mxu1 %v6166_v25  ;;  %v4752_v24 = vld [vmem:[#allocation13 + $0x1270] sm:$0xff]  ;;  %v4749_v25 = vld [vmem:[#allocation13 + $0x1258] sm:$0xff] }
 0x389   :  { %5177 = vmatprep.subr.bf16.mxu0 %v6168_v26  ;;  %v4753_v26 = vld [vmem:[#allocation13 + $0x1278] sm:$0xff]  ;;  %v6178_v46 = vcombine.high %v4748_v23, %v4752_v24 }
 0x38a   :  { %v6180_v28 = vcombine.high %v4749_v25, %v4753_v26  ;;  %v6179_v55 = vcombine.low %v4749_v25, %v4753_v26 }
 0x38b   :  { %5137 = vmatpush1.bf16.msra.mxu1 %v6165_v47  ;;  %v4740_v47 = vld [vmem:[#allocation13 + $0x1210] sm:$0xff] }
 0x38c   :  { %5178 = vmatpush1.bf16.msra.mxu0 %v6167_v33  ;;  %5204 = vmatprep.subr.bf16.mxu1 %v6226_v34  ;;  %v4741_v33 = vld [vmem:[#allocation13 + $0x1218] sm:$0xff]  ;;  %v6170_v30 = vcombine.high %v4740_v47, %v4744_v31  ;;  %v6169_v37 = vcombine.low %v4740_v47, %v4744_v31 }
 0x38d   :  { %5245 = vmatprep.subr.bf16.mxu0 %v6228_v3  ;;  %v4745_v34 = vld [vmem:[#allocation13 + $0x1238] sm:$0xff]  ;;  %v6177_v3 = vcombine.low %v4748_v23, %v4752_v24 }
 0x38e   :  { %5155 = vmatmul.mubr.bf16.vlgmr.msra.gmra.mxu1 %v6795_v57  ;;  %v6172_v6 = vcombine.high %v4741_v33, %v4745_v34 }
 0x38f   :  { %5196 = vmatmul.mubr.bf16.vlgmr.msra.gmra.mxu0 %v6795_v57  ;;  %5205 = vmatpush1.bf16.msra.mxu1 %v6225_v41  ;;  %v6171_v41 = vcombine.low %v4741_v33, %v4745_v34 }
 0x390   :  { %5246 = vmatpush1.bf16.msra.mxu0 %v6227_v42  ;;  %5206 = vmatprep.subr.bf16.mxu1 %v6218_v50 }
 0x391   :  { %5247 = vmatprep.subr.bf16.mxu0 %v6220_v44  ;;  %5236 = vmatprep.mubr.bf16.mxu1 %v6494_v0 }
 0x392   :  { %5277 = vmatprep.mubr.bf16.mxu0 %v6494_v0  ;;  %v6196_v0 = vcombine.high %v4765_v56, %v4769_v21 }
 0x393   :  { %5207 = vmatpush1.bf16.msra.mxu1 %v6217_v1 }
 0x394   :  { %5248 = vmatpush1.bf16.msra.mxu0 %v6219_v39  ;;  %5208 = vmatprep.subr.bf16.mxu1 %v6210_v7 }
 0x395   :  { %5249 = vmatprep.subr.bf16.mxu0 %v6212_v8 }
 0x397   :  { %5209 = vmatpush1.bf16.msra.mxu1 %v6209_v19 }
 0x398   :  { %5250 = vmatpush1.bf16.msra.mxu0 %v6211_v11  ;;  %5210 = vmatprep.subr.bf16.mxu1 %v6202_v2 }
 0x399   :  { %5251 = vmatprep.subr.bf16.mxu0 %v6204_v13 }
 0x39b   :  { %5211 = vmatpush1.bf16.msra.mxu1 %v6201_v14 }
 0x39c   :  { %5252 = vmatpush1.bf16.msra.mxu0 %v6203_v15  ;;  %5212 = vmatprep.subr.bf16.mxu1 %v6194_v16 }
 0x39d   :  { %5253 = vmatprep.subr.bf16.mxu0 %v6196_v0 }
 0x39f   :  { %5213 = vmatpush1.bf16.msra.mxu1 %v6193_v18  ;;  %v5294_v18 = vld [vmem:[#allocation14] sm:$0xff] }
 0x3a0   :  { %5254 = vmatpush1.bf16.msra.mxu0 %v6195_v60  ;;  %5214 = vmatprep.subr.bf16.mxu1 %v6186_v63  ;;  %v5306_v60 = vsub.s32 2, %v6602_v36  ;;  %v5310_v63 = vsub.s32 3, %v6602_v36  ;;  %v5299_v24 = vrot.slane %v5294_v18, %v5298_v58 }
 0x3a1   :  { %5255 = vmatprep.subr.bf16.mxu0 %v6188_v20 }
 0x3a3   :  { %5215 = vmatpush1.bf16.msra.mxu1 %v6185_v45 }
 0x3a4   :  { %5256 = vmatpush1.bf16.msra.mxu0 %v6187_v27  ;;  %5216 = vmatprep.subr.bf16.mxu1 %v6178_v46  ;;  %v5307_v27 = vrot.slane %v5294_v18, %v5306_v60 }
 0x3a5   :  { %5257 = vmatprep.subr.bf16.mxu0 %v6180_v28  ;;  %v5311_v28 = vrot.slane %v5294_v18, %v5310_v63 }
 0x3a7   :  { %5217 = vmatpush1.bf16.msra.mxu1 %v6177_v3 }
 0x3a8   :  { %5258 = vmatpush1.bf16.msra.mxu0 %v6179_v55  ;;  %5218 = vmatprep.subr.bf16.mxu1 %v6170_v30 }
 0x3a9   :  { %5259 = vmatprep.subr.bf16.mxu0 %v6172_v6 }
 0x3ab   :  { %5219 = vmatpush1.bf16.msra.mxu1 %v6169_v37 }
 0x3ac   :  { %5260 = vmatpush1.bf16.msra.mxu0 %v6171_v41 }
 0x3ae   :  { %v4524_v42 = vpop.f32.mrf.mxu1  ;;  %5237 = vmatmul.mubr.bf16.vlgmr.msra.gmra.mxu1 %v6795_v57 }
 0x3af   :  { %v4525_v50 = vadd.f32 %v4524_v42, %v6788_v32  ;;  %v4565_v44 = vpop.f32.mrf.mxu0  ;;  %5278 = vmatmul.mubr.bf16.vlgmr.msra.gmra.mxu0 %v6795_v57 }
 0x3b0   :  { %v4526_v51 = vpop.f32.mrf.mxu1 }
 0x3b1   :  { %v6804_v52 = vadd.f32 %v4565_v44, %v4525_v50  ;;  %v4527_v53 = vadd.f32 %v4526_v51, %v6793_v38  ;;  %v4567_v62 = vpop.f32.mrf.mxu0 }
 0x3b2   :  { %v4528_v1 = vpop.f32.mrf.mxu1 }
 0x3b3   :  { %v6807_v39 = vadd.f32 %v4567_v62, %v4527_v53  ;;  %v4569_v7 = vpop.f32.mrf.mxu0  ;;  %v6288_v53 = vld [vmem:[#allocation5] sm:$0xff] }
 0x3b4   :  { %v4529_v8 = vpop.f32.mrf.mxu1 }
 0x3b5   :  { %v4570_v54 = vpop.f32.mrf.mxu0  ;;  %v5314_v8 = vsub.s32 4, %v6602_v36 }
 0x3b6   :  { %v5318_v54 = vsub.s32 5, %v6602_v36 }
 0x3ee   :  { %v4606_v9 = vpop.f32.mrf.mxu1 }
 0x3ef   :  { %v4607_v43 = vadd.f32 %v4606_v9, %v6735_v35  ;;  %v4647_v10 = vpop.f32.mrf.mxu0 }
 0x3f0   :  { %v4608_v32 = vpop.f32.mrf.mxu1 }
 0x3f1   :  { %v4648_v19 = vadd.f32 %v4647_v10, %v4607_v43  ;;  %v4609_v57 = vadd.f32 %v4608_v32, %v6742_v49  ;;  %v4649_v11 = vpop.f32.mrf.mxu0  ;;  %v5302_v49 = vsub.s32 1, %v6602_v36  ;;  %v5322_v43 = vsub.s32 6, %v6602_v36 }
 0x3f2   :  { %v4610_v2 = vpop.f32.mrf.mxu1  ;;  %v5326_v10 = vsub.s32 7, %v6602_v36 }
 0x3f3   :  { %v4650_v13 = vadd.f32 %v4649_v11, %v4609_v57  ;;  %v4651_v29 = vpop.f32.mrf.mxu0  ;;  %v5303_v26 = vrot.slane %v5294_v18, %v5302_v49  ;;  %v5315_v2 = vrot.slane %v5294_v18, %v5314_v8 }
 0x3f4   :  { %v4611_v38 = vpop.f32.mrf.mxu1 }
 0x3f5   :  { %v4652_v4 = vpop.f32.mrf.mxu0  ;;  %v5319_v38 = vrot.slane %v5294_v18, %v5318_v54 }
 0x42e   :  { %v4688_v56 = vpop.f32.mrf.mxu1 }
 0x42f   :  { %v4689_v21 = vadd.f32 %v4688_v56, %v4648_v19  ;;  %v4729_v14 = vpop.f32.mrf.mxu0 }
 0x430   :  { %v4690_v15 = vpop.f32.mrf.mxu1 }
 0x431   :  { %v4730_v16 = vadd.f32 %v4729_v14, %v4689_v21  ;;  %v4731_v0 = vpop.f32.mrf.mxu0  ;;  %v4691_v9 = vadd.f32 %v4690_v15, %v4650_v13  ;;  %v5323_v21 = vrot.slane %v5294_v18, %v5322_v43 }
 0x432   :  { %v4692_v61 = vpop.f32.mrf.mxu1 }
 0x433   :  { %v4733_v17 = vpop.f32.mrf.mxu0  ;;  %v4732_v4 = vadd.f32 %v4731_v0, %v4691_v9  ;;  %v5327_v61 = vrot.slane %v5294_v18, %v5326_v10 }
 0x434   :  { %v4693_v35 = vpop.f32.mrf.mxu1 }
 0x435   :  { %v4734_v22 = vpop.f32.mrf.mxu0 }
 0x44e   :  { %v5156_v20 = vpop.f32.mrf.mxu1 }
 0x44f   :  { %v5286_v23 = vadd.f32 %v5156_v20, %v6759_v59  ;;  %v5197_v25 = vpop.f32.mrf.mxu0 }
 0x450   :  { %v5288_v45 = vadd.f32 %v5197_v25, %v6779_v5  ;;  %v5158_v46 = vpop.f32.mrf.mxu1 }
 0x451   :  { %v5287_v47 = vadd.f32 %v5158_v46, %v6763_v12  ;;  %v5199_v31 = vpop.f32.mrf.mxu0  ;;  %v5336_v3 = vadd.f32 %v5299_v24, %v5286_v23 }
 0x452   :  { %v5289_v33 = vadd.f32 %v5199_v31, %v6783_v48  ;;  %v5160_v34 = vpop.f32.mrf.mxu1  ;;  %v5338_v6 = vadd.f32 %v5307_v27, %v5288_v45 }
 0x453   :  { %v5337_v55 = vadd.f32 %v5303_v26, %v5287_v47  ;;  %v5201_v30 = vpop.f32.mrf.mxu0 }
 0x454   :  { %v5339_v37 = vadd.f32 %v5311_v28, %v5289_v33  ;;  %v5161_v59 = vpop.f32.mrf.mxu1 }
 0x455   :  { %v5352_v41 = vcombine.low %v5336_v3, %v5337_v55  ;;  %v5202_v42 = vpop.f32.mrf.mxu0  ;;  %v6289_v55 = vld [vmem:[#allocation5 + $0x8] sm:$0xff] }
 0x456   :  { %v5353_v50 = vcombine.low %v5338_v6, %v5339_v37 }
 0x457   :  { %v5360_v5 = vrot.slane %v5352_v41, %v6607_v40 }
 0x458   :  { %v5367_v44 = vrot.slane %v5353_v50, %v6607_v40 }
 0x45a   :  { %v5368_v51 = vcombine.low %v5360_v5, %v5367_v44 }
 0x45c   :  { %v5388_v12 = vsub.f32 %v6288_v53, %v5368_v51 }
 0x45e   :  { %v5390_v62 = vmul.f32 %v5388_v12, %v5388_v12 }
 0x460   :  { %v5394_v1 = vcombine.high %v5390_v62, %v5390_v62  ;;  %v5401_v7 = vrot.slane %v5390_v62, %v6607_v40 }
 0x462   :  { %v5408_v48 = vrot.slane %v5394_v1, %v6607_v40  ;;  %v5409_v19 = vcombine.high %v5401_v7, %v5401_v7  ;;  %v5437_v0 = vsel %vm5436_vm0, %v5401_v7, 0.0 }
 0x463   :  { %v5438_v27 = vrot.slane %v5437_v0, 4 }
 0x464   :  { %v5410_v32 = vcombine.high %v5408_v48, %v5408_v48  ;;  %v5444_v35 = vsel %vm5436_vm0, %v5409_v19, 0.0  ;;  %v5451_v49 = vsel %vm5436_vm0, %v5408_v48, 0.0 }
 0x465   :  { %v5445_v24 = vrot.slane %v5444_v35, 4  ;;  %v5452_v26 = vrot.slane %v5451_v49, 4  ;;  %v5439_v3 = vadd.f32 %v5438_v27, %v5437_v0 }
 0x466   :  { %v5458_v17 = vsel %vm5436_vm0, %v5410_v32, 0.0 }
 0x467   :  { %v5459_v18 = vrot.slane %v5458_v17, 4  ;;  %v5446_v31 = vadd.f32 %v5445_v24, %v5444_v35  ;;  %v5453_v34 = vadd.f32 %v5452_v26, %v5451_v49  ;;  %v5440_v42 = vrot.slane %v5439_v3, 2 }
 0x469   :  { %v5460_v47 = vadd.f32 %v5459_v18, %v5458_v17  ;;  %v5447_v37 = vrot.slane %v5446_v31, 2  ;;  %v5454_v41 = vrot.slane %v5453_v34, 2  ;;  %v5441_v7 = vadd.f32 %v5440_v42, %v5439_v3 }
 0x46b   :  { %v5461_v6 = vrot.slane %v5460_v47, 2  ;;  %v5448_v51 = vadd.f32 %v5447_v37, %v5446_v31  ;;  %v5455_v1 = vadd.f32 %v5454_v41, %v5453_v34 }
 0x46d   :  { %v5462_v44 = vadd.f32 %v5461_v6, %v5460_v47 }
 0x46e   :  { %v5238_v57 = vpop.f32.mrf.mxu1 }
 0x46f   :  { %v5290_v11 = vadd.f32 %v5238_v57, %v6804_v52  ;;  %v5279_v29 = vpop.f32.mrf.mxu0  ;;  %v5463_v43 = vrot.slane %v5462_v44, 1  ;;  %v5449_v57 = vrot.slane %v5448_v51, 1 }
 0x470   :  { %v5292_v56 = vadd.f32 %v5279_v29, %v4730_v16  ;;  %v5240_v14 = vpop.f32.mrf.mxu1 }
 0x471   :  { %v5291_v13 = vadd.f32 %v5240_v14, %v6807_v39  ;;  %v5281_v15 = vpop.f32.mrf.mxu0  ;;  %v5340_v52 = vadd.f32 %v5315_v2, %v5290_v11  ;;  %v5456_v11 = vrot.slane %v5455_v1, 1  ;;  %v5442_v14 = vrot.slane %v5441_v7, 1 }
 0x472   :  { %v5293_v22 = vadd.f32 %v5281_v15, %v4732_v4  ;;  %v5242_v58 = vpop.f32.mrf.mxu1  ;;  %v5342_v16 = vadd.f32 %v5323_v21, %v5292_v56 }
 0x473   :  { %v5341_v60 = vadd.f32 %v5319_v38, %v5291_v13  ;;  %v5283_v63 = vpop.f32.mrf.mxu0  ;;  %v5457_v58 = vadd.f32 %v5456_v11, %v5455_v1 }
 0x474   :  { %v5343_v20 = vadd.f32 %v5327_v61, %v5293_v22  ;;  %v5243_v23 = vpop.f32.mrf.mxu1  ;;  %v5464_v61 = vadd.f32 %v5463_v43, %v5462_v44  ;;  %v5450_v22 = vadd.f32 %v5449_v57, %v5448_v51 }
 0x475   :  { %v5369_v39 = vcombine.low %v5340_v52, %v5341_v60  ;;  %v5284_v25 = vpop.f32.mrf.mxu0 }
 0x476   :  { %v5370_v45 = vcombine.low %v5342_v16, %v5343_v20  ;;  %v5443_v16 = vadd.f32 %v5442_v14, %v5441_v7  ;;  %v5502_v24 = vcombine.low %v5457_v58, %v5464_v61 }
 0x477   :  { %v5377_v46 = vrot.slane %v5369_v39, %v6607_v40 }
 0x478   :  { %v5384_v28 = vrot.slane %v5370_v45, %v6607_v40  ;;  %v5501_v27 = vcombine.low %v5443_v16, %v5450_v22 }
 0x47a   :  { %v5385_v33 = vcombine.low %v5377_v46, %v5384_v28 }
 0x47c   :  { %v5389_v30 = vsub.f32 %v6289_v55, %v5385_v33 }
 0x47e   :  { %v5391_v59 = vmul.f32 %v5389_v30, %v5389_v30 }
 0x480   :  { %v5411_v50 = vcombine.high %v5391_v59, %v5391_v59  ;;  %v5418_v5 = vrot.slane %v5391_v59, %v6607_v40 }
 0x482   :  { %v5425_v53 = vrot.slane %v5411_v50, %v6607_v40  ;;  %v5426_v12 = vcombine.high %v5418_v5, %v5418_v5  ;;  %v5465_v62 = vsel %vm5436_vm0, %v5418_v5, 0.0  ;;  %v6496_v40 = vmov 1966171168  }
 0x483   :  { %v5466_v48 = vrot.slane %v5465_v62, 4  ;;  %v5506_v29 = vunpack.c.l.s4 %v6496_v40 }
 0x484   :  { %v5427_v8 = vcombine.high %v5425_v53, %v5425_v53  ;;  %v5472_v54 = vsel %vm5436_vm0, %v5426_v12, 0.0  ;;  %v5479_v9 = vsel %vm5436_vm0, %v5425_v53, 0.0 }
 0x485   :  { %v5467_v10 = vadd.f32 %v5466_v48, %v5465_v62  ;;  %v5473_v32 = vrot.slane %v5472_v54, 4  ;;  %v5480_v19 = vrot.slane %v5479_v9, 4  ;;  %v5507_v49 = vunpack.c.0.s8 %v5506_v29 }
 0x486   :  { %v5486_v2 = vsel %vm5436_vm0, %v5427_v8, 0.0 }
 0x487   :  { %v5468_v38 = vrot.slane %v5467_v10, 2  ;;  %v5474_v4 = vadd.f32 %v5473_v32, %v5472_v54  ;;  %v5481_v56 = vadd.f32 %v5480_v19, %v5479_v9  ;;  %v5487_v21 = vrot.slane %v5486_v2, 4 }
 0x488   :  { %v5510_v39 = vsub.s32 %v5507_v49, %v6602_v36 }
 0x489   :  { %v5469_v13 = vadd.f32 %v5468_v38, %v5467_v10  ;;  %v5475_v15 = vrot.slane %v5474_v4, 2  ;;  %v5482_v17 = vrot.slane %v5481_v56, 2  ;;  %v5488_v35 = vadd.f32 %v5487_v21, %v5486_v2 }
 0x48a   :  { %v5518_v31 = vrot.slane %v5502_v24, %v5510_v39  ;;  %v5511_v34 = vrot.slane %v5501_v27, %v5510_v39 }
 0x48b   :  { %v5470_v52 = vrot.slane %v5469_v13, 1  ;;  %v5476_v60 = vadd.f32 %v5475_v15, %v5474_v4  ;;  %v5483_v63 = vadd.f32 %v5482_v17, %v5481_v56  ;;  %v5489_v0 = vrot.slane %v5488_v35, 2 }
 0x48c   :  { %v5533_v30 = vcombine.low %v5511_v34, %v5518_v31 }
 0x48d   :  { %v5477_v20 = vrot.slane %v5476_v60, 1  ;;  %v5484_v23 = vrot.slane %v5483_v63, 1  ;;  %v5490_v18 = vadd.f32 %v5489_v0, %v5488_v35  ;;  %v5471_v25 = vadd.f32 %v5470_v52, %v5469_v13 }
 0x48e   :  { %v5541_v37 = vrot.slane %v5533_v30, %v5510_v39 }
 0x48f   :  { %v5478_v26 = vadd.f32 %v5477_v20, %v5476_v60  ;;  %v5491_v45 = vrot.slane %v5490_v18, 1  ;;  %v5485_v46 = vadd.f32 %v5484_v23, %v5483_v63 }
 0x491   :  { %v5492_v28 = vadd.f32 %v5491_v45, %v5490_v18  ;;  %v5503_v47 = vcombine.low %v5471_v25, %v5478_v26 }
 0x493   :  { %v5504_v33 = vcombine.low %v5485_v46, %v5492_v28  ;;  %v5525_v3 = vrot.slane %v5503_v47, %v5510_v39 }
 0x495   :  { %v5532_v55 = vrot.slane %v5504_v33, %v5510_v39 }
 0x497   :  { %v5534_v6 = vcombine.low %v5525_v3, %v5532_v55 }
 0x499   :  { %v5548_v59 = vrot.slane %v5534_v6, %v5510_v39 }
 0x49b   :  { %v5549_v41 = vcombine.low %v5541_v37, %v5548_v59 }
 0x49d   :  { %5551 = vst [vmem:[#allocation16] sm:$0xff] %v5549_v41 }
 0x49e   :  { %6461 = shalt.err (!%p6458_p2)
}
 0x49f   :  { %5561 = dma.vmem_to_hbm [thread:$0]  %s5559_s1, 128, %s6855_s10, [#allocation4]  }
 0x4a0   :  { %6480 = dma.done.wait [#allocation4], 128  }
 0x4a1   :  { %6481 = vsyncadd [#allocation4], 4294967168 }
 0x4a2   :  { %5565 = vsyncpa [#allocation3], 1 }
 0x4a3   :  { %5566 = vsyncpa [#allocation6], 1 }
 0x4a4   :  { %5567 = vsyncpa [#allocation9], 1 }
 0x4a5   :  { %5568 = vsyncpa [#allocation12], 1 }
 0x4a6   :  { %5569 = vsyncpa [#allocation15], 1 }
 0x4a7   :  { %5570 = vsyncpa [#allocation4], 1 }

</bundles_post_ra>
